<compile_context>
chip_gen: v6e
topology: v6e:2x2x1
jax: 0.10.0
libtpu: 0.0.40
codegen_flags: <defaults>
</compile_context>

<pallas_src>
from functools import partial

import jax
import jax.numpy as jnp
from jax import lax
from jax.experimental import pallas as pl
from jax.experimental.pallas import tpu as pltpu

_LANE = 128


def _round_up(x, m):
    return (x + m - 1) // m * m


def _vmem_limit_bytes():
    cap = 128 * 1024 * 1024
    try:
        cap = int(pltpu.get_tpu_info().vmem_capacity_bytes)
    except Exception:
        pass
    return min(cap * 3 // 4, 100 * 1024 * 1024)


# ----------------------------------------------------------------------------
# Kernels
# ----------------------------------------------------------------------------
def _accumulate_conv(planes, w_ref, acc_ref, H, W):
    """3x3x3 conv (stride=1) for one (H, W) output plane, accumulated in acc_ref.

    planes : 3 arrays (depth taps kd=0,1,2), each (H+2, W+2, Cin_p), zero-padded.
    w_ref  : (9, 3*Cin_p, Cout_p) weights; row index kd*3 + kh, K rows ordered
             kw-major / cin-minor (matches the lane-concat of the kw shifts).
    acc_ref: (H*W, Cout_p) float32 VMEM scratch accumulator.
    """
    HW = H * W
    first = True
    for kd in range(3):
        xp = planes[kd]                                       # (H+2, W+2, Cin_p)
        # Single lane-axis concat of the three kw (sublane) shifts per depth tap
        # (hoisted out of the kh loop); the kh row-slices below are cheap views.
        slab = jnp.concatenate([xp[:, kw:kw + W, :] for kw in range(3)],
                               axis=-1)                       # (H+2, W, 3*Cin_p)
        for kh in range(3):
            patch = slab[kh:kh + H].reshape(HW, slab.shape[-1])
            contrib = jnp.dot(patch, w_ref[kd * 3 + kh],
                              preferred_element_type=jnp.float32)
            if first:
                acc_ref[...] = contrib
                first = False
            else:
                acc_ref[...] += contrib


def _conv1_kernel(xm_ref, xc_ref, xp_ref, w_ref, s_ref, b_ref, o_ref, acc_ref,
                  *, H, W):
    """relu(conv(x)*scale + bias), written into a spatially padded output plane."""
    dd = pl.program_id(1)
    last = pl.num_programs(1) - 1
    Wp = o_ref.shape[3]
    Cout = o_ref.shape[4]

    @pl.when((dd == 0) | (dd == last))
    def _():
        # Zero depth-halo planes of the padded intermediate (conv2 relies on them).
        o_ref[...] = jnp.zeros(o_ref.shape, o_ref.dtype)

    @pl.when((dd > 0) & (dd < last))
    def _():
        _accumulate_conv((xm_ref[0, 0], xc_ref[0, 0], xp_ref[0, 0]),
                         w_ref, acc_ref, H, W)
        y = jnp.maximum(acc_ref[...] * s_ref[...] + b_ref[...], 0.0)
        yhw = y.reshape(H, W, Cout).astype(o_ref.dtype)
        # Zero only the 1-wide H/W border (conv2 relies on it), then store the
        # interior -- avoids the full-plane zero pre-store of every interior step.
        o_ref[0, 0, 0] = jnp.zeros((Wp, Cout), o_ref.dtype)
        o_ref[0, 0, H + 1] = jnp.zeros((Wp, Cout), o_ref.dtype)
        o_ref[0, 0, 1:H + 1, 0:1] = jnp.zeros((H, 1, Cout), o_ref.dtype)
        o_ref[0, 0, 1:H + 1, W + 1:W + 2] = jnp.zeros((H, 1, Cout), o_ref.dtype)
        o_ref[0, 0, 1:H + 1, 1:W + 1] = yhw


def _conv2_kernel(ym_ref, yc_ref, yp_ref, r_ref, w_ref, s_ref, b_ref, o_ref,
                  acc_ref, *, H, W):
    """relu(conv(y)*scale + bias + residual), unpadded output plane."""
    _accumulate_conv((ym_ref[0, 0], yc_ref[0, 0], yp_ref[0, 0]),
                     w_ref, acc_ref, H, W)
    Cout = o_ref.shape[-1]
    res = r_ref[0, 0].astype(jnp.float32).reshape(H * W, Cout)
    y = jnp.maximum(acc_ref[...] * s_ref[...] + b_ref[...] + res, 0.0)
    o_ref[0, 0] = y.reshape(H, W, Cout).astype(o_ref.dtype)


# ----------------------------------------------------------------------------
# Pallas wrappers
# ----------------------------------------------------------------------------
def _conv_bn_relu_pallas(x_pad, w, scale, bias, *, residual=None,
                         pad_output=False, out_dtype=None):
    """Fused conv3x3x3 (stride=1, pad=1, no bias) + BN(eval) [+ residual] + ReLU.

    x_pad : (N, D+2, H+2, W+2, Cin_p)  spatially padded, channel-padded input.
    w     : (3, 3, 3, Cin_p, Cout_p)   DHWIO weights (channel-padded).
    scale, bias : (Cout_p,)            folded BN scale/shift (zero in pad lanes).
    residual : optional (N, D, H, W, Cout_p) channel-padded residual (unpadded).
    pad_output : if True, output keeps the padded layout (zero halo) so it can
                 feed the next conv without an HBM re-pad.
    """
    N, Dp, Hp, Wp, Cinp = x_pad.shape
    D, H, W = Dp - 2, Hp - 2, Wp - 2
    Coutp = w.shape[-1]
    out_dtype = out_dtype or x_pad.dtype

    # (kd, kh) -> 9 groups; rows within a group ordered kw-major / cin-minor.
    w_mat = w.reshape(9, 3 * Cinp, Coutp)
    s2 = scale.reshape(1, Coutp).astype(jnp.float32)
    b2 = bias.reshape(1, Coutp).astype(jnp.float32)

    plane = (1, 1, Hp, Wp, Cinp)
    w_spec = pl.BlockSpec(w_mat.shape, lambda n, d: (0, 0, 0))
    vec_spec = pl.BlockSpec((1, Coutp), lambda n, d: (0, 0))

    flops = 2 * N * D * H * W * 27 * Cinp * Coutp
    act_item = x_pad.dtype.itemsize
    out_item = jnp.dtype(out_dtype).itemsize

    if pad_output:
        # Grid covers the padded depth axis; boundary steps only emit the zero
        # halo planes so the padded intermediate is fully defined.
        grid = (N, Dp)
        in_specs = [
            pl.BlockSpec(plane, lambda n, d: (n, jnp.maximum(d - 1, 0), 0, 0, 0)),
            pl.BlockSpec(plane, lambda n, d: (n, d, 0, 0, 0)),
            pl.BlockSpec(plane, lambda n, d: (n, jnp.minimum(d + 1, Dp - 1), 0, 0, 0)),
            w_spec, vec_spec, vec_spec,
        ]
        args = (x_pad, x_pad, x_pad, w_mat, s2, b2)
        out_shape = jax.ShapeDtypeStruct((N, Dp, Hp, Wp, Coutp), out_dtype)
        out_spec = pl.BlockSpec((1, 1, Hp, Wp, Coutp), lambda n, d: (n, d, 0, 0, 0))
        kernel = partial(_conv1_kernel, H=H, W=W)
        bytes_accessed = (3 * x_pad.size * act_item
                          + w_mat.size * w_mat.dtype.itemsize
                          + N * Dp * Hp * Wp * Coutp * out_item)
    else:
        assert residual is not None
        assert residual.shape == (N, D, H, W, Coutp)
        grid = (N, D)
        in_specs = [
            pl.BlockSpec(plane, lambda n, d: (n, d, 0, 0, 0)),
            pl.BlockSpec(plane, lambda n, d: (n, d + 1, 0, 0, 0)),
            pl.BlockSpec(plane, lambda n, d: (n, d + 2, 0, 0, 0)),
            pl.BlockSpec((1, 1, H, W, Coutp), lambda n, d: (n, d, 0, 0, 0)),
            w_spec, vec_spec, vec_spec,
        ]
        args = (x_pad, x_pad, x_pad, residual, w_mat, s2, b2)
        out_shape = jax.ShapeDtypeStruct((N, D, H, W, Coutp), out_dtype)
        out_spec = pl.BlockSpec((1, 1, H, W, Coutp), lambda n, d: (n, d, 0, 0, 0))
        kernel = partial(_conv2_kernel, H=H, W=W)
        bytes_accessed = (3 * x_pad.size * act_item
                          + residual.size * residual.dtype.itemsize
                          + w_mat.size * w_mat.dtype.itemsize
                          + N * D * H * W * Coutp * out_item)

    return pl.pallas_call(
        kernel,
        out_shape=out_shape,
        grid=grid,
        in_specs=in_specs,
        out_specs=out_spec,
        scratch_shapes=[pltpu.VMEM((H * W, Coutp), jnp.float32)],
        compiler_params=pltpu.CompilerParams(
            dimension_semantics=("parallel", "parallel"),
            vmem_limit_bytes=_vmem_limit_bytes()),
        cost_estimate=pl.CostEstimate(flops=flops, transcendentals=0,
                                      bytes_accessed=bytes_accessed),
    )(*args)


def basic_block_forward(x_ncdhw, params, *, compute_dtype=jnp.bfloat16):
    """BasicBlock forward (stride=1, downsample=None). x_ncdhw: (N, C, D, H, W)."""
    N, C, D, H, W = x_ncdhw.shape
    Cout1 = params["w1"].shape[-1]
    Cout2 = params["w2"].shape[-1]
    assert C == Cout2, "downsample=None requires inplanes == planes"

    Cp = _round_up(C, _LANE)
    C1p = _round_up(Cout1, _LANE)
    C2p = _round_up(Cout2, _LANE)

    # NCDHW -> NDHWC (bf16), channel pad to lane width; the un-padded copy is
    # reused as a sublane-aligned residual input for conv2.
    x = jnp.transpose(x_ncdhw, (0, 2, 3, 4, 1)).astype(compute_dtype)
    x_res = jnp.pad(x, ((0, 0),) * 4 + ((0, Cp - C),))
    x_pad = jnp.pad(x_res, ((0, 0), (1, 1), (1, 1), (1, 1), (0, 0)))

    w1 = jnp.pad(params["w1"],
                 ((0, 0),) * 3 + ((0, Cp - C), (0, C1p - Cout1))).astype(compute_dtype)
    w2 = jnp.pad(params["w2"],
                 ((0, 0),) * 3 + ((0, C1p - Cout1), (0, C2p - Cout2))).astype(compute_dtype)
    s1 = jnp.pad(params["s1"], (0, C1p - Cout1))
    b1 = jnp.pad(params["b1"], (0, C1p - Cout1))
    s2 = jnp.pad(params["s2"], (0, C2p - Cout2))
    b2 = jnp.pad(params["b2"], (0, C2p - Cout2))

    # conv1 + bn1 + relu (output stays in padded bf16 layout -> no HBM re-pad).
    y_pad = _conv_bn_relu_pallas(x_pad, w1, s1, b1, pad_output=True,
                                 out_dtype=compute_dtype)
    # conv2 + bn2 + residual add + relu (f32 output).
    out = _conv_bn_relu_pallas(y_pad, w2, s2, b2, residual=x_res,
                               pad_output=False, out_dtype=jnp.float32)

    out = out[..., :Cout2]
    return jnp.transpose(out, (0, 4, 1, 2, 3))


# ----------------------------------------------------------------------------
# Pure-JAX reference (matched mixed precision, for correctness check)
# ----------------------------------------------------------------------------
def basic_block_reference(x_ncdhw, params, *, compute_dtype=jnp.bfloat16):
    xb = jnp.transpose(x_ncdhw, (0, 2, 3, 4, 1)).astype(compute_dtype)

    def conv(z, w):
        return lax.conv_general_dilated(
            z, w.astype(compute_dtype), window_strides=(1, 1, 1),
            padding=((1, 1), (1, 1), (1, 1)),
            dimension_numbers=("NDHWC", "DHWIO", "NDHWC"),
            preferred_element_type=jnp.float32)

    y = jnp.maximum(conv(xb, params["w1"]) * params["s1"] + params["b1"], 0.0)
    y = y.astype(compute_dtype)                 # matches bf16 intermediate
    o = jnp.maximum(conv(y, params["w2"]) * params["s2"] + params["b2"]
                    + xb.astype(jnp.float32), 0.0)
    return jnp.transpose(o, (0, 4, 1, 2, 3))


# ----------------------------------------------------------------------------
# Main
# ----------------------------------------------------------------------------
if __name__ == "__main__":
    N, inplanes, planes = 2, 4, 4       # expansion=1, downsample=None => equal
    D = H = W = 8
    eps = 1e-5

    key = jax.random.PRNGKey(0)
    kx, kw1, kw2 = jax.random.split(key, 3)

    x = jax.random.normal(kx, (N, inplanes, D, H, W), dtype=jnp.float32)

    # Conv weights (DHWIO layout), kaiming-ish scaling.
    w1 = jax.random.normal(kw1, (3, 3, 3, inplanes, planes), jnp.float32) / jnp.sqrt(27.0 * inplanes)
    w2 = jax.random.normal(kw2, (3, 3, 3, planes, planes), jnp.float32) / jnp.sqrt(27.0 * planes)

    # BatchNorm3d (eval mode): gamma=1, beta=0, running_mean=0, running_var=1.
    def fold_bn(gamma, beta, rm, rv):
        s = gamma / jnp.sqrt(rv + eps)
        return s, beta - rm * s

    s1, b1 = fold_bn(jnp.ones((planes,), jnp.float32), jnp.zeros((planes,), jnp.float32),
                     jnp.zeros((planes,), jnp.float32), jnp.ones((planes,), jnp.float32))
    s2, b2 = fold_bn(jnp.ones((planes,), jnp.float32), jnp.zeros((planes,), jnp.float32),
                     jnp.zeros((planes,), jnp.float32), jnp.ones((planes,), jnp.float32))

    params = {"w1": w1, "s1": s1, "b1": b1, "w2": w2, "s2": s2, "b2": b2}

    fwd = jax.jit(basic_block_forward)
    out = jax.block_until_ready(fwd(x, params))
    ref = jax.block_until_ready(basic_block_reference(x, params))

    assert out.shape == (N, planes, D, H, W)
    assert jnp.allclose(out, ref, rtol=5e-2, atol=5e-2), "Pallas output mismatch vs reference"

    print("KERNEL_OK")
</pallas_src>

<mosaic_0001>
module attributes {stable_mosaic.version = 11 : i64} {
  func.func @_conv1_kernel(%arg0: i32, %arg1: i32, %arg2: memref<1x1x10x10x128xbf16, #tpu.memory_space<vmem>>, %arg3: memref<1x1x10x10x128xbf16, #tpu.memory_space<vmem>>, %arg4: memref<1x1x10x10x128xbf16, #tpu.memory_space<vmem>>, %arg5: memref<9x384x128xbf16, #tpu.memory_space<vmem>>, %arg6: memref<1x128xf32, #tpu.memory_space<vmem>>, %arg7: memref<1x128xf32, #tpu.memory_space<vmem>>, %arg8: memref<1x1x10x10x128xbf16, #tpu.memory_space<vmem>>, %arg9: memref<64x128xf32, #tpu.memory_space<vmem>>) attributes {dimension_semantics = [#tpu.dimension_semantics<parallel>, #tpu.dimension_semantics<parallel>], iteration_bounds = array<i64: 2, 10>, scalar_prefetch = 0 : i64, scratch_operands = 1 : i64, tpu.core_type = #tpu.core_type<tc>, window_params = [{transform_indices = @transform_0, window_bounds = array<i64: 1, 1, 10, 10, 128>}, {transform_indices = @transform_1, window_bounds = array<i64: 1, 1, 10, 10, 128>}, {transform_indices = @transform_2, window_bounds = array<i64: 1, 1, 10, 10, 128>}, {pipeline_mode = #tpu.pipeline_mode<synchronous>, transform_indices = @transform_3, window_bounds = array<i64: 9, 384, 128>}, {pipeline_mode = #tpu.pipeline_mode<synchronous>, transform_indices = @transform_4, window_bounds = array<i64: 1, 128>}, {pipeline_mode = #tpu.pipeline_mode<synchronous>, transform_indices = @transform_5, window_bounds = array<i64: 1, 128>}, {transform_indices = @transform_6, window_bounds = array<i64: 1, 1, 10, 10, 128>}]} {
    %c0_i32 = arith.constant 0 : i32
    %0 = arith.cmpi eq, %arg1, %c0_i32 : i32
    %c9_i32 = arith.constant 9 : i32
    %1 = arith.cmpi eq, %arg1, %c9_i32 : i32
    %2 = arith.ori %0, %1 : i1
    %3 = arith.extui %2 : i1 to i32
    %c0_i32_0 = arith.constant 0 : i32
    %4 = arith.cmpi ne, %3, %c0_i32_0 : i32
    scf.if %4 {
      %cst = arith.constant 0.000000e+00 : bf16
      %10 = vector.broadcast %cst : bf16 to vector<1x1x10x10x128xbf16>
      %c0 = arith.constant 0 : index
      %c0_4 = arith.constant 0 : index
      %c0_5 = arith.constant 0 : index
      %c0_6 = arith.constant 0 : index
      %c0_7 = arith.constant 0 : index
      %11 = vector.load %arg8[%c0, %c0_4, %c0_5, %c0_6, %c0_7] : memref<1x1x10x10x128xbf16, #tpu.memory_space<vmem>>, vector<1x1x10x10x128xbf16>
      tpu.vector_store %arg8[%c0, %c0_4, %c0_5, %c0_6, %c0_7], %10 {strides = array<i32>} : memref<1x1x10x10x128xbf16, #tpu.memory_space<vmem>>, vector<1x1x10x10x128xbf16>,
    } else {
    }
    %c0_i32_1 = arith.constant 0 : i32
    %5 = arith.cmpi sgt, %arg1, %c0_i32_1 : i32
    %c9_i32_2 = arith.constant 9 : i32
    %6 = arith.cmpi slt, %arg1, %c9_i32_2 : i32
    %7 = arith.andi %5, %6 : i1
    %8 = arith.extui %7 : i1 to i32
    %c0_i32_3 = arith.constant 0 : i32
    %9 = arith.cmpi ne, %8, %c0_i32_3 : i32
    scf.if %9 {
      %c0 = arith.constant 0 : index
      %c0_4 = arith.constant 0 : index
      %c0_5 = arith.constant 0 : index
      %c0_6 = arith.constant 0 : index
      %c0_7 = arith.constant 0 : index
      %10 = vector.load %arg2[%c0, %c0_4, %c0_5, %c0_6, %c0_7] : memref<1x1x10x10x128xbf16, #tpu.memory_space<vmem>>, vector<1x1x10x10x128xbf16>
      %11 = vector.shape_cast %10 : vector<1x1x10x10x128xbf16> to vector<10x10x128xbf16>
      %c0_8 = arith.constant 0 : index
      %c0_9 = arith.constant 0 : index
      %c0_10 = arith.constant 0 : index
      %c0_11 = arith.constant 0 : index
      %c0_12 = arith.constant 0 : index
      %12 = vector.load %arg3[%c0_8, %c0_9, %c0_10, %c0_11, %c0_12] : memref<1x1x10x10x128xbf16, #tpu.memory_space<vmem>>, vector<1x1x10x10x128xbf16>
      %13 = vector.shape_cast %12 : vector<1x1x10x10x128xbf16> to vector<10x10x128xbf16>
      %c0_13 = arith.constant 0 : index
      %c0_14 = arith.constant 0 : index
      %c0_15 = arith.constant 0 : index
      %c0_16 = arith.constant 0 : index
      %c0_17 = arith.constant 0 : index
      %14 = vector.load %arg4[%c0_13, %c0_14, %c0_15, %c0_16, %c0_17] : memref<1x1x10x10x128xbf16, #tpu.memory_space<vmem>>, vector<1x1x10x10x128xbf16>
      %15 = vector.shape_cast %14 : vector<1x1x10x10x128xbf16> to vector<10x10x128xbf16>
      %16 = vector.extract_strided_slice %11 {offsets = [0, 0, 0], sizes = [10, 8, 128], strides = [1, 1, 1]} : vector<10x10x128xbf16> to vector<10x8x128xbf16>
      %17 = vector.extract_strided_slice %11 {offsets = [0, 1, 0], sizes = [10, 8, 128], strides = [1, 1, 1]} : vector<10x10x128xbf16> to vector<10x8x128xbf16>
      %18 = vector.extract_strided_slice %11 {offsets = [0, 2, 0], sizes = [10, 8, 128], strides = [1, 1, 1]} : vector<10x10x128xbf16> to vector<10x8x128xbf16>
      %19 = tpu.concatenate %16, %17, %18 in 2 : vector<10x8x128xbf16>, vector<10x8x128xbf16>, vector<10x8x128xbf16> -> vector<10x8x384xbf16>
      %20 = vector.extract_strided_slice %19 {offsets = [0, 0, 0], sizes = [8, 8, 384], strides = [1, 1, 1]} : vector<10x8x384xbf16> to vector<8x8x384xbf16>
      %21 = vector.shape_cast %20 : vector<8x8x384xbf16> to vector<64x384xbf16>
      %c0_18 = arith.constant 0 : index
      %c0_19 = arith.constant 0 : index
      %c0_20 = arith.constant 0 : index
      %22 = vector.load %arg5[%c0_18, %c0_19, %c0_20] : memref<9x384x128xbf16, #tpu.memory_space<vmem>>, vector<1x384x128xbf16>
      %23 = vector.shape_cast %22 : vector<1x384x128xbf16> to vector<384x128xbf16>
      %cst = arith.constant dense<0.000000e+00> : vector<64x128xf32>
      %24 = tpu.matmul %21, %23, %cst {dimension_numbers = #tpu.dot_dimension_numbers<[1], [0], [0], [1], [0, 0, 1, 1], [], []>} : vector<64x384xbf16>, vector<384x128xbf16>, vector<64x128xf32> -> vector<64x128xf32>
      %c0_21 = arith.constant 0 : index
      %c0_22 = arith.constant 0 : index
      %25 = vector.load %arg9[%c0_21, %c0_22] : memref<64x128xf32, #tpu.memory_space<vmem>>, vector<64x128xf32>
      tpu.vector_store %arg9[%c0_21, %c0_22], %24 {strides = array<i32>} : memref<64x128xf32, #tpu.memory_space<vmem>>, vector<64x128xf32>,
      %26 = vector.extract_strided_slice %19 {offsets = [1, 0, 0], sizes = [8, 8, 384], strides = [1, 1, 1]} : vector<10x8x384xbf16> to vector<8x8x384xbf16>
      %27 = vector.shape_cast %26 : vector<8x8x384xbf16> to vector<64x384xbf16>
      %c1 = arith.constant 1 : index
      %c0_23 = arith.constant 0 : index
      %c0_24 = arith.constant 0 : index
      %28 = vector.load %arg5[%c1, %c0_23, %c0_24] : memref<9x384x128xbf16, #tpu.memory_space<vmem>>, vector<1x384x128xbf16>
      %29 = vector.shape_cast %28 : vector<1x384x128xbf16> to vector<384x128xbf16>
      %cst_25 = arith.constant dense<0.000000e+00> : vector<64x128xf32>
      %30 = tpu.matmul %27, %29, %cst_25 {dimension_numbers = #tpu.dot_dimension_numbers<[1], [0], [0], [1], [0, 0, 1, 1], [], []>} : vector<64x384xbf16>, vector<384x128xbf16>, vector<64x128xf32> -> vector<64x128xf32>
      %c0_26 = arith.constant 0 : index
      %c0_27 = arith.constant 0 : index
      %31 = vector.load %arg9[%c0_26, %c0_27] : memref<64x128xf32, #tpu.memory_space<vmem>>, vector<64x128xf32>
      %32 = arith.addf %31, %30 : vector<64x128xf32>
      %c0_28 = arith.constant 0 : index
      %c0_29 = arith.constant 0 : index
      %33 = vector.load %arg9[%c0_28, %c0_29] : memref<64x128xf32, #tpu.memory_space<vmem>>, vector<64x128xf32>
      tpu.vector_store %arg9[%c0_28, %c0_29], %32 {strides = array<i32>} : memref<64x128xf32, #tpu.memory_space<vmem>>, vector<64x128xf32>,
      %34 = vector.extract_strided_slice %19 {offsets = [2, 0, 0], sizes = [8, 8, 384], strides = [1, 1, 1]} : vector<10x8x384xbf16> to vector<8x8x384xbf16>
      %35 = vector.shape_cast %34 : vector<8x8x384xbf16> to vector<64x384xbf16>
      %c2 = arith.constant 2 : index
      %c0_30 = arith.constant 0 : index
      %c0_31 = arith.constant 0 : index
      %36 = vector.load %arg5[%c2, %c0_30, %c0_31] : memref<9x384x128xbf16, #tpu.memory_space<vmem>>, vector<1x384x128xbf16>
      %37 = vector.shape_cast %36 : vector<1x384x128xbf16> to vector<384x128xbf16>
      %cst_32 = arith.constant dense<0.000000e+00> : vector<64x128xf32>
      %38 = tpu.matmul %35, %37, %cst_32 {dimension_numbers = #tpu.dot_dimension_numbers<[1], [0], [0], [1], [0, 0, 1, 1], [], []>} : vector<64x384xbf16>, vector<384x128xbf16>, vector<64x128xf32> -> vector<64x128xf32>
      %c0_33 = arith.constant 0 : index
      %c0_34 = arith.constant 0 : index
      %39 = vector.load %arg9[%c0_33, %c0_34] : memref<64x128xf32, #tpu.memory_space<vmem>>, vector<64x128xf32>
      %40 = arith.addf %39, %38 : vector<64x128xf32>
      %c0_35 = arith.constant 0 : index
      %c0_36 = arith.constant 0 : index
      %41 = vector.load %arg9[%c0_35, %c0_36] : memref<64x128xf32, #tpu.memory_space<vmem>>, vector<64x128xf32>
      tpu.vector_store %arg9[%c0_35, %c0_36], %40 {strides = array<i32>} : memref<64x128xf32, #tpu.memory_space<vmem>>, vector<64x128xf32>,
      %42 = vector.extract_strided_slice %13 {offsets = [0, 0, 0], sizes = [10, 8, 128], strides = [1, 1, 1]} : vector<10x10x128xbf16> to vector<10x8x128xbf16>
      %43 = vector.extract_strided_slice %13 {offsets = [0, 1, 0], sizes = [10, 8, 128], strides = [1, 1, 1]} : vector<10x10x128xbf16> to vector<10x8x128xbf16>
      %44 = vector.extract_strided_slice %13 {offsets = [0, 2, 0], sizes = [10, 8, 128], strides = [1, 1, 1]} : vector<10x10x128xbf16> to vector<10x8x128xbf16>
      %45 = tpu.concatenate %42, %43, %44 in 2 : vector<10x8x128xbf16>, vector<10x8x128xbf16>, vector<10x8x128xbf16> -> vector<10x8x384xbf16>
      %46 = vector.extract_strided_slice %45 {offsets = [0, 0, 0], sizes = [8, 8, 384], strides = [1, 1, 1]} : vector<10x8x384xbf16> to vector<8x8x384xbf16>
      %47 = vector.shape_cast %46 : vector<8x8x384xbf16> to vector<64x384xbf16>
      %c3 = arith.constant 3 : index
      %c0_37 = arith.constant 0 : index
      %c0_38 = arith.constant 0 : index
      %48 = vector.load %arg5[%c3, %c0_37, %c0_38] : memref<9x384x128xbf16, #tpu.memory_space<vmem>>, vector<1x384x128xbf16>
      %49 = vector.shape_cast %48 : vector<1x384x128xbf16> to vector<384x128xbf16>
      %cst_39 = arith.constant dense<0.000000e+00> : vector<64x128xf32>
      %50 = tpu.matmul %47, %49, %cst_39 {dimension_numbers = #tpu.dot_dimension_numbers<[1], [0], [0], [1], [0, 0, 1, 1], [], []>} : vector<64x384xbf16>, vector<384x128xbf16>, vector<64x128xf32> -> vector<64x128xf32>
      %c0_40 = arith.constant 0 : index
      %c0_41 = arith.constant 0 : index
      %51 = vector.load %arg9[%c0_40, %c0_41] : memref<64x128xf32, #tpu.memory_space<vmem>>, vector<64x128xf32>
      %52 = arith.addf %51, %50 : vector<64x128xf32>
      %c0_42 = arith.constant 0 : index
      %c0_43 = arith.constant 0 : index
      %53 = vector.load %arg9[%c0_42, %c0_43] : memref<64x128xf32, #tpu.memory_space<vmem>>, vector<64x128xf32>
      tpu.vector_store %arg9[%c0_42, %c0_43], %52 {strides = array<i32>} : memref<64x128xf32, #tpu.memory_space<vmem>>, vector<64x128xf32>,
      %54 = vector.extract_strided_slice %45 {offsets = [1, 0, 0], sizes = [8, 8, 384], strides = [1, 1, 1]} : vector<10x8x384xbf16> to vector<8x8x384xbf16>
      %55 = vector.shape_cast %54 : vector<8x8x384xbf16> to vector<64x384xbf16>
      %c4 = arith.constant 4 : index
      %c0_44 = arith.constant 0 : index
      %c0_45 = arith.constant 0 : index
      %56 = vector.load %arg5[%c4, %c0_44, %c0_45] : memref<9x384x128xbf16, #tpu.memory_space<vmem>>, vector<1x384x128xbf16>
      %57 = vector.shape_cast %56 : vector<1x384x128xbf16> to vector<384x128xbf16>
      %cst_46 = arith.constant dense<0.000000e+00> : vector<64x128xf32>
      %58 = tpu.matmul %55, %57, %cst_46 {dimension_numbers = #tpu.dot_dimension_numbers<[1], [0], [0], [1], [0, 0, 1, 1], [], []>} : vector<64x384xbf16>, vector<384x128xbf16>, vector<64x128xf32> -> vector<64x128xf32>
      %c0_47 = arith.constant 0 : index
      %c0_48 = arith.constant 0 : index
      %59 = vector.load %arg9[%c0_47, %c0_48] : memref<64x128xf32, #tpu.memory_space<vmem>>, vector<64x128xf32>
      %60 = arith.addf %59, %58 : vector<64x128xf32>
      %c0_49 = arith.constant 0 : index
      %c0_50 = arith.constant 0 : index
      %61 = vector.load %arg9[%c0_49, %c0_50] : memref<64x128xf32, #tpu.memory_space<vmem>>, vector<64x128xf32>
      tpu.vector_store %arg9[%c0_49, %c0_50], %60 {strides = array<i32>} : memref<64x128xf32, #tpu.memory_space<vmem>>, vector<64x128xf32>,
      %62 = vector.extract_strided_slice %45 {offsets = [2, 0, 0], sizes = [8, 8, 384], strides = [1, 1, 1]} : vector<10x8x384xbf16> to vector<8x8x384xbf16>
      %63 = vector.shape_cast %62 : vector<8x8x384xbf16> to vector<64x384xbf16>
      %c5 = arith.constant 5 : index
      %c0_51 = arith.constant 0 : index
      %c0_52 = arith.constant 0 : index
      %64 = vector.load %arg5[%c5, %c0_51, %c0_52] : memref<9x384x128xbf16, #tpu.memory_space<vmem>>, vector<1x384x128xbf16>
      %65 = vector.shape_cast %64 : vector<1x384x128xbf16> to vector<384x128xbf16>
      %cst_53 = arith.constant dense<0.000000e+00> : vector<64x128xf32>
      %66 = tpu.matmul %63, %65, %cst_53 {dimension_numbers = #tpu.dot_dimension_numbers<[1], [0], [0], [1], [0, 0, 1, 1], [], []>} : vector<64x384xbf16>, vector<384x128xbf16>, vector<64x128xf32> -> vector<64x128xf32>
      %c0_54 = arith.constant 0 : index
      %c0_55 = arith.constant 0 : index
      %67 = vector.load %arg9[%c0_54, %c0_55] : memref<64x128xf32, #tpu.memory_space<vmem>>, vector<64x128xf32>
      %68 = arith.addf %67, %66 : vector<64x128xf32>
      %c0_56 = arith.constant 0 : index
      %c0_57 = arith.constant 0 : index
      %69 = vector.load %arg9[%c0_56, %c0_57] : memref<64x128xf32, #tpu.memory_space<vmem>>, vector<64x128xf32>
      tpu.vector_store %arg9[%c0_56, %c0_57], %68 {strides = array<i32>} : memref<64x128xf32, #tpu.memory_space<vmem>>, vector<64x128xf32>,
      %70 = vector.extract_strided_slice %15 {offsets = [0, 0, 0], sizes = [10, 8, 128], strides = [1, 1, 1]} : vector<10x10x128xbf16> to vector<10x8x128xbf16>
      %71 = vector.extract_strided_slice %15 {offsets = [0, 1, 0], sizes = [10, 8, 128], strides = [1, 1, 1]} : vector<10x10x128xbf16> to vector<10x8x128xbf16>
      %72 = vector.extract_strided_slice %15 {offsets = [0, 2, 0], sizes = [10, 8, 128], strides = [1, 1, 1]} : vector<10x10x128xbf16> to vector<10x8x128xbf16>
      %73 = tpu.concatenate %70, %71, %72 in 2 : vector<10x8x128xbf16>, vector<10x8x128xbf16>, vector<10x8x128xbf16> -> vector<10x8x384xbf16>
      %74 = vector.extract_strided_slice %73 {offsets = [0, 0, 0], sizes = [8, 8, 384], strides = [1, 1, 1]} : vector<10x8x384xbf16> to vector<8x8x384xbf16>
      %75 = vector.shape_cast %74 : vector<8x8x384xbf16> to vector<64x384xbf16>
      %c6 = arith.constant 6 : index
      %c0_58 = arith.constant 0 : index
      %c0_59 = arith.constant 0 : index
      %76 = vector.load %arg5[%c6, %c0_58, %c0_59] : memref<9x384x128xbf16, #tpu.memory_space<vmem>>, vector<1x384x128xbf16>
      %77 = vector.shape_cast %76 : vector<1x384x128xbf16> to vector<384x128xbf16>
      %cst_60 = arith.constant dense<0.000000e+00> : vector<64x128xf32>
      %78 = tpu.matmul %75, %77, %cst_60 {dimension_numbers = #tpu.dot_dimension_numbers<[1], [0], [0], [1], [0, 0, 1, 1], [], []>} : vector<64x384xbf16>, vector<384x128xbf16>, vector<64x128xf32> -> vector<64x128xf32>
      %c0_61 = arith.constant 0 : index
      %c0_62 = arith.constant 0 : index
      %79 = vector.load %arg9[%c0_61, %c0_62] : memref<64x128xf32, #tpu.memory_space<vmem>>, vector<64x128xf32>
      %80 = arith.addf %79, %78 : vector<64x128xf32>
      %c0_63 = arith.constant 0 : index
      %c0_64 = arith.constant 0 : index
      %81 = vector.load %arg9[%c0_63, %c0_64] : memref<64x128xf32, #tpu.memory_space<vmem>>, vector<64x128xf32>
      tpu.vector_store %arg9[%c0_63, %c0_64], %80 {strides = array<i32>} : memref<64x128xf32, #tpu.memory_space<vmem>>, vector<64x128xf32>,
      %82 = vector.extract_strided_slice %73 {offsets = [1, 0, 0], sizes = [8, 8, 384], strides = [1, 1, 1]} : vector<10x8x384xbf16> to vector<8x8x384xbf16>
      %83 = vector.shape_cast %82 : vector<8x8x384xbf16> to vector<64x384xbf16>
      %c7 = arith.constant 7 : index
      %c0_65 = arith.constant 0 : index
      %c0_66 = arith.constant 0 : index
      %84 = vector.load %arg5[%c7, %c0_65, %c0_66] : memref<9x384x128xbf16, #tpu.memory_space<vmem>>, vector<1x384x128xbf16>
      %85 = vector.shape_cast %84 : vector<1x384x128xbf16> to vector<384x128xbf16>
      %cst_67 = arith.constant dense<0.000000e+00> : vector<64x128xf32>
      %86 = tpu.matmul %83, %85, %cst_67 {dimension_numbers = #tpu.dot_dimension_numbers<[1], [0], [0], [1], [0, 0, 1, 1], [], []>} : vector<64x384xbf16>, vector<384x128xbf16>, vector<64x128xf32> -> vector<64x128xf32>
      %c0_68 = arith.constant 0 : index
      %c0_69 = arith.constant 0 : index
      %87 = vector.load %arg9[%c0_68, %c0_69] : memref<64x128xf32, #tpu.memory_space<vmem>>, vector<64x128xf32>
      %88 = arith.addf %87, %86 : vector<64x128xf32>
      %c0_70 = arith.constant 0 : index
      %c0_71 = arith.constant 0 : index
      %89 = vector.load %arg9[%c0_70, %c0_71] : memref<64x128xf32, #tpu.memory_space<vmem>>, vector<64x128xf32>
      tpu.vector_store %arg9[%c0_70, %c0_71], %88 {strides = array<i32>} : memref<64x128xf32, #tpu.memory_space<vmem>>, vector<64x128xf32>,
      %90 = vector.extract_strided_slice %73 {offsets = [2, 0, 0], sizes = [8, 8, 384], strides = [1, 1, 1]} : vector<10x8x384xbf16> to vector<8x8x384xbf16>
      %91 = vector.shape_cast %90 : vector<8x8x384xbf16> to vector<64x384xbf16>
      %c8 = arith.constant 8 : index
      %c0_72 = arith.constant 0 : index
      %c0_73 = arith.constant 0 : index
      %92 = vector.load %arg5[%c8, %c0_72, %c0_73] : memref<9x384x128xbf16, #tpu.memory_space<vmem>>, vector<1x384x128xbf16>
      %93 = vector.shape_cast %92 : vector<1x384x128xbf16> to vector<384x128xbf16>
      %cst_74 = arith.constant dense<0.000000e+00> : vector<64x128xf32>
      %94 = tpu.matmul %91, %93, %cst_74 {dimension_numbers = #tpu.dot_dimension_numbers<[1], [0], [0], [1], [0, 0, 1, 1], [], []>} : vector<64x384xbf16>, vector<384x128xbf16>, vector<64x128xf32> -> vector<64x128xf32>
      %c0_75 = arith.constant 0 : index
      %c0_76 = arith.constant 0 : index
      %95 = vector.load %arg9[%c0_75, %c0_76] : memref<64x128xf32, #tpu.memory_space<vmem>>, vector<64x128xf32>
      %96 = arith.addf %95, %94 : vector<64x128xf32>
      %c0_77 = arith.constant 0 : index
      %c0_78 = arith.constant 0 : index
      %97 = vector.load %arg9[%c0_77, %c0_78] : memref<64x128xf32, #tpu.memory_space<vmem>>, vector<64x128xf32>
      tpu.vector_store %arg9[%c0_77, %c0_78], %96 {strides = array<i32>} : memref<64x128xf32, #tpu.memory_space<vmem>>, vector<64x128xf32>,
      %c0_79 = arith.constant 0 : index
      %c0_80 = arith.constant 0 : index
      %98 = vector.load %arg9[%c0_79, %c0_80] : memref<64x128xf32, #tpu.memory_space<vmem>>, vector<64x128xf32>
      %c0_81 = arith.constant 0 : index
      %c0_82 = arith.constant 0 : index
      %99 = vector.load %arg6[%c0_81, %c0_82] : memref<1x128xf32, #tpu.memory_space<vmem>>, vector<1x128xf32>
      %100 = vector.broadcast %99 : vector<1x128xf32> to vector<64x128xf32>
      %101 = arith.mulf %98, %100 : vector<64x128xf32>
      %c0_83 = arith.constant 0 : index
      %c0_84 = arith.constant 0 : index
      %102 = vector.load %arg7[%c0_83, %c0_84] : memref<1x128xf32, #tpu.memory_space<vmem>>, vector<1x128xf32>
      %103 = vector.broadcast %102 : vector<1x128xf32> to vector<64x128xf32>
      %104 = arith.addf %101, %103 : vector<64x128xf32>
      %cst_85 = arith.constant 0.000000e+00 : f32
      %105 = vector.broadcast %cst_85 : f32 to vector<64x128xf32>
      %106 = arith.maximumf %104, %105 : vector<64x128xf32>
      %107 = vector.shape_cast %106 : vector<64x128xf32> to vector<8x8x128xf32>
      %108 = arith.truncf %107 : vector<8x8x128xf32> to vector<8x8x128xbf16>
      %cst_86 = arith.constant 0.000000e+00 : bf16
      %109 = vector.broadcast %cst_86 : bf16 to vector<10x128xbf16>
      %c0_87 = arith.constant 0 : index
      %c0_88 = arith.constant 0 : index
      %c0_89 = arith.constant 0 : index
      %c0_90 = arith.constant 0 : index
      %c0_91 = arith.constant 0 : index
      %110 = vector.load %arg8[%c0_87, %c0_88, %c0_89, %c0_90, %c0_91] : memref<1x1x10x10x128xbf16, #tpu.memory_space<vmem>>, vector<1x1x1x10x128xbf16>
      %111 = vector.shape_cast %110 : vector<1x1x1x10x128xbf16> to vector<10x128xbf16>
      %112 = vector.shape_cast %109 : vector<10x128xbf16> to vector<1x1x1x10x128xbf16>
      tpu.vector_store %arg8[%c0_87, %c0_88, %c0_89, %c0_90, %c0_91], %112 {strides = array<i32>} : memref<1x1x10x10x128xbf16, #tpu.memory_space<vmem>>, vector<1x1x1x10x128xbf16>,
      %cst_92 = arith.constant 0.000000e+00 : bf16
      %113 = vector.broadcast %cst_92 : bf16 to vector<10x128xbf16>
      %c0_93 = arith.constant 0 : index
      %c0_94 = arith.constant 0 : index
      %c9 = arith.constant 9 : index
      %c0_95 = arith.constant 0 : index
      %c0_96 = arith.constant 0 : index
      %114 = vector.load %arg8[%c0_93, %c0_94, %c9, %c0_95, %c0_96] : memref<1x1x10x10x128xbf16, #tpu.memory_space<vmem>>, vector<1x1x1x10x128xbf16>
      %115 = vector.shape_cast %114 : vector<1x1x1x10x128xbf16> to vector<10x128xbf16>
      %116 = vector.shape_cast %113 : vector<10x128xbf16> to vector<1x1x1x10x128xbf16>
      tpu.vector_store %arg8[%c0_93, %c0_94, %c9, %c0_95, %c0_96], %116 {strides = array<i32>} : memref<1x1x10x10x128xbf16, #tpu.memory_space<vmem>>, vector<1x1x1x10x128xbf16>,
      %cst_97 = arith.constant 0.000000e+00 : bf16
      %117 = vector.broadcast %cst_97 : bf16 to vector<8x1x128xbf16>
      %c0_98 = arith.constant 0 : index
      %c0_99 = arith.constant 0 : index
      %c1_100 = arith.constant 1 : index
      %c0_101 = arith.constant 0 : index
      %c0_102 = arith.constant 0 : index
      %118 = vector.load %arg8[%c0_98, %c0_99, %c1_100, %c0_101, %c0_102] : memref<1x1x10x10x128xbf16, #tpu.memory_space<vmem>>, vector<1x1x8x1x128xbf16>
      %119 = vector.shape_cast %118 : vector<1x1x8x1x128xbf16> to vector<8x1x128xbf16>
      %120 = vector.shape_cast %117 : vector<8x1x128xbf16> to vector<1x1x8x1x128xbf16>
      tpu.vector_store %arg8[%c0_98, %c0_99, %c1_100, %c0_101, %c0_102], %120 {strides = array<i32>} : memref<1x1x10x10x128xbf16, #tpu.memory_space<vmem>>, vector<1x1x8x1x128xbf16>,
      %cst_103 = arith.constant 0.000000e+00 : bf16
      %121 = vector.broadcast %cst_103 : bf16 to vector<8x1x128xbf16>
      %c0_104 = arith.constant 0 : index
      %c0_105 = arith.constant 0 : index
      %c1_106 = arith.constant 1 : index
      %c9_107 = arith.constant 9 : index
      %c0_108 = arith.constant 0 : index
      %122 = vector.load %arg8[%c0_104, %c0_105, %c1_106, %c9_107, %c0_108] : memref<1x1x10x10x128xbf16, #tpu.memory_space<vmem>>, vector<1x1x8x1x128xbf16>
      %123 = vector.shape_cast %122 : vector<1x1x8x1x128xbf16> to vector<8x1x128xbf16>
      %124 = vector.shape_cast %121 : vector<8x1x128xbf16> to vector<1x1x8x1x128xbf16>
      tpu.vector_store %arg8[%c0_104, %c0_105, %c1_106, %c9_107, %c0_108], %124 {strides = array<i32>} : memref<1x1x10x10x128xbf16, #tpu.memory_space<vmem>>, vector<1x1x8x1x128xbf16>,
      %c0_109 = arith.constant 0 : index
      %c0_110 = arith.constant 0 : index
      %c1_111 = arith.constant 1 : index
      %c1_112 = arith.constant 1 : index
      %c0_113 = arith.constant 0 : index
      %125 = vector.load %arg8[%c0_109, %c0_110, %c1_111, %c1_112, %c0_113] : memref<1x1x10x10x128xbf16, #tpu.memory_space<vmem>>, vector<1x1x8x8x128xbf16>
      %126 = vector.shape_cast %125 : vector<1x1x8x8x128xbf16> to vector<8x8x128xbf16>
      %127 = vector.shape_cast %108 : vector<8x8x128xbf16> to vector<1x1x8x8x128xbf16>
      tpu.vector_store %arg8[%c0_109, %c0_110, %c1_111, %c1_112, %c0_113], %127 {strides = array<i32>} : memref<1x1x10x10x128xbf16, #tpu.memory_space<vmem>>, vector<1x1x8x8x128xbf16>,
    } else {
    }
    return
  }
  func.func @transform_0(%arg0: i32, %arg1: i32) -> (i32, i32, i32, i32, i32) {
    %c1_i32 = arith.constant 1 : i32
    %0 = arith.subi %arg1, %c1_i32 : i32
    %c0_i32 = arith.constant 0 : i32
    %1 = arith.maxsi %0, %c0_i32 : i32
    %c0_i32_0 = arith.constant 0 : i32
    %c0_i32_1 = arith.constant 0 : i32
    %c0_i32_2 = arith.constant 0 : i32
    %c0_i32_3 = arith.constant 0 : i32
    return %arg0, %1, %c0_i32_0, %c0_i32_1, %c0_i32_2 : i32, i32, i32, i32, i32
  }
  func.func @transform_1(%arg0: i32, %arg1: i32) -> (i32, i32, i32, i32, i32) {
    %c0_i32 = arith.constant 0 : i32
    %c0_i32_0 = arith.constant 0 : i32
    %c0_i32_1 = arith.constant 0 : i32
    %c0_i32_2 = arith.constant 0 : i32
    return %arg0, %arg1, %c0_i32, %c0_i32_0, %c0_i32_1 : i32, i32, i32, i32, i32
  }
  func.func @transform_2(%arg0: i32, %arg1: i32) -> (i32, i32, i32, i32, i32) {
    %c1_i32 = arith.constant 1 : i32
    %0 = arith.addi %arg1, %c1_i32 : i32
    %c9_i32 = arith.constant 9 : i32
    %1 = arith.minsi %0, %c9_i32 : i32
    %c0_i32 = arith.constant 0 : i32
    %c0_i32_0 = arith.constant 0 : i32
    %c0_i32_1 = arith.constant 0 : i32
    %c0_i32_2 = arith.constant 0 : i32
    return %arg0, %1, %c0_i32, %c0_i32_0, %c0_i32_1 : i32, i32, i32, i32, i32
  }
  func.func @transform_3(%arg0: i32, %arg1: i32) -> (i32, i32, i32) {
    %c0_i32 = arith.constant 0 : i32
    %c0_i32_0 = arith.constant 0 : i32
    %c0_i32_1 = arith.constant 0 : i32
    %c0_i32_2 = arith.constant 0 : i32
    return %c0_i32, %c0_i32_0, %c0_i32_1 : i32, i32, i32
  }
  func.func @transform_4(%arg0: i32, %arg1: i32) -> (i32, i32) {
    %c0_i32 = arith.constant 0 : i32
    %c0_i32_0 = arith.constant 0 : i32
    %c0_i32_1 = arith.constant 0 : i32
    return %c0_i32, %c0_i32_0 : i32, i32
  }
  func.func @transform_5(%arg0: i32, %arg1: i32) -> (i32, i32) {
    %c0_i32 = arith.constant 0 : i32
    %c0_i32_0 = arith.constant 0 : i32
    %c0_i32_1 = arith.constant 0 : i32
    return %c0_i32, %c0_i32_0 : i32, i32
  }
  func.func @transform_6(%arg0: i32, %arg1: i32) -> (i32, i32, i32, i32, i32) {
    %c0_i32 = arith.constant 0 : i32
    %c0_i32_0 = arith.constant 0 : i32
    %c0_i32_1 = arith.constant 0 : i32
    %c0_i32_2 = arith.constant 0 : i32
    return %arg0, %arg1, %c0_i32, %c0_i32_0, %c0_i32_1 : i32, i32, i32, i32, i32
  }
}

module attributes {stable_mosaic.version = 11 : i64} {
  func.func @_conv2_kernel(%arg0: i32, %arg1: i32, %arg2: memref<1x1x10x10x128xbf16, #tpu.memory_space<vmem>>, %arg3: memref<1x1x10x10x128xbf16, #tpu.memory_space<vmem>>, %arg4: memref<1x1x10x10x128xbf16, #tpu.memory_space<vmem>>, %arg5: memref<1x1x8x8x128xbf16, #tpu.memory_space<vmem>>, %arg6: memref<9x384x128xbf16, #tpu.memory_space<vmem>>, %arg7: memref<1x128xf32, #tpu.memory_space<vmem>>, %arg8: memref<1x128xf32, #tpu.memory_space<vmem>>, %arg9: memref<1x1x8x8x128xf32, #tpu.memory_space<vmem>>, %arg10: memref<64x128xf32, #tpu.memory_space<vmem>>) attributes {dimension_semantics = [#tpu.dimension_semantics<parallel>, #tpu.dimension_semantics<parallel>], iteration_bounds = array<i64: 2, 8>, scalar_prefetch = 0 : i64, scratch_operands = 1 : i64, tpu.core_type = #tpu.core_type<tc>, window_params = [{transform_indices = @transform_0, window_bounds = array<i64: 1, 1, 10, 10, 128>}, {transform_indices = @transform_1, window_bounds = array<i64: 1, 1, 10, 10, 128>}, {transform_indices = @transform_2, window_bounds = array<i64: 1, 1, 10, 10, 128>}, {transform_indices = @transform_3, window_bounds = array<i64: 1, 1, 8, 8, 128>}, {pipeline_mode = #tpu.pipeline_mode<synchronous>, transform_indices = @transform_4, window_bounds = array<i64: 9, 384, 128>}, {pipeline_mode = #tpu.pipeline_mode<synchronous>, transform_indices = @transform_5, window_bounds = array<i64: 1, 128>}, {pipeline_mode = #tpu.pipeline_mode<synchronous>, transform_indices = @transform_6, window_bounds = array<i64: 1, 128>}, {transform_indices = @transform_7, window_bounds = array<i64: 1, 1, 8, 8, 128>}]} {
    %c0 = arith.constant 0 : index
    %c0_0 = arith.constant 0 : index
    %c0_1 = arith.constant 0 : index
    %c0_2 = arith.constant 0 : index
    %c0_3 = arith.constant 0 : index
    %0 = vector.load %arg2[%c0, %c0_0, %c0_1, %c0_2, %c0_3] : memref<1x1x10x10x128xbf16, #tpu.memory_space<vmem>>, vector<1x1x10x10x128xbf16>
    %1 = vector.shape_cast %0 : vector<1x1x10x10x128xbf16> to vector<10x10x128xbf16>
    %c0_4 = arith.constant 0 : index
    %c0_5 = arith.constant 0 : index
    %c0_6 = arith.constant 0 : index
    %c0_7 = arith.constant 0 : index
    %c0_8 = arith.constant 0 : index
    %2 = vector.load %arg3[%c0_4, %c0_5, %c0_6, %c0_7, %c0_8] : memref<1x1x10x10x128xbf16, #tpu.memory_space<vmem>>, vector<1x1x10x10x128xbf16>
    %3 = vector.shape_cast %2 : vector<1x1x10x10x128xbf16> to vector<10x10x128xbf16>
    %c0_9 = arith.constant 0 : index
    %c0_10 = arith.constant 0 : index
    %c0_11 = arith.constant 0 : index
    %c0_12 = arith.constant 0 : index
    %c0_13 = arith.constant 0 : index
    %4 = vector.load %arg4[%c0_9, %c0_10, %c0_11, %c0_12, %c0_13] : memref<1x1x10x10x128xbf16, #tpu.memory_space<vmem>>, vector<1x1x10x10x128xbf16>
    %5 = vector.shape_cast %4 : vector<1x1x10x10x128xbf16> to vector<10x10x128xbf16>
    %6 = vector.extract_strided_slice %1 {offsets = [0, 0, 0], sizes = [10, 8, 128], strides = [1, 1, 1]} : vector<10x10x128xbf16> to vector<10x8x128xbf16>
    %7 = vector.extract_strided_slice %1 {offsets = [0, 1, 0], sizes = [10, 8, 128], strides = [1, 1, 1]} : vector<10x10x128xbf16> to vector<10x8x128xbf16>
    %8 = vector.extract_strided_slice %1 {offsets = [0, 2, 0], sizes = [10, 8, 128], strides = [1, 1, 1]} : vector<10x10x128xbf16> to vector<10x8x128xbf16>
    %9 = tpu.concatenate %6, %7, %8 in 2 : vector<10x8x128xbf16>, vector<10x8x128xbf16>, vector<10x8x128xbf16> -> vector<10x8x384xbf16>
    %10 = vector.extract_strided_slice %9 {offsets = [0, 0, 0], sizes = [8, 8, 384], strides = [1, 1, 1]} : vector<10x8x384xbf16> to vector<8x8x384xbf16>
    %11 = vector.shape_cast %10 : vector<8x8x384xbf16> to vector<64x384xbf16>
    %c0_14 = arith.constant 0 : index
    %c0_15 = arith.constant 0 : index
    %c0_16 = arith.constant 0 : index
    %12 = vector.load %arg6[%c0_14, %c0_15, %c0_16] : memref<9x384x128xbf16, #tpu.memory_space<vmem>>, vector<1x384x128xbf16>
    %13 = vector.shape_cast %12 : vector<1x384x128xbf16> to vector<384x128xbf16>
    %cst = arith.constant dense<0.000000e+00> : vector<64x128xf32>
    %14 = tpu.matmul %11, %13, %cst {dimension_numbers = #tpu.dot_dimension_numbers<[1], [0], [0], [1], [0, 0, 1, 1], [], []>} : vector<64x384xbf16>, vector<384x128xbf16>, vector<64x128xf32> -> vector<64x128xf32>
    %c0_17 = arith.constant 0 : index
    %c0_18 = arith.constant 0 : index
    %15 = vector.load %arg10[%c0_17, %c0_18] : memref<64x128xf32, #tpu.memory_space<vmem>>, vector<64x128xf32>
    tpu.vector_store %arg10[%c0_17, %c0_18], %14 {strides = array<i32>} : memref<64x128xf32, #tpu.memory_space<vmem>>, vector<64x128xf32>,
    %16 = vector.extract_strided_slice %9 {offsets = [1, 0, 0], sizes = [8, 8, 384], strides = [1, 1, 1]} : vector<10x8x384xbf16> to vector<8x8x384xbf16>
    %17 = vector.shape_cast %16 : vector<8x8x384xbf16> to vector<64x384xbf16>
    %c1 = arith.constant 1 : index
    %c0_19 = arith.constant 0 : index
    %c0_20 = arith.constant 0 : index
    %18 = vector.load %arg6[%c1, %c0_19, %c0_20] : memref<9x384x128xbf16, #tpu.memory_space<vmem>>, vector<1x384x128xbf16>
    %19 = vector.shape_cast %18 : vector<1x384x128xbf16> to vector<384x128xbf16>
    %cst_21 = arith.constant dense<0.000000e+00> : vector<64x128xf32>
    %20 = tpu.matmul %17, %19, %cst_21 {dimension_numbers = #tpu.dot_dimension_numbers<[1], [0], [0], [1], [0, 0, 1, 1], [], []>} : vector<64x384xbf16>, vector<384x128xbf16>, vector<64x128xf32> -> vector<64x128xf32>
    %c0_22 = arith.constant 0 : index
    %c0_23 = arith.constant 0 : index
    %21 = vector.load %arg10[%c0_22, %c0_23] : memref<64x128xf32, #tpu.memory_space<vmem>>, vector<64x128xf32>
    %22 = arith.addf %21, %20 : vector<64x128xf32>
    %c0_24 = arith.constant 0 : index
    %c0_25 = arith.constant 0 : index
    %23 = vector.load %arg10[%c0_24, %c0_25] : memref<64x128xf32, #tpu.memory_space<vmem>>, vector<64x128xf32>
    tpu.vector_store %arg10[%c0_24, %c0_25], %22 {strides = array<i32>} : memref<64x128xf32, #tpu.memory_space<vmem>>, vector<64x128xf32>,
    %24 = vector.extract_strided_slice %9 {offsets = [2, 0, 0], sizes = [8, 8, 384], strides = [1, 1, 1]} : vector<10x8x384xbf16> to vector<8x8x384xbf16>
    %25 = vector.shape_cast %24 : vector<8x8x384xbf16> to vector<64x384xbf16>
    %c2 = arith.constant 2 : index
    %c0_26 = arith.constant 0 : index
    %c0_27 = arith.constant 0 : index
    %26 = vector.load %arg6[%c2, %c0_26, %c0_27] : memref<9x384x128xbf16, #tpu.memory_space<vmem>>, vector<1x384x128xbf16>
    %27 = vector.shape_cast %26 : vector<1x384x128xbf16> to vector<384x128xbf16>
    %cst_28 = arith.constant dense<0.000000e+00> : vector<64x128xf32>
    %28 = tpu.matmul %25, %27, %cst_28 {dimension_numbers = #tpu.dot_dimension_numbers<[1], [0], [0], [1], [0, 0, 1, 1], [], []>} : vector<64x384xbf16>, vector<384x128xbf16>, vector<64x128xf32> -> vector<64x128xf32>
    %c0_29 = arith.constant 0 : index
    %c0_30 = arith.constant 0 : index
    %29 = vector.load %arg10[%c0_29, %c0_30] : memref<64x128xf32, #tpu.memory_space<vmem>>, vector<64x128xf32>
    %30 = arith.addf %29, %28 : vector<64x128xf32>
    %c0_31 = arith.constant 0 : index
    %c0_32 = arith.constant 0 : index
    %31 = vector.load %arg10[%c0_31, %c0_32] : memref<64x128xf32, #tpu.memory_space<vmem>>, vector<64x128xf32>
    tpu.vector_store %arg10[%c0_31, %c0_32], %30 {strides = array<i32>} : memref<64x128xf32, #tpu.memory_space<vmem>>, vector<64x128xf32>,
    %32 = vector.extract_strided_slice %3 {offsets = [0, 0, 0], sizes = [10, 8, 128], strides = [1, 1, 1]} : vector<10x10x128xbf16> to vector<10x8x128xbf16>
    %33 = vector.extract_strided_slice %3 {offsets = [0, 1, 0], sizes = [10, 8, 128], strides = [1, 1, 1]} : vector<10x10x128xbf16> to vector<10x8x128xbf16>
    %34 = vector.extract_strided_slice %3 {offsets = [0, 2, 0], sizes = [10, 8, 128], strides = [1, 1, 1]} : vector<10x10x128xbf16> to vector<10x8x128xbf16>
    %35 = tpu.concatenate %32, %33, %34 in 2 : vector<10x8x128xbf16>, vector<10x8x128xbf16>, vector<10x8x128xbf16> -> vector<10x8x384xbf16>
    %36 = vector.extract_strided_slice %35 {offsets = [0, 0, 0], sizes = [8, 8, 384], strides = [1, 1, 1]} : vector<10x8x384xbf16> to vector<8x8x384xbf16>
    %37 = vector.shape_cast %36 : vector<8x8x384xbf16> to vector<64x384xbf16>
    %c3 = arith.constant 3 : index
    %c0_33 = arith.constant 0 : index
    %c0_34 = arith.constant 0 : index
    %38 = vector.load %arg6[%c3, %c0_33, %c0_34] : memref<9x384x128xbf16, #tpu.memory_space<vmem>>, vector<1x384x128xbf16>
    %39 = vector.shape_cast %38 : vector<1x384x128xbf16> to vector<384x128xbf16>
    %cst_35 = arith.constant dense<0.000000e+00> : vector<64x128xf32>
    %40 = tpu.matmul %37, %39, %cst_35 {dimension_numbers = #tpu.dot_dimension_numbers<[1], [0], [0], [1], [0, 0, 1, 1], [], []>} : vector<64x384xbf16>, vector<384x128xbf16>, vector<64x128xf32> -> vector<64x128xf32>
    %c0_36 = arith.constant 0 : index
    %c0_37 = arith.constant 0 : index
    %41 = vector.load %arg10[%c0_36, %c0_37] : memref<64x128xf32, #tpu.memory_space<vmem>>, vector<64x128xf32>
    %42 = arith.addf %41, %40 : vector<64x128xf32>
    %c0_38 = arith.constant 0 : index
    %c0_39 = arith.constant 0 : index
    %43 = vector.load %arg10[%c0_38, %c0_39] : memref<64x128xf32, #tpu.memory_space<vmem>>, vector<64x128xf32>
    tpu.vector_store %arg10[%c0_38, %c0_39], %42 {strides = array<i32>} : memref<64x128xf32, #tpu.memory_space<vmem>>, vector<64x128xf32>,
    %44 = vector.extract_strided_slice %35 {offsets = [1, 0, 0], sizes = [8, 8, 384], strides = [1, 1, 1]} : vector<10x8x384xbf16> to vector<8x8x384xbf16>
    %45 = vector.shape_cast %44 : vector<8x8x384xbf16> to vector<64x384xbf16>
    %c4 = arith.constant 4 : index
    %c0_40 = arith.constant 0 : index
    %c0_41 = arith.constant 0 : index
    %46 = vector.load %arg6[%c4, %c0_40, %c0_41] : memref<9x384x128xbf16, #tpu.memory_space<vmem>>, vector<1x384x128xbf16>
    %47 = vector.shape_cast %46 : vector<1x384x128xbf16> to vector<384x128xbf16>
    %cst_42 = arith.constant dense<0.000000e+00> : vector<64x128xf32>
    %48 = tpu.matmul %45, %47, %cst_42 {dimension_numbers = #tpu.dot_dimension_numbers<[1], [0], [0], [1], [0, 0, 1, 1], [], []>} : vector<64x384xbf16>, vector<384x128xbf16>, vector<64x128xf32> -> vector<64x128xf32>
    %c0_43 = arith.constant 0 : index
    %c0_44 = arith.constant 0 : index
    %49 = vector.load %arg10[%c0_43, %c0_44] : memref<64x128xf32, #tpu.memory_space<vmem>>, vector<64x128xf32>
    %50 = arith.addf %49, %48 : vector<64x128xf32>
    %c0_45 = arith.constant 0 : index
    %c0_46 = arith.constant 0 : index
    %51 = vector.load %arg10[%c0_45, %c0_46] : memref<64x128xf32, #tpu.memory_space<vmem>>, vector<64x128xf32>
    tpu.vector_store %arg10[%c0_45, %c0_46], %50 {strides = array<i32>} : memref<64x128xf32, #tpu.memory_space<vmem>>, vector<64x128xf32>,
    %52 = vector.extract_strided_slice %35 {offsets = [2, 0, 0], sizes = [8, 8, 384], strides = [1, 1, 1]} : vector<10x8x384xbf16> to vector<8x8x384xbf16>
    %53 = vector.shape_cast %52 : vector<8x8x384xbf16> to vector<64x384xbf16>
    %c5 = arith.constant 5 : index
    %c0_47 = arith.constant 0 : index
    %c0_48 = arith.constant 0 : index
    %54 = vector.load %arg6[%c5, %c0_47, %c0_48] : memref<9x384x128xbf16, #tpu.memory_space<vmem>>, vector<1x384x128xbf16>
    %55 = vector.shape_cast %54 : vector<1x384x128xbf16> to vector<384x128xbf16>
    %cst_49 = arith.constant dense<0.000000e+00> : vector<64x128xf32>
    %56 = tpu.matmul %53, %55, %cst_49 {dimension_numbers = #tpu.dot_dimension_numbers<[1], [0], [0], [1], [0, 0, 1, 1], [], []>} : vector<64x384xbf16>, vector<384x128xbf16>, vector<64x128xf32> -> vector<64x128xf32>
    %c0_50 = arith.constant 0 : index
    %c0_51 = arith.constant 0 : index
    %57 = vector.load %arg10[%c0_50, %c0_51] : memref<64x128xf32, #tpu.memory_space<vmem>>, vector<64x128xf32>
    %58 = arith.addf %57, %56 : vector<64x128xf32>
    %c0_52 = arith.constant 0 : index
    %c0_53 = arith.constant 0 : index
    %59 = vector.load %arg10[%c0_52, %c0_53] : memref<64x128xf32, #tpu.memory_space<vmem>>, vector<64x128xf32>
    tpu.vector_store %arg10[%c0_52, %c0_53], %58 {strides = array<i32>} : memref<64x128xf32, #tpu.memory_space<vmem>>, vector<64x128xf32>,
    %60 = vector.extract_strided_slice %5 {offsets = [0, 0, 0], sizes = [10, 8, 128], strides = [1, 1, 1]} : vector<10x10x128xbf16> to vector<10x8x128xbf16>
    %61 = vector.extract_strided_slice %5 {offsets = [0, 1, 0], sizes = [10, 8, 128], strides = [1, 1, 1]} : vector<10x10x128xbf16> to vector<10x8x128xbf16>
    %62 = vector.extract_strided_slice %5 {offsets = [0, 2, 0], sizes = [10, 8, 128], strides = [1, 1, 1]} : vector<10x10x128xbf16> to vector<10x8x128xbf16>
    %63 = tpu.concatenate %60, %61, %62 in 2 : vector<10x8x128xbf16>, vector<10x8x128xbf16>, vector<10x8x128xbf16> -> vector<10x8x384xbf16>
    %64 = vector.extract_strided_slice %63 {offsets = [0, 0, 0], sizes = [8, 8, 384], strides = [1, 1, 1]} : vector<10x8x384xbf16> to vector<8x8x384xbf16>
    %65 = vector.shape_cast %64 : vector<8x8x384xbf16> to vector<64x384xbf16>
    %c6 = arith.constant 6 : index
    %c0_54 = arith.constant 0 : index
    %c0_55 = arith.constant 0 : index
    %66 = vector.load %arg6[%c6, %c0_54, %c0_55] : memref<9x384x128xbf16, #tpu.memory_space<vmem>>, vector<1x384x128xbf16>
    %67 = vector.shape_cast %66 : vector<1x384x128xbf16> to vector<384x128xbf16>
    %cst_56 = arith.constant dense<0.000000e+00> : vector<64x128xf32>
    %68 = tpu.matmul %65, %67, %cst_56 {dimension_numbers = #tpu.dot_dimension_numbers<[1], [0], [0], [1], [0, 0, 1, 1], [], []>} : vector<64x384xbf16>, vector<384x128xbf16>, vector<64x128xf32> -> vector<64x128xf32>
    %c0_57 = arith.constant 0 : index
    %c0_58 = arith.constant 0 : index
    %69 = vector.load %arg10[%c0_57, %c0_58] : memref<64x128xf32, #tpu.memory_space<vmem>>, vector<64x128xf32>
    %70 = arith.addf %69, %68 : vector<64x128xf32>
    %c0_59 = arith.constant 0 : index
    %c0_60 = arith.constant 0 : index
    %71 = vector.load %arg10[%c0_59, %c0_60] : memref<64x128xf32, #tpu.memory_space<vmem>>, vector<64x128xf32>
    tpu.vector_store %arg10[%c0_59, %c0_60], %70 {strides = array<i32>} : memref<64x128xf32, #tpu.memory_space<vmem>>, vector<64x128xf32>,
    %72 = vector.extract_strided_slice %63 {offsets = [1, 0, 0], sizes = [8, 8, 384], strides = [1, 1, 1]} : vector<10x8x384xbf16> to vector<8x8x384xbf16>
    %73 = vector.shape_cast %72 : vector<8x8x384xbf16> to vector<64x384xbf16>
    %c7 = arith.constant 7 : index
    %c0_61 = arith.constant 0 : index
    %c0_62 = arith.constant 0 : index
    %74 = vector.load %arg6[%c7, %c0_61, %c0_62] : memref<9x384x128xbf16, #tpu.memory_space<vmem>>, vector<1x384x128xbf16>
    %75 = vector.shape_cast %74 : vector<1x384x128xbf16> to vector<384x128xbf16>
    %cst_63 = arith.constant dense<0.000000e+00> : vector<64x128xf32>
    %76 = tpu.matmul %73, %75, %cst_63 {dimension_numbers = #tpu.dot_dimension_numbers<[1], [0], [0], [1], [0, 0, 1, 1], [], []>} : vector<64x384xbf16>, vector<384x128xbf16>, vector<64x128xf32> -> vector<64x128xf32>
    %c0_64 = arith.constant 0 : index
    %c0_65 = arith.constant 0 : index
    %77 = vector.load %arg10[%c0_64, %c0_65] : memref<64x128xf32, #tpu.memory_space<vmem>>, vector<64x128xf32>
    %78 = arith.addf %77, %76 : vector<64x128xf32>
    %c0_66 = arith.constant 0 : index
    %c0_67 = arith.constant 0 : index
    %79 = vector.load %arg10[%c0_66, %c0_67] : memref<64x128xf32, #tpu.memory_space<vmem>>, vector<64x128xf32>
    tpu.vector_store %arg10[%c0_66, %c0_67], %78 {strides = array<i32>} : memref<64x128xf32, #tpu.memory_space<vmem>>, vector<64x128xf32>,
    %80 = vector.extract_strided_slice %63 {offsets = [2, 0, 0], sizes = [8, 8, 384], strides = [1, 1, 1]} : vector<10x8x384xbf16> to vector<8x8x384xbf16>
    %81 = vector.shape_cast %80 : vector<8x8x384xbf16> to vector<64x384xbf16>
    %c8 = arith.constant 8 : index
    %c0_68 = arith.constant 0 : index
    %c0_69 = arith.constant 0 : index
    %82 = vector.load %arg6[%c8, %c0_68, %c0_69] : memref<9x384x128xbf16, #tpu.memory_space<vmem>>, vector<1x384x128xbf16>
    %83 = vector.shape_cast %82 : vector<1x384x128xbf16> to vector<384x128xbf16>
    %cst_70 = arith.constant dense<0.000000e+00> : vector<64x128xf32>
    %84 = tpu.matmul %81, %83, %cst_70 {dimension_numbers = #tpu.dot_dimension_numbers<[1], [0], [0], [1], [0, 0, 1, 1], [], []>} : vector<64x384xbf16>, vector<384x128xbf16>, vector<64x128xf32> -> vector<64x128xf32>
    %c0_71 = arith.constant 0 : index
    %c0_72 = arith.constant 0 : index
    %85 = vector.load %arg10[%c0_71, %c0_72] : memref<64x128xf32, #tpu.memory_space<vmem>>, vector<64x128xf32>
    %86 = arith.addf %85, %84 : vector<64x128xf32>
    %c0_73 = arith.constant 0 : index
    %c0_74 = arith.constant 0 : index
    %87 = vector.load %arg10[%c0_73, %c0_74] : memref<64x128xf32, #tpu.memory_space<vmem>>, vector<64x128xf32>
    tpu.vector_store %arg10[%c0_73, %c0_74], %86 {strides = array<i32>} : memref<64x128xf32, #tpu.memory_space<vmem>>, vector<64x128xf32>,
    %c0_75 = arith.constant 0 : index
    %c0_76 = arith.constant 0 : index
    %c0_77 = arith.constant 0 : index
    %c0_78 = arith.constant 0 : index
    %c0_79 = arith.constant 0 : index
    %88 = vector.load %arg5[%c0_75, %c0_76, %c0_77, %c0_78, %c0_79] : memref<1x1x8x8x128xbf16, #tpu.memory_space<vmem>>, vector<1x1x8x8x128xbf16>
    %89 = vector.shape_cast %88 : vector<1x1x8x8x128xbf16> to vector<8x8x128xbf16>
    %90 = arith.extf %89 : vector<8x8x128xbf16> to vector<8x8x128xf32>
    %91 = vector.shape_cast %90 : vector<8x8x128xf32> to vector<64x128xf32>
    %c0_80 = arith.constant 0 : index
    %c0_81 = arith.constant 0 : index
    %92 = vector.load %arg10[%c0_80, %c0_81] : memref<64x128xf32, #tpu.memory_space<vmem>>, vector<64x128xf32>
    %c0_82 = arith.constant 0 : index
    %c0_83 = arith.constant 0 : index
    %93 = vector.load %arg7[%c0_82, %c0_83] : memref<1x128xf32, #tpu.memory_space<vmem>>, vector<1x128xf32>
    %94 = vector.broadcast %93 : vector<1x128xf32> to vector<64x128xf32>
    %95 = arith.mulf %92, %94 : vector<64x128xf32>
    %c0_84 = arith.constant 0 : index
    %c0_85 = arith.constant 0 : index
    %96 = vector.load %arg8[%c0_84, %c0_85] : memref<1x128xf32, #tpu.memory_space<vmem>>, vector<1x128xf32>
    %97 = vector.broadcast %96 : vector<1x128xf32> to vector<64x128xf32>
    %98 = arith.addf %95, %97 : vector<64x128xf32>
    %99 = arith.addf %98, %91 : vector<64x128xf32>
    %cst_86 = arith.constant 0.000000e+00 : f32
    %100 = vector.broadcast %cst_86 : f32 to vector<64x128xf32>
    %101 = arith.maximumf %99, %100 : vector<64x128xf32>
    %102 = vector.shape_cast %101 : vector<64x128xf32> to vector<8x8x128xf32>
    %c0_87 = arith.constant 0 : index
    %c0_88 = arith.constant 0 : index
    %c0_89 = arith.constant 0 : index
    %c0_90 = arith.constant 0 : index
    %c0_91 = arith.constant 0 : index
    %103 = vector.load %arg9[%c0_87, %c0_88, %c0_89, %c0_90, %c0_91] : memref<1x1x8x8x128xf32, #tpu.memory_space<vmem>>, vector<1x1x8x8x128xf32>
    %104 = vector.shape_cast %103 : vector<1x1x8x8x128xf32> to vector<8x8x128xf32>
    %105 = vector.shape_cast %102 : vector<8x8x128xf32> to vector<1x1x8x8x128xf32>
    tpu.vector_store %arg9[%c0_87, %c0_88, %c0_89, %c0_90, %c0_91], %105 {strides = array<i32>} : memref<1x1x8x8x128xf32, #tpu.memory_space<vmem>>, vector<1x1x8x8x128xf32>,
    return
  }
  func.func @transform_0(%arg0: i32, %arg1: i32) -> (i32, i32, i32, i32, i32) {
    %c0_i32 = arith.constant 0 : i32
    %c0_i32_0 = arith.constant 0 : i32
    %c0_i32_1 = arith.constant 0 : i32
    %c0_i32_2 = arith.constant 0 : i32
    return %arg0, %arg1, %c0_i32, %c0_i32_0, %c0_i32_1 : i32, i32, i32, i32, i32
  }
  func.func @transform_1(%arg0: i32, %arg1: i32) -> (i32, i32, i32, i32, i32) {
    %c1_i32 = arith.constant 1 : i32
    %0 = arith.addi %arg1, %c1_i32 : i32
    %c0_i32 = arith.constant 0 : i32
    %c0_i32_0 = arith.constant 0 : i32
    %c0_i32_1 = arith.constant 0 : i32
    %c0_i32_2 = arith.constant 0 : i32
    return %arg0, %0, %c0_i32, %c0_i32_0, %c0_i32_1 : i32, i32, i32, i32, i32
  }
  func.func @transform_2(%arg0: i32, %arg1: i32) -> (i32, i32, i32, i32, i32) {
    %c2_i32 = arith.constant 2 : i32
    %0 = arith.addi %arg1, %c2_i32 : i32
    %c0_i32 = arith.constant 0 : i32
    %c0_i32_0 = arith.constant 0 : i32
    %c0_i32_1 = arith.constant 0 : i32
    %c0_i32_2 = arith.constant 0 : i32
    return %arg0, %0, %c0_i32, %c0_i32_0, %c0_i32_1 : i32, i32, i32, i32, i32
  }
  func.func @transform_3(%arg0: i32, %arg1: i32) -> (i32, i32, i32, i32, i32) {
    %c0_i32 = arith.constant 0 : i32
    %c0_i32_0 = arith.constant 0 : i32
    %c0_i32_1 = arith.constant 0 : i32
    %c0_i32_2 = arith.constant 0 : i32
    return %arg0, %arg1, %c0_i32, %c0_i32_0, %c0_i32_1 : i32, i32, i32, i32, i32
  }
  func.func @transform_4(%arg0: i32, %arg1: i32) -> (i32, i32, i32) {
    %c0_i32 = arith.constant 0 : i32
    %c0_i32_0 = arith.constant 0 : i32
    %c0_i32_1 = arith.constant 0 : i32
    %c0_i32_2 = arith.constant 0 : i32
    return %c0_i32, %c0_i32_0, %c0_i32_1 : i32, i32, i32
  }
  func.func @transform_5(%arg0: i32, %arg1: i32) -> (i32, i32) {
    %c0_i32 = arith.constant 0 : i32
    %c0_i32_0 = arith.constant 0 : i32
    %c0_i32_1 = arith.constant 0 : i32
    return %c0_i32, %c0_i32_0 : i32, i32
  }
  func.func @transform_6(%arg0: i32, %arg1: i32) -> (i32, i32) {
    %c0_i32 = arith.constant 0 : i32
    %c0_i32_0 = arith.constant 0 : i32
    %c0_i32_1 = arith.constant 0 : i32
    return %c0_i32, %c0_i32_0 : i32, i32
  }
  func.func @transform_7(%arg0: i32, %arg1: i32) -> (i32, i32, i32, i32, i32) {
    %c0_i32 = arith.constant 0 : i32
    %c0_i32_0 = arith.constant 0 : i32
    %c0_i32_1 = arith.constant 0 : i32
    %c0_i32_2 = arith.constant 0 : i32
    return %arg0, %arg1, %c0_i32, %c0_i32_0, %c0_i32_1 : i32, i32, i32, i32, i32
  }
}

</mosaic_0001>

<bundles_post_ra>
// kernel: basic_block_forward.3
= control target key start
LH: loop header
LB: loop body
LE: loop exit
PB: predicated region body
PF: predicated region fallthrough
CT: control target
= control target key end

     0   :  { %s6275_s24 = smov 0   ;;  %s6277_s25 = smov 0   ;;  %s7842_s0 = inlined_call_operand.vmem [shape: bf16[2,10,10,10,128], index: 0, kind: input, shape index: {}, may-alias: {0,1,2}]   ;;  %s7843_s1 = inlined_call_operand.vmem [shape: bf16[2,10,10,10,128], index: 1, kind: input, shape index: {}, may-alias: {0,1,2}]   ;;  %s7844_s2 = inlined_call_operand.vmem [shape: bf16[2,10,10,10,128], index: 2, kind: input, shape index: {}, may-alias: {0,1,2}]   ;;  %s7845_s3 = inlined_call_operand.vmem [shape: bf16[2,8,8,8,128], index: 3, kind: input, shape index: {}]   ;;  %s7846_s4 = inlined_call_operand.vmem [shape: bf16[9,384,128], index: 4, kind: input, shape index: {}]   ;;  %s7847_s5 = inlined_call_operand.vmem [shape: f32[1,128], index: 5, kind: input, shape index: {}]   ;;  %s7848_s6 = inlined_call_operand.vmem [shape: f32[1,128], index: 6, kind: input, shape index: {}]   ;;  %s7849_s7 = inlined_call_operand.vmem [shape: f32[2,8,8,8,128], index: 7, kind: output, shape index: {}]  }
   0x1   :  { %s6279_s26 = smov 0   ;;  %s6281_s27 = smov 0  }
   0x2   :  { %s6283_s28 = smov 0  }
   0x3 LB: > { %s26_s29 = sadd.s32 1, %s6225_s26  ;;  %s29_s30 = sadd.s32 1, %s6229_s27  ;;  %s6233_s28 = sphi %s6283_s28, %s17_s28   ;;  %s6229_s27 = sphi %s6281_s27, %s7859_s27   ;;  %s6225_s26 = sphi %s6279_s26, %s7858_s26   ;;  %s6221_s25 = sphi %s6277_s25, %s7857_s25   ;;  %s6217_s24 = sphi %s6275_s24, %s7856_s24  }
   0x4   : > { %p27_p0 = scmp.ge.s32.totalorder %s26_s29, 8  ;;  %p4450_p1 = scmp.ge.s32.totalorder %s6233_s28, 1 }
   0x5   : > { %p313_p2 = scmp.lt.s32.totalorder %s6233_s28, 17 }
   0x6   : > { %s7861_s29 = smov (%p27_p0, %s26_s29), 0  ;;  %s7863_s30 = smov (!%p27_p0, %s29_s30), %s6229_s27 }
   0x7   : > { %p314_p3 = pnand %p4450_p1, %p313_p2  ;;  %p31_p4 = scmp.ge.s32.totalorder %s7863_s30, 2 }
   0x9   : > { %s7865_s30 = smov (%p31_p4, %s7863_s30), 0  ;;  %317 = sbr.rel (%p314_p3) target bundleno = 541 (0x21d), region = 48 }
   0xe   : > { %v5922_v0 = vld [vmem:[%s7846_s4 + $0x78] sm:$0xff]   ;;  %p382_p5 = scmp.lt.s32.totalorder %s6221_s25, 1  ;;  %v5925_v3 = vld [vmem:[%s7846_s4 + $0x70] sm:$0xff]   ;;  %p384_p6 = scmp.lt.s32.totalorder %s6217_s24, 9  ;;  %v5928_v6 = vld [vmem:[%s7846_s4 + $0x68] sm:$0xff]  }
   0xf   : > { %v5923_v1 = vld [vmem:[%s7846_s4 + $0x38] sm:$0xff]   ;;  %5194 = vmatprep.subr.bf16.mxu0 %v5922_v0  ;;  %v5926_v4 = vld [vmem:[%s7846_s4 + $0x30] sm:$0xff]   ;;  %v5929_v7 = vld [vmem:[%s7846_s4 + $0x28] sm:$0xff]   ;;  %s402_s12 = sadd.s32 2, %s6217_s24  ;;  %p415_p9 = scmp.lt.s32.totalorder %s6217_s24, 7 }
  0x10   : > { %v5924_v2 = vld [vmem:[%s7846_s4 + $0xb8] sm:$0xff]   ;;  %5195 = vmatpush3.bf16.msra.mxu0 %v5923_v1  ;;  %v5927_v5 = vld [vmem:[%s7846_s4 + $0xb0] sm:$0xff]   ;;  %s7867_s25 = smov (!%p382_p5, %s6221_s25), 1  ;;  %v5930_v8 = vld [vmem:[%s7846_s4 + $0xa8] sm:$0xff]   ;;  %p405_p8 = scmp.lt.s32.totalorder %s402_s12, 9 }
  0x11   : > { %5662 = vmatprep.subr.bf16.mxu1 %v5924_v2  ;;  %5196 = vmatprep.subr.bf16.mxu0 %v5925_v3  ;;  %s385_s8 = scalar_select %p384_p6, %s6217_s24, 9  ;;  %v5931_v9 = vld [vmem:[%s7846_s4 + $0x60] sm:$0xff]   ;;  %v5934_v12 = vld [vmem:[%s7846_s4 + $0x58] sm:$0xff]   ;;  %v5937_v15 = vld [vmem:[%s7846_s4 + $0x50] sm:$0xff]  }
  0x12   : > { %5663 = vmatpush3.bf16.msra.mxu1 %v5924_v2  ;;  %v5932_v10 = vld [vmem:[%s7846_s4 + $0x20] sm:$0xff]   ;;  %s6345_s15 = smul.u32 200, %s7867_s25  ;;  %v5936_v13 = vld [vmem:[%s7846_s4 + $0x98] sm:$0xff]   ;;  %v5939_v16 = vld [vmem:[%s7846_s4 + $0x90] sm:$0xff]   ;;  %s7871_s12 = smov (!%p405_p8, %s402_s12), 9 }
  0x13   : > { %5664 = vmatprep.subr.bf16.mxu1 %v5927_v5  ;;  %v5933_v11 = vld [vmem:[%s7846_s4 + $0xa0] sm:$0xff]   ;;  %s5878_s18 = smul.u32 20, %s385_s8  ;;  %v5935_v14 = vld [vmem:[%s7846_s4 + $0x18] sm:$0xff]   ;;  %v5938_v17 = vld [vmem:[%s7846_s4 + $0x10] sm:$0xff]   ;;  %s391_s8 = sadd.s32 1, %s6217_s24 }
  0x14   : > { %5197 = vmatpush3.bf16.msra.mxu0 %v5926_v4  ;;  %v5940_v18 = vld [vmem:[%s7846_s4 + $0x48] sm:$0xff]   ;;  %v5943_v21 = vld [vmem:[%s7846_s4 + $0x40] sm:$0xff]   ;;  %v5949_v36 = vld [vmem:[%s7846_s4 + $0x138] sm:$0xff]   ;;  %p394_p7 = scmp.lt.s32.totalorder %s391_s8, 9  ;;  %s5881_s16 = smul.u32 20, %s7871_s12 }
  0x15   : > { %5198 = vmatprep.subr.bf16.mxu0 %v5928_v6  ;;  %s388_s10 = sadd.s32 %s6345_s15, %s5878_s18  ;;  %v5941_v19 = vld [vmem:[%s7846_s4 + $0x8] sm:$0xff]   ;;  %v5945_v27 = vld [vmem:[%s7846_s4 + $0x80] sm:$0xff]   ;;  %v5953_v46 = vld [vmem:[%s7846_s4 + $0x178] sm:$0xff]   ;;  %s7873_s24 = smov (!%p415_p9, %s6217_s24), 7 }
  0x16   : > { %5665 = vmatpush3.bf16.msra.mxu1 %v5927_v5  ;;  %s4451_s14 = sshll.u32 %s388_s10, 2  ;;  %v5942_v20 = vld [vmem:[%s7846_s4 + $0x88] sm:$0xff]   ;;  %v5944_v29 = vld [vmem:[%s7846_s4] sm:$0xff]   ;;  %v5950_v50 = vld [vmem:[%s7846_s4 + $0xf8] sm:$0xff]   ;;  %s7869_s8 = smov (!%p394_p7, %s391_s8), 9 }
  0x17   : > { %5666 = vmatprep.subr.bf16.mxu1 %v5930_v8  ;;  %s6378_s9 = scalar_lea.vmem %s7842_s0, %s4451_s14  ;;  %v5956_v52 = vld [vmem:[%s7846_s4 + $0x170] sm:$0xff]   ;;  %v5958_v2 = vld [vmem:[%s7846_s4 + $0x128] sm:$0xff]   ;;  %s5880_s19 = smul.u32 20, %s7869_s8 }
  0x18   : > { %5199 = vmatpush3.bf16.msra.mxu0 %v5929_v7  ;;  %v432_v22 = vld [vmem:[%s6378_s9] sm:$0xf]  ;;  %v433_v23 = vld [vmem:[%s6378_s9 + $0x4] sm:$0x1]  ;;  %v6389_v24 = vld [vmem:[%s6378_s9 + $0x8] sm:$0xf]  ;;  %s409_s21 = sadd.s32 %s5881_s16, %s6345_s15 }
  0x19   : > { %5200 = vmatprep.subr.bf16.mxu0 %v5931_v9  ;;  %v435_v25 = vld [vmem:[%s6378_s9 + $0xc] sm:$0x1]  ;;  %v4460_v26 = vcombine.low %v432_v22, %v433_v23  ;;  %v6402_v33 = vld [vmem:[%s6378_s9 + $0x10] sm:$0xf]  ;;  %v437_v38 = vld [vmem:[%s6378_s9 + $0x14] sm:$0x1]  ;;  %v4470_v53 = vcombine.low %v432_v22, %v6389_v24  ;;  %s398_s8 = sadd.s32 %s5880_s19, %s6345_s15 }
  0x1a   : > { %5667 = vmatpush3.bf16.msra.mxu1 %v5930_v8  ;;  %v6396_v28 = vcombine.low %v6389_v24, %v435_v25  ;;  %v6412_v40 = vld [vmem:[%s6378_s9 + $0x18] sm:$0xf]  ;;  %v439_v41 = vld [vmem:[%s6378_s9 + $0x1c] sm:$0x1]  ;;  %v6416_v42 = vcombine.low %v6402_v33, %v437_v38  ;;  %v5954_v60 = vld [vmem:[%s7846_s4 + $0x130] sm:$0xff]   ;;  %s4453_s15 = sshll.u32 %s409_s21, 2 }
  0x1b   : > { %5668 = vmatprep.subr.bf16.mxu1 %v5933_v11  ;;  %v543_v30 = vshrl.u32 %v4460_v26, 16  ;;  %v545_v31 = vshll.u32 %v4460_v26, 16  ;;  %v612_v32 = vrot.slane %v4460_v26, 1  ;;  %v6421_v45 = vcombine.low %v6412_v40, %v439_v41  ;;  %v5955_v63 = vld [vmem:[%s7846_s4 + $0xf0] sm:$0xff]   ;;  %v5960_v3 = vld [vmem:[%s7846_s4 + $0x168] sm:$0xff]   ;;  %v5962_v23 = vld [vmem:[%s7846_s4 + $0xe0] sm:$0xff]   ;;  %s7165_s20 = scalar_lea.vmem %s7844_s2, %s4453_s15 }
  0x1c   : > { %5201 = vmatpush3.bf16.msra.mxu0 %v5932_v10  ;;  %v550_v34 = vshrl.u32 %v6396_v28, 16  ;;  %v552_v35 = vshll.u32 %v6396_v28, 16  ;;  %v613_v37 = vrot.slane %v6396_v28, 1  ;;  %v614_v48 = vrot.slane %v6416_v42, 1  ;;  %v5959_v5 = vld [vmem:[%s7846_s4 + $0xe8] sm:$0xff]   ;;  %v5968_v41 = vld [vmem:[%s7846_s4 + $0xd8] sm:$0xff]  }
  0x1d   : > { %5202 = vmatprep.subr.bf16.mxu0 %v5934_v12  ;;  %v547_v39 = vrot.slane %v545_v31, 1  ;;  %v615_v51 = vrot.slane %v6421_v45, 1  ;;  %v557_v54 = vshrl.u32 %v6416_v42, 16  ;;  %v559_v55 = vshll.u32 %v6416_v42, 16  ;;  %v6473_v6 = vld [vmem:[%s6378_s9 + $0x20] sm:$0xf] }
  0x1e   : > { %5669 = vmatpush3.bf16.msra.mxu1 %v5933_v11  ;;  %v554_v43 = vrot.slane %v552_v35, 1  ;;  %v4472_v44 = vcombine.low %v612_v32, %v613_v37  ;;  %v564_v58 = vshrl.u32 %v6421_v45, 16  ;;  %v566_v59 = vshll.u32 %v6421_v45, 16  ;;  %v441_v7 = vld [vmem:[%s6378_s9 + $0x24] sm:$0x1]  ;;  %v5976_v28 = vld [vmem:[%s7846_s4 + $0x108] sm:$0xff]  }
  0x1f   : > { %5670 = vmatprep.subr.bf16.mxu1 %v5936_v13  ;;  %v548_v47 = vor.u32 %v547_v39, %v543_v30  ;;  %v6444_v57 = vcombine.low %v614_v48, %v615_v51  ;;  %v561_v61 = vrot.slane %v559_v55, 1  ;;  %v6477_v8 = vld [vmem:[%s6378_s9 + $0x28] sm:$0xf]  ;;  %v6481_v9 = vcombine.low %v6402_v33, %v6412_v40  ;;  %v443_v10 = vld [vmem:[%s6378_s9 + $0x2c] sm:$0x1]  ;;  %v5963_v12 = vld [vmem:[%s7846_s4 + $0x160] sm:$0xff]  }
  0x20   : > { %5203 = vmatpush3.bf16.msra.mxu0 %v5935_v14  ;;  %v6427_v49 = vor.u32 %v554_v43, %v550_v34  ;;  %5678 = vmatprep.mubr.bf16.mxu1 %v4472_v44  ;;  %v568_v62 = vrot.slane %v566_v59, 1  ;;  %v6485_v11 = vcombine.low %v6473_v6, %v441_v7  ;;  %v5961_v14 = vld [vmem:[%s7846_s4 + $0x120] sm:$0xff]   ;;  %v445_v22 = vld [vmem:[%s6378_s9 + $0x34] sm:$0x1]  ;;  %v6512_v26 = vld [vmem:[%s6378_s9 + $0x38] sm:$0xf]  ;;  %v4556_v59 = vcombine.low %v613_v37, %v614_v48 }
  0x21   : > { %5204 = vmatprep.subr.bf16.mxu0 %v5937_v15  ;;  %v6455_v0 = vor.u32 %v561_v61, %v557_v54  ;;  %v5971_v34 = vld [vmem:[%s7846_s4 + $0x158] sm:$0xff]   ;;  %v5974_v44 = vld [vmem:[%s7846_s4 + $0x150] sm:$0xff]   ;;  %v5978_v37 = vld [vmem:[%s7846_s4 + $0x148] sm:$0xff]   ;;  %s4455_s13 = sshll.u32 %s7867_s25, 6 }
  0x22   : > { %5671 = vmatpush3.bf16.msra.mxu1 %v5936_v13  ;;  %v4471_v56 = vcombine.low %v548_v47, %v6427_v49  ;;  %v6457_v1 = vor.u32 %v568_v62, %v564_v58  ;;  %v6492_v13 = vcombine.low %v6477_v8, %v443_v10  ;;  %v571_v15 = vshrl.u32 %v6485_v11, 16  ;;  %v5973_v61 = vld [vmem:[%s7846_s4 + $0xd0] sm:$0xff]   ;;  %v5980_v10 = vld [vmem:[%s7846_s4 + $0xc0] sm:$0xff]  }
  0x23   : > { %5672 = vmatprep.subr.bf16.mxu1 %v5939_v16  ;;  %v4555_v7 = vcombine.low %v6427_v49, %v6455_v0  ;;  %v5986_v45 = vld [vmem:[%s7846_s4 + $0x1f0] sm:$0xff]  }
  0x24   : > { %5205 = vmatpush3.bf16.msra.mxu0 %v5938_v17  ;;  %886 = vmatprep.mubr.bf16.mxu0 %v4471_v56  ;;  %v6467_v4 = vcombine.low %v6455_v0, %v6457_v1  ;;  %v616_v17 = vrot.slane %v6485_v11, 1  ;;  %v5972_v56 = vld [vmem:[%s7846_s4 + $0x110] sm:$0xff]   ;;  %v4554_v0 = vcombine.low %v6389_v24, %v6402_v33 }
  0x25   : > { %5206 = vmatprep.subr.bf16.mxu0 %v5940_v18  ;;  %v6501_v18 = vld [vmem:[%s6378_s9 + $0x30] sm:$0xf] }
  0x26   : > { %5673 = vmatpush3.bf16.msra.mxu1 %v5939_v16  ;;  %v573_v16 = vshll.u32 %v6485_v11, 16  ;;  %v4559_v49 = vcombine.low %v615_v51, %v616_v17  ;;  %v5987_v33 = vld [vmem:[%s7846_s4 + $0x1b0] sm:$0xff]   ;;  %v5992_v11 = vld [vmem:[%s7846_s4 + $0x228] sm:$0xff]  }
  0x27   : > { %5674 = vmatprep.subr.bf16.mxu1 %v5942_v20 }
  0x28   : > { %5207 = vmatpush3.bf16.msra.mxu0 %v5941_v19  ;;  %v578_v19 = vshrl.u32 %v6492_v13, 16  ;;  %v575_v25 = vrot.slane %v573_v16, 1  ;;  %v5988_v16 = vld [vmem:[%s7846_s4 + $0x230] sm:$0xff]  }
  0x29   : > { %5208 = vmatprep.subr.bf16.mxu0 %v5943_v21  ;;  %v617_v21 = vrot.slane %v6492_v13, 1 }
  0x2a   : > { %5675 = vmatpush3.bf16.msra.mxu1 %v5942_v20  ;;  %v580_v20 = vshll.u32 %v6492_v13, 16  ;;  %v6530_v35 = vor.u32 %v575_v25, %v571_v15  ;;  %v5984_v15 = vld [vmem:[%s7846_s4 + $0x1b8] sm:$0xff]   ;;  %v5995_v25 = vld [vmem:[%s7846_s4 + $0x220] sm:$0xff]  }
  0x2b   : > { %5676 = vmatprep.subr.bf16.mxu1 %v5945_v27  ;;  %v6522_v31 = vcombine.low %v616_v17, %v617_v21  ;;  %v6645_v17 = vld [vmem:[%s6378_s9 + $0x40] sm:$0xf] }
  0x2c   : > { %5209 = vmatpush3.bf16.msra.mxu0 %v5944_v29  ;;  %v6516_v29 = vcombine.low %v6501_v18, %v445_v22  ;;  %v582_v30 = vrot.slane %v580_v20, 1  ;;  %v4558_v24 = vcombine.low %v6457_v1, %v6530_v35  ;;  %v449_v1 = vld [vmem:[%s6378_s9 + $0x44] sm:$0x1]  ;;  %v4557_v20 = vcombine.low %v6412_v40, %v6473_v6 }
  0x2d   : > { %5246 = vmatprep.subr.bf16.mxu0 %v5949_v36  ;;  %v5967_v36 = vld [vmem:[%s7846_s4 + $0x118] sm:$0xff]   ;;  %v6652_v13 = vcombine.low %v6645_v17, %v449_v1 }
  0x2e   : > { %5677 = vmatpush3.bf16.msra.mxu1 %v5945_v27  ;;  %v447_v27 = vld [vmem:[%s6378_s9 + $0x3c] sm:$0x1]  ;;  %v618_v38 = vrot.slane %v6516_v29, 1  ;;  %v6536_v39 = vor.u32 %v582_v30, %v578_v19  ;;  %v585_v47 = vshrl.u32 %v6516_v29, 16  ;;  %v5990_v19 = vld [vmem:[%s7846_s4 + $0x1e8] sm:$0xff]  }
  0x2f   : > { %5686 = vmatprep.subr.bf16.mxu1 %v5953_v46  ;;  %887 = vmatmul.mubr.bf16.vlgmr.msra.gmra.mxu0 %v4470_v53  ;;  %v6525_v32 = vcombine.low %v6512_v26, %v447_v27  ;;  %v620_v22 = vrot.slane %v6652_v13, 1  ;;  %v599_v27 = vshrl.u32 %v6652_v13, 16  ;;  %v601_v40 = vshll.u32 %v6652_v13, 16 }
  0x30   : > { %5247 = vmatpush3.bf16.msra.mxu0 %v5950_v50  ;;  %894 = vmatprep.mubr.bf16.mxu0 %v6467_v4  ;;  %v587_v50 = vshll.u32 %v6516_v29, 16  ;;  %v4562_v51 = vcombine.low %v617_v21, %v618_v38  ;;  %v5991_v21 = vld [vmem:[%s7846_s4 + $0x1a8] sm:$0xff]  }
  0x31   : > { %5679 = vmatmul.mubr.bf16.vlgmr.msra.gmra.mxu1 %v6444_v57  ;;  %5248 = vmatprep.subr.bf16.mxu0 %v5954_v60  ;;  %v619_v43 = vrot.slane %v6525_v32, 1  ;;  %v592_v54 = vshrl.u32 %v6525_v32, 16  ;;  %v594_v55 = vshll.u32 %v6525_v32, 16  ;;  %v603_v30 = vrot.slane %v601_v40, 1  ;;  %v5997_v32 = vld [vmem:[%s7846_s4 + $0x1d8] sm:$0xff]  }
  0x32   : > { %5687 = vmatpush3.bf16.msra.mxu1 %v5953_v46  ;;  %5682 = vmatprep.mubr.bf16.mxu1 %v6522_v31  ;;  %v6548_v46 = vcombine.low %v6473_v6, %v6477_v8  ;;  %v589_v58 = vrot.slane %v587_v50, 1  ;;  %v6006_v50 = vld [vmem:[%s7846_s4 + $0x188] sm:$0xff]  }
  0x33   : > { %5688 = vmatprep.subr.bf16.mxu1 %v5956_v52  ;;  %v6560_v53 = vcombine.low %v618_v38, %v619_v43  ;;  %v596_v60 = vrot.slane %v594_v55, 1  ;;  %v4565_v29 = vcombine.low %v619_v43, %v620_v22  ;;  %v4560_v38 = vcombine.low %v6477_v8, %v6501_v18  ;;  %v6001_v43 = vld [vmem:[%s7846_s4 + $0x1d0] sm:$0xff]   ;;  %v6008_v55 = vld [vmem:[%s7846_s4 + $0x1c0] sm:$0xff]  }
  0x34   : > { %5249 = vmatpush3.bf16.msra.mxu0 %v5955_v63  ;;  %v6577_v62 = vor.u32 %v589_v58, %v585_v47  ;;  %v6593_v63 = vcombine.low %v6501_v18, %v6512_v26  ;;  %v6007_v18 = vld [vmem:[%s7846_s4 + $0x208] sm:$0xff]   ;;  %v4563_v47 = vcombine.low %v6512_v26, %v6645_v17  ;;  %v6009_v26 = vld [vmem:[%s7846_s4 + $0x180] sm:$0xff]   ;;  %v6013_v58 = vld [vmem:[%s7846_s4 + $0x2f8] sm:$0xff]  }
  0x35   : > { %5250 = vmatprep.subr.bf16.mxu0 %v5958_v2  ;;  %v6579_v42 = vor.u32 %v596_v60, %v592_v54  ;;  %v5977_v2 = vld [vmem:[%s7846_s4 + $0xc8] sm:$0xff]   ;;  %v6010_v54 = vld [vmem:[%s7846_s4 + $0x200] sm:$0xff]  }
  0x36   : > { %5689 = vmatpush3.bf16.msra.mxu1 %v5956_v52  ;;  %v6554_v52 = vcombine.low %v6530_v35, %v6536_v39  ;;  %v4561_v6 = vcombine.low %v6536_v39, %v6577_v62  ;;  %v6000_v35 = vld [vmem:[%s7846_s4 + $0x218] sm:$0xff]   ;;  %v451_v60 = vld [vmem:[%s6378_s9 + $0x4c] sm:$0x1] }
  0x37   : > { %5690 = vmatprep.subr.bf16.mxu1 %v5960_v3  ;;  %895 = vmatmul.mubr.bf16.gmra.mxu0 %v6481_v9  ;;  %v6589_v48 = vcombine.low %v6577_v62, %v6579_v42  ;;  %v5998_v39 = vld [vmem:[%s7846_s4 + $0x198] sm:$0xff]  }
  0x38   : > { %5251 = vmatpush3.bf16.msra.mxu0 %v5959_v5  ;;  %902 = vmatprep.mubr.bf16.mxu0 %v6554_v52  ;;  %v5979_v5 = vld [vmem:[%s7846_s4 + $0x100] sm:$0xff]   ;;  %v6012_v62 = vld [vmem:[%s7846_s4 + $0x278] sm:$0xff]  }
  0x39   : > { %5252 = vmatprep.subr.bf16.mxu0 %v5961_v14  ;;  %5683 = vmatmul.mubr.bf16.gmra.mxu1 %v6560_v53  ;;  %v5983_v14 = vld [vmem:[%s7846_s4 + $0x1f8] sm:$0xff]  }
  0x3a   : > { %5691 = vmatpush3.bf16.msra.mxu1 %v5960_v3  ;;  %5702 = vmatprep.mubr.bf16.mxu1 %v4556_v59  ;;  %v5981_v3 = vld [vmem:[%s7846_s4 + $0x140] sm:$0xff]   ;;  %v6730_v59 = vld [vmem:[%s6378_s9 + $0x48] sm:$0xf]  ;;  %s4452_s9 = sshll.u32 %s398_s8, 2 }
  0x3b   : > { %5692 = vmatprep.subr.bf16.mxu1 %v5963_v12  ;;  %s6756_s22 = scalar_lea.vmem %s7843_s1, %s4452_s9 }
  0x3c   : > { %5253 = vmatpush3.bf16.msra.mxu0 %v5962_v23  ;;  %v5993_v23 = vld [vmem:[%s7846_s4 + $0x1e0] sm:$0xff]   ;;  %v6802_v13 = vld [vmem:[%s6756_s22 + $0x18] sm:$0xf] }
  0x3d   : > { %5254 = vmatprep.subr.bf16.mxu0 %v5967_v36  ;;  %v6683_v36 = vor.u32 %v603_v30, %v599_v27  ;;  %v6027_v27 = vld [vmem:[%s7846_s4 + $0x290] sm:$0xff]  }
  0x3e   : > { %5693 = vmatpush3.bf16.msra.mxu1 %v5963_v12  ;;  %v5985_v12 = vld [vmem:[%s7846_s4 + $0x238] sm:$0xff]  }
  0x3f   : > { %5694 = vmatprep.subr.bf16.mxu1 %v5971_v34  ;;  %903 = vmatmul.mubr.bf16.gmra.mxu0 %v6548_v46  ;;  %v4564_v8 = vcombine.low %v6579_v42, %v6683_v36  ;;  %v6016_v42 = vld [vmem:[%s7846_s4 + $0x2f0] sm:$0xff]  }
  0x40   : > { %5255 = vmatpush3.bf16.msra.mxu0 %v5968_v41  ;;  %910 = vmatprep.mubr.bf16.mxu0 %v6589_v48  ;;  %v6003_v41 = vld [vmem:[%s7846_s4 + $0x210] sm:$0xff]  }
  0x41   : > { %5256 = vmatprep.subr.bf16.mxu0 %v5972_v56  ;;  %v6011_v56 = vld [vmem:[%s7846_s4 + $0x2b8] sm:$0xff]  }
  0x42   : > { %5695 = vmatpush3.bf16.msra.mxu1 %v5971_v34  ;;  %v5994_v34 = vld [vmem:[%s7846_s4 + $0x1a0] sm:$0xff]  }
  0x43   : > { %5696 = vmatprep.subr.bf16.mxu1 %v5974_v44 }
  0x44   : > { %5257 = vmatpush3.bf16.msra.mxu0 %v5973_v61  ;;  %v4469_v61 = vcombine.low %v6730_v59, %v451_v60  ;;  %v463_v60 = vld [vmem:[%s6756_s22 + $0x2c] sm:$0x1] }
  0x45   : > { %5258 = vmatprep.subr.bf16.mxu0 %v5976_v28 }
  0x46   : > { %5697 = vmatpush3.bf16.msra.mxu1 %v5974_v44  ;;  %v6005_v44 = vld [vmem:[%s7846_s4 + $0x1c8] sm:$0xff]   ;;  %v621_v28 = vrot.slane %v4469_v61, 1 }
  0x47   : > { %5698 = vmatprep.subr.bf16.mxu1 %v5978_v37  ;;  %911 = vmatmul.mubr.bf16.gmra.mxu0 %v6593_v63 }
  0x48   : > { %5259 = vmatpush3.bf16.msra.mxu0 %v5977_v2  ;;  %1243 = vmatprep.mubr.bf16.mxu0 %v4555_v7  ;;  %v608_v2 = vshll.u32 %v4469_v61, 16  ;;  %v4640_v7 = vcombine.low %v620_v22, %v621_v28 }
  0x49   : > { %5260 = vmatprep.subr.bf16.mxu0 %v5979_v5  ;;  %v6022_v5 = vld [vmem:[%s7846_s4 + $0x2e0] sm:$0xff]  }
  0x4a   : > { %5699 = vmatpush3.bf16.msra.mxu1 %v5978_v37  ;;  %v6015_v37 = vld [vmem:[%s7846_s4 + $0x270] sm:$0xff]  }
  0x4b   : > { %5700 = vmatprep.subr.bf16.mxu1 %v5981_v3 }
  0x4c   : > { %5261 = vmatpush3.bf16.msra.mxu0 %v5980_v10  ;;  %v606_v10 = vshrl.u32 %v4469_v61, 16 }
  0x4d   : > { %5298 = vmatprep.subr.bf16.mxu0 %v5983_v14  ;;  %v453_v14 = vld [vmem:[%s6756_s22 + $0x4] sm:$0x1] }
  0x4e   : > { %5701 = vmatpush3.bf16.msra.mxu1 %v5981_v3  ;;  %v6019_v3 = vld [vmem:[%s7846_s4 + $0x2e8] sm:$0xff]  }
  0x4f   : > { %5710 = vmatprep.subr.bf16.mxu1 %v5985_v12  ;;  %1244 = vmatmul.mubr.bf16.vlgmr.msra.gmra.mxu0 %v4554_v0  ;;  %v455_v0 = vld [vmem:[%s6756_s22 + $0xc] sm:$0x1] }
  0x50   : > { %5299 = vmatpush3.bf16.msra.mxu0 %v5984_v15  ;;  %1251 = vmatprep.mubr.bf16.mxu0 %v4558_v24  ;;  %v6021_v24 = vld [vmem:[%s7846_s4 + $0x260] sm:$0xff]  }
  0x51   : > { %5703 = vmatmul.mubr.bf16.vlgmr.msra.gmra.mxu1 %v4559_v49  ;;  %5300 = vmatprep.subr.bf16.mxu0 %v5986_v45  ;;  %v6776_v49 = vld [vmem:[%s6756_s22 + $0x8] sm:$0xf] }
  0x52   : > { %5711 = vmatpush3.bf16.msra.mxu1 %v5985_v12  ;;  %5706 = vmatprep.mubr.bf16.mxu1 %v4562_v51  ;;  %v6772_v12 = vld [vmem:[%s6756_s22] sm:$0xf]  ;;  %v6026_v51 = vld [vmem:[%s7846_s4 + $0x2d8] sm:$0xff]  }
  0x53   : > { %5712 = vmatprep.subr.bf16.mxu1 %v5988_v16  ;;  %v4665_v15 = vcombine.low %v6772_v12, %v453_v14 }
  0x54   : > { %5301 = vmatpush3.bf16.msra.mxu0 %v5987_v33  ;;  %v6023_v33 = vld [vmem:[%s7846_s4 + $0x298] sm:$0xff]  }
  0x55   : > { %5302 = vmatprep.subr.bf16.mxu0 %v5990_v19  ;;  %v1840_v45 = vrot.slane %v4665_v15, 1  ;;  %v457_v19 = vld [vmem:[%s6756_s22 + $0x14] sm:$0x1]  ;;  %v1771_v30 = vshrl.u32 %v4665_v15, 16 }
  0x56   : > { %5713 = vmatpush3.bf16.msra.mxu1 %v5988_v16  ;;  %v6784_v16 = vcombine.low %v6776_v49, %v455_v0 }
  0x57   : > { %5714 = vmatprep.subr.bf16.mxu1 %v5992_v11  ;;  %1252 = vmatmul.mubr.bf16.gmra.mxu0 %v4557_v20  ;;  %v1773_v20 = vshll.u32 %v4665_v15, 16  ;;  %v467_v15 = vld [vmem:[%s6756_s22 + $0x3c] sm:$0x1] }
  0x58   : > { %5303 = vmatpush3.bf16.msra.mxu0 %v5991_v21  ;;  %1259 = vmatprep.mubr.bf16.mxu0 %v4561_v6  ;;  %v1780_v21 = vshll.u32 %v6784_v16, 16  ;;  %v6029_v6 = vld [vmem:[%s7846_s4 + $0x2d0] sm:$0xff]  }
  0x59   : > { %5304 = vmatprep.subr.bf16.mxu0 %v5993_v23  ;;  %5707 = vmatmul.mubr.bf16.gmra.mxu1 %v4565_v29  ;;  %v459_v23 = vld [vmem:[%s6756_s22 + $0x1c] sm:$0x1] }
  0x5a   : > { %5715 = vmatpush3.bf16.msra.mxu1 %v5992_v11  ;;  %5726 = vmatprep.mubr.bf16.mxu1 %v6444_v57  ;;  %v6002_v57 = vld [vmem:[%s7846_s4 + $0x190] sm:$0xff]   ;;  %v1841_v11 = vrot.slane %v6784_v16, 1 }
  0x5b   : > { %5716 = vmatprep.subr.bf16.mxu1 %v5995_v25 }
  0x5c   : > { %5305 = vmatpush3.bf16.msra.mxu0 %v5994_v34  ;;  %v4725_v22 = vcombine.low %v1840_v45, %v1841_v11  ;;  %v1775_v34 = vrot.slane %v1773_v20, 1  ;;  %v6041_v45 = vld [vmem:[%s7846_s4 + $0x338] sm:$0xff]  }
  0x5d   : > { %5306 = vmatprep.subr.bf16.mxu0 %v5997_v32  ;;  %v1782_v32 = vrot.slane %v1780_v21, 1 }
  0x5e   : > { %5717 = vmatpush3.bf16.msra.mxu1 %v5995_v25  ;;  %v6024_v25 = vld [vmem:[%s7846_s4 + $0x258] sm:$0xff]  }
  0x5f   : > { %5718 = vmatprep.subr.bf16.mxu1 %v6000_v35  ;;  %1260 = vmatmul.mubr.bf16.gmra.mxu0 %v4560_v38  ;;  %v6028_v38 = vld [vmem:[%s7846_s4 + $0x250] sm:$0xff]  }
  0x60   : > { %5307 = vmatpush3.bf16.msra.mxu0 %v5998_v39  ;;  %1267 = vmatprep.mubr.bf16.mxu0 %v4564_v8  ;;  %v6033_v39 = vld [vmem:[%s7846_s4 + $0x2c8] sm:$0xff]  }
  0x61   : > { %5308 = vmatprep.subr.bf16.mxu0 %v6001_v43  ;;  %v1776_v43 = vor.u32 %v1775_v34, %v1771_v30  ;;  %v6049_v30 = vld [vmem:[%s7846_s4 + $0x368] sm:$0xff]  }
  0x62   : > { %5719 = vmatpush3.bf16.msra.mxu1 %v6000_v35  ;;  %v1778_v35 = vshrl.u32 %v6784_v16, 16  ;;  %v6051_v34 = vld [vmem:[%s7846_s4 + $0x3a8] sm:$0xff]   ;;  %v6058_v16 = vld [vmem:[%s7846_s4 + $0x358] sm:$0xff]  }
  0x63   : > { %5720 = vmatprep.subr.bf16.mxu1 %v6003_v41 }
  0x64   : > { %5309 = vmatpush3.bf16.msra.mxu0 %v6002_v57  ;;  %v6838_v8 = vor.u32 %v1782_v32, %v1778_v35  ;;  %v6032_v57 = vld [vmem:[%s7846_s4 + $0x248] sm:$0xff]  }
  0x65   : > { %5310 = vmatprep.subr.bf16.mxu0 %v6005_v44 }
  0x66   : > { %5721 = vmatpush3.bf16.msra.mxu1 %v6003_v41 }
  0x67   : > { %5722 = vmatprep.subr.bf16.mxu1 %v6007_v18  ;;  %1268 = vmatmul.mubr.bf16.gmra.mxu0 %v4563_v47 }
  0x68   : > { %5311 = vmatpush3.bf16.msra.mxu0 %v6006_v50  ;;  %1598 = vmatprep.mubr.bf16.mxu0 %v6467_v4  ;;  %v6014_v4 = vld [vmem:[%s7846_s4 + $0x2b0] sm:$0xff]   ;;  %v4638_v50 = vcombine.low %v6645_v17, %v6730_v59  ;;  %v4724_v17 = vcombine.low %v1776_v43, %v6838_v8  ;;  %v6052_v43 = vld [vmem:[%s7846_s4 + $0x360] sm:$0xff]  }
  0x69   : > { %5312 = vmatprep.subr.bf16.mxu0 %v6008_v55 }
  0x6a   : > { %5723 = vmatpush3.bf16.msra.mxu1 %v6007_v18  ;;  %v6036_v18 = vld [vmem:[%s7846_s4 + $0x2c0] sm:$0xff]  }
  0x6b   : > { %5724 = vmatprep.subr.bf16.mxu1 %v6010_v54 }
  0x6c   : > { %5313 = vmatpush3.bf16.msra.mxu0 %v6009_v26  ;;  %v6851_v26 = vld [vmem:[%s6756_s22 + $0x20] sm:$0xf] }
  0x6d   : > { %5350 = vmatprep.subr.bf16.mxu0 %v6011_v56  ;;  %v461_v56 = vld [vmem:[%s6756_s22 + $0x24] sm:$0x1] }
  0x6e   : > { %5725 = vmatpush3.bf16.msra.mxu1 %v6010_v54  ;;  %v6859_v61 = vcombine.low %v6851_v26, %v461_v56  ;;  %v6053_v56 = vld [vmem:[%s7846_s4 + $0x320] sm:$0xff]  }
  0x6f   : > { %5734 = vmatprep.subr.bf16.mxu1 %v6013_v58  ;;  %1599 = vmatmul.mubr.bf16.vlgmr.msra.gmra.mxu0 %v6481_v9  ;;  %v6017_v9 = vld [vmem:[%s7846_s4 + $0x2a8] sm:$0xff]  }
  0x70   : > { %5351 = vmatpush3.bf16.msra.mxu0 %v6012_v62  ;;  %1606 = vmatprep.mubr.bf16.mxu0 %v6554_v52  ;;  %v610_v52 = vrot.slane %v608_v2, 1  ;;  %v6034_v62 = vld [vmem:[%s7846_s4 + $0x280] sm:$0xff]   ;;  %v6044_v2 = vld [vmem:[%s7846_s4 + $0x3b8] sm:$0xff]   ;;  %v1799_v21 = vshrl.u32 %v6859_v61, 16 }
  0x71   : > { %5727 = vmatmul.mubr.bf16.vlgmr.msra.gmra.mxu1 %v6522_v31  ;;  %5352 = vmatprep.subr.bf16.mxu0 %v6014_v4  ;;  %v6018_v31 = vld [vmem:[%s7846_s4 + $0x268] sm:$0xff]  }
  0x72   : > { %5735 = vmatpush3.bf16.msra.mxu1 %v6013_v58  ;;  %5730 = vmatprep.mubr.bf16.mxu1 %v6560_v53  ;;  %v6020_v53 = vld [vmem:[%s7846_s4 + $0x2a0] sm:$0xff]   ;;  %v611_v1 = vor.u32 %v610_v52, %v606_v10  ;;  %v6855_v58 = vld [vmem:[%s6756_s22 + $0x28] sm:$0xf]  ;;  %v465_v10 = vld [vmem:[%s6756_s22 + $0x34] sm:$0x1] }
  0x73   : > { %5736 = vmatprep.subr.bf16.mxu1 %v6016_v42  ;;  %v6866_v59 = vcombine.low %v6855_v58, %v463_v60  ;;  %v6890_v52 = vld [vmem:[%s6756_s22 + $0x38] sm:$0xf] }
  0x74   : > { %5353 = vmatpush3.bf16.msra.mxu0 %v6015_v37  ;;  %v4639_v29 = vcombine.low %v6683_v36, %v611_v1  ;;  %v6040_v37 = vld [vmem:[%s7846_s4 + $0x378] sm:$0xff]   ;;  %v6045_v1 = vld [vmem:[%s7846_s4 + $0x370] sm:$0xff]  }
  0x75   : > { %5354 = vmatprep.subr.bf16.mxu0 %v6017_v9  ;;  %v1808_v14 = vshll.u32 %v6866_v59, 16  ;;  %v1845_v0 = vrot.slane %v6866_v59, 1  ;;  %v6062_v60 = vld [vmem:[%s7846_s4 + $0x398] sm:$0xff]  }
  0x76   : > { %5737 = vmatpush3.bf16.msra.mxu1 %v6016_v42  ;;  %v6035_v42 = vld [vmem:[%s7846_s4 + $0x240] sm:$0xff]  }
  0x77   : > { %5738 = vmatprep.subr.bf16.mxu1 %v6019_v3  ;;  %1607 = vmatmul.mubr.bf16.gmra.mxu0 %v6548_v46  ;;  %v6798_v46 = vld [vmem:[%s6756_s22 + $0x10] sm:$0xf] }
  0x78   : > { %5355 = vmatpush3.bf16.msra.mxu0 %v6018_v31  ;;  %1614 = vmatprep.mubr.bf16.mxu0 %v6589_v48  ;;  %v6816_v40 = vcombine.low %v6798_v46, %v457_v19  ;;  %v6819_v48 = vcombine.low %v6802_v13, %v459_v23  ;;  %v6047_v19 = vld [vmem:[%s7846_s4 + $0x3b0] sm:$0xff]   ;;  %v1810_v23 = vrot.slane %v1808_v14, 1 }
  0x79   : > { %5731 = vmatmul.mubr.bf16.gmra.mxu1 %v4640_v7  ;;  %5356 = vmatprep.subr.bf16.mxu0 %v6020_v53  ;;  %v1844_v7 = vrot.slane %v6859_v61, 1 }
  0x7a   : > { %5739 = vmatpush3.bf16.msra.mxu1 %v6019_v3  ;;  %5750 = vmatprep.mubr.bf16.mxu1 %v4725_v22  ;;  %v1787_v41 = vshll.u32 %v6816_v40, 16  ;;  %v1794_v36 = vshll.u32 %v6819_v48, 16  ;;  %v1785_v44 = vshrl.u32 %v6816_v40, 16  ;;  %v1792_v47 = vshrl.u32 %v6819_v48, 16  ;;  %v6880_v3 = vld [vmem:[%s6756_s22 + $0x30] sm:$0xf] }
  0x7b   : > { %5740 = vmatprep.subr.bf16.mxu1 %v6022_v5  ;;  %v1842_v4 = vrot.slane %v6816_v40, 1  ;;  %v1843_v28 = vrot.slane %v6819_v48, 1  ;;  %v6896_v53 = vcombine.low %v6880_v3, %v465_v10  ;;  %v1806_v22 = vshrl.u32 %v6866_v59, 16  ;;  %v6067_v10 = vld [vmem:[%s7846_s4 + $0x348] sm:$0xff]   ;;  %v6077_v48 = vld [vmem:[%s7846_s4 + $0x430] sm:$0xff]  }
  0x7c   : > { %5357 = vmatpush3.bf16.msra.mxu0 %v6021_v24  ;;  %v1789_v54 = vrot.slane %v1787_v41, 1  ;;  %v1796_v55 = vrot.slane %v1794_v36, 1  ;;  %v6050_v41 = vld [vmem:[%s7846_s4 + $0x328] sm:$0xff]   ;;  %v7025_v14 = vcombine.low %v6880_v3, %v6890_v52 }
  0x7d   : > { %5358 = vmatprep.subr.bf16.mxu0 %v6023_v33  ;;  %v6905_v24 = vcombine.low %v1842_v4, %v1843_v28  ;;  %v6908_v33 = vcombine.low %v6890_v52, %v467_v15  ;;  %v6945_v32 = vor.u32 %v1810_v23, %v1806_v22  ;;  %v6068_v15 = vld [vmem:[%s7846_s4 + $0x308] sm:$0xff]   ;;  %v469_v22 = vld [vmem:[%s6756_s22 + $0x44] sm:$0x1] }
  0x7e   : > { %5741 = vmatpush3.bf16.msra.mxu1 %v6022_v5  ;;  %v6882_v9 = vor.u32 %v1789_v54, %v1785_v44  ;;  %v6884_v31 = vor.u32 %v1796_v55, %v1792_v47  ;;  %v1801_v5 = vshll.u32 %v6859_v61, 16  ;;  %v4809_v55 = vcombine.low %v1841_v11, %v1842_v4  ;;  %v6063_v4 = vld [vmem:[%s7846_s4 + $0x350] sm:$0xff]   ;;  %v6081_v59 = vld [vmem:[%s7846_s4 + $0x428] sm:$0xff]  }
  0x7f   : > { %5742 = vmatprep.subr.bf16.mxu1 %v6026_v51  ;;  %1615 = vmatmul.mubr.bf16.gmra.mxu0 %v6593_v63  ;;  %v6031_v63 = vld [vmem:[%s7846_s4 + $0x288] sm:$0xff]   ;;  %v1820_v44 = vshrl.u32 %v6908_v33, 16  ;;  %v6079_v61 = vld [vmem:[%s7846_s4 + $0x470] sm:$0xff]  }
  0x80   : > { %5359 = vmatpush3.bf16.msra.mxu0 %v6024_v25  ;;  %1622 = vmatprep.mubr.bf16.mxu0 %v4639_v29  ;;  %v6920_v20 = vcombine.low %v6882_v9, %v6884_v31  ;;  %v1846_v25 = vrot.slane %v6896_v53, 1  ;;  %v6934_v29 = vcombine.low %v1844_v7, %v1845_v0 }
  0x81   : > { %5360 = vmatprep.subr.bf16.mxu0 %v6027_v27  ;;  %v1847_v27 = vrot.slane %v6908_v33, 1 }
  0x82   : > { %5743 = vmatpush3.bf16.msra.mxu1 %v6026_v51  ;;  %v4723_v51 = vcombine.low %v6772_v12, %v6776_v49  ;;  %v1803_v12 = vrot.slane %v1801_v5, 1  ;;  %v6069_v5 = vld [vmem:[%s7846_s4 + $0x388] sm:$0xff]  }
  0x83   : > { %5744 = vmatprep.subr.bf16.mxu1 %v6029_v6  ;;  %v6957_v36 = vcombine.low %v1846_v25, %v1847_v27 }
  0x84   : > { %5361 = vmatpush3.bf16.msra.mxu0 %v6028_v38  ;;  %v6943_v35 = vor.u32 %v1803_v12, %v1799_v21  ;;  %v1815_v38 = vshll.u32 %v6896_v53, 16  ;;  %v7042_v21 = vld [vmem:[%s6756_s22 + $0x40] sm:$0xf]  ;;  %v6076_v12 = vld [vmem:[%s7846_s4 + $0x478] sm:$0xff]  }
  0x85   : > { %5362 = vmatprep.subr.bf16.mxu0 %v6031_v63  ;;  %v6961_v63 = vcombine.low %v6798_v46, %v6802_v13  ;;  %v7057_v23 = vcombine.low %v7042_v21, %v469_v22 }
  0x86   : > { %5745 = vmatpush3.bf16.msra.mxu1 %v6029_v6  ;;  %v6046_v6 = vld [vmem:[%s7846_s4 + $0x330] sm:$0xff]   ;;  %v6973_v47 = vcombine.low %v6943_v35, %v6945_v32 }
  0x87   : > { %5746 = vmatprep.subr.bf16.mxu1 %v6033_v39  ;;  %1623 = vmatmul.mubr.bf16.gmra.mxu0 %v4638_v50  ;;  %v1817_v50 = vrot.slane %v1815_v38, 1  ;;  %v6086_v38 = vld [vmem:[%s7846_s4 + $0x460] sm:$0xff]  }
  0x88   : > { %5363 = vmatpush3.bf16.msra.mxu0 %v6032_v57  ;;  %2115 = vmatprep.mubr.bf16.mxu0 %v4724_v17  ;;  %v6054_v57 = vld [vmem:[%s7846_s4 + $0x3a0] sm:$0xff]   ;;  %v6059_v17 = vld [vmem:[%s7846_s4 + $0x318] sm:$0xff]  }
  0x89   : > { %5364 = vmatprep.subr.bf16.mxu0 %v6034_v62  ;;  %v6997_v62 = vcombine.low %v6851_v26, %v6855_v58 }
  0x8a   : > { %5747 = vmatpush3.bf16.msra.mxu1 %v6033_v39  ;;  %v1822_v39 = vshll.u32 %v6908_v33, 16 }
  0x8b   : > { %5748 = vmatprep.subr.bf16.mxu1 %v6036_v18 }
  0x8c   : > { %5365 = vmatpush3.bf16.msra.mxu0 %v6035_v42  ;;  %v1824_v54 = vrot.slane %v1822_v39, 1  ;;  %v6065_v42 = vld [vmem:[%s7846_s4 + $0x390] sm:$0xff]  }
  0x8d   : > { %5402 = vmatprep.subr.bf16.mxu0 %v6040_v37 }
  0x8e   : > { %5749 = vmatpush3.bf16.msra.mxu1 %v6036_v18  ;;  %v1813_v18 = vshrl.u32 %v6896_v53, 16  ;;  %v6993_v40 = vor.u32 %v1824_v54, %v1820_v44  ;;  %v6082_v53 = vld [vmem:[%s7846_s4 + $0x3e8] sm:$0xff]   ;;  %v4816_v54 = vcombine.low %v6890_v52, %v7042_v21 }
  0x8f   : > { %5758 = vmatprep.subr.bf16.mxu1 %v6044_v2  ;;  %2116 = vmatmul.mubr.bf16.vlgmr.msra.gmra.mxu0 %v4723_v51  ;;  %v6070_v51 = vld [vmem:[%s7846_s4 + $0x340] sm:$0xff]   ;;  %v471_v52 = vld [vmem:[%s6756_s22 + $0x4c] sm:$0x1] }
  0x90   : > { %5403 = vmatpush3.bf16.msra.mxu0 %v6041_v45  ;;  %2123 = vmatprep.mubr.bf16.mxu0 %v6920_v20  ;;  %v6991_v11 = vor.u32 %v1817_v50, %v1813_v18  ;;  %v6072_v45 = vld [vmem:[%s7846_s4 + $0x380] sm:$0xff]   ;;  %v6094_v18 = vld [vmem:[%s7846_s4 + $0x450] sm:$0xff]   ;;  %v6096_v50 = vld [vmem:[%s7846_s4 + $0x408] sm:$0xff]  }
  0x91   : > { %5751 = vmatmul.mubr.bf16.vlgmr.msra.gmra.mxu1 %v6905_v24  ;;  %5404 = vmatprep.subr.bf16.mxu0 %v6045_v1  ;;  %v4808_v1 = vcombine.low %v6838_v8, %v6882_v9  ;;  %v6074_v8 = vld [vmem:[%s7846_s4 + $0x438] sm:$0xff]   ;;  %v4812_v9 = vcombine.low %v1843_v28, %v1844_v7  ;;  %v4811_v28 = vcombine.low %v6884_v31, %v6943_v35  ;;  %v6078_v7 = vld [vmem:[%s7846_s4 + $0x3f0] sm:$0xff]   ;;  %v6083_v31 = vld [vmem:[%s7846_s4 + $0x468] sm:$0xff]  }
  0x92   : > { %5759 = vmatpush3.bf16.msra.mxu1 %v6044_v2  ;;  %5754 = vmatprep.mubr.bf16.mxu1 %v6934_v29  ;;  %v7010_v37 = vcombine.low %v6991_v11, %v6993_v40  ;;  %v6064_v2 = vld [vmem:[%s7846_s4 + $0x310] sm:$0xff]   ;;  %v6084_v35 = vld [vmem:[%s7846_s4 + $0x420] sm:$0xff]   ;;  %v4814_v33 = vcombine.low %v6945_v32, %v6991_v11  ;;  %v6088_v32 = vld [vmem:[%s7846_s4 + $0x418] sm:$0xff]  }
  0x93   : > { %5760 = vmatprep.subr.bf16.mxu1 %v6047_v19  ;;  %v6100_v11 = vld [vmem:[%s7846_s4 + $0x3c0] sm:$0xff]  }
  0x94   : > { %5405 = vmatpush3.bf16.msra.mxu0 %v6046_v6  ;;  %v4807_v6 = vcombine.low %v6776_v49, %v6798_v46  ;;  %v4815_v49 = vcombine.low %v1845_v0, %v1846_v25  ;;  %v1848_v46 = vrot.slane %v7057_v23, 1  ;;  %v1829_v0 = vshll.u32 %v7057_v23, 16 }
  0x95   : > { %5406 = vmatprep.subr.bf16.mxu0 %v6049_v30  ;;  %v6075_v30 = vld [vmem:[%s7846_s4 + $0x3f8] sm:$0xff]  }
  0x96   : > { %5761 = vmatpush3.bf16.msra.mxu1 %v6047_v19  ;;  %v6071_v19 = vld [vmem:[%s7846_s4 + $0x300] sm:$0xff]   ;;  %v4818_v25 = vcombine.low %v1847_v27, %v1848_v46  ;;  %v1827_v27 = vshrl.u32 %v7057_v23, 16  ;;  %v1831_v39 = vrot.slane %v1829_v0, 1  ;;  %v6114_v0 = vld [vmem:[%s7846_s4 + $0x4d8] sm:$0xff]  }
  0x97   : > { %5762 = vmatprep.subr.bf16.mxu1 %v6051_v34  ;;  %2124 = vmatmul.mubr.bf16.gmra.mxu0 %v6961_v63  ;;  %v6113_v23 = vld [vmem:[%s7846_s4 + $0x520] sm:$0xff]  }
  0x98   : > { %5407 = vmatpush3.bf16.msra.mxu0 %v6050_v41  ;;  %2131 = vmatprep.mubr.bf16.mxu0 %v6973_v47  ;;  %v7115_v41 = vor.u32 %v1831_v39, %v1827_v27 }
  0x99   : > { %5755 = vmatmul.mubr.bf16.gmra.mxu1 %v6957_v36  ;;  %5408 = vmatprep.subr.bf16.mxu0 %v6052_v43  ;;  %v4813_v43 = vcombine.low %v6855_v58, %v6880_v3  ;;  %v6093_v58 = vld [vmem:[%s7846_s4 + $0x3d0] sm:$0xff]   ;;  %v6098_v3 = vld [vmem:[%s7846_s4 + $0x448] sm:$0xff]  }
  0x9a   : > { %5763 = vmatpush3.bf16.msra.mxu1 %v6051_v34  ;;  %5774 = vmatprep.mubr.bf16.mxu1 %v4809_v55  ;;  %v4810_v34 = vcombine.low %v6802_v13, %v6851_v26  ;;  %v6085_v13 = vld [vmem:[%s7846_s4 + $0x3e0] sm:$0xff]   ;;  %v6091_v26 = vld [vmem:[%s7846_s4 + $0x458] sm:$0xff]   ;;  %v4817_v44 = vcombine.low %v6993_v40, %v7115_v41  ;;  %v6097_v55 = vld [vmem:[%s7846_s4 + $0x3c8] sm:$0xff]  }
  0x9b   : > { %5764 = vmatprep.subr.bf16.mxu1 %v6054_v57  ;;  %v6104_v40 = vld [vmem:[%s7846_s4 + $0x538] sm:$0xff]  }
  0x9c   : > { %5409 = vmatpush3.bf16.msra.mxu0 %v6053_v56  ;;  %v6101_v56 = vld [vmem:[%s7846_s4 + $0x440] sm:$0xff]  }
  0x9d   : > { %5410 = vmatprep.subr.bf16.mxu0 %v6058_v16  ;;  %v7153_v16 = vld [vmem:[%s6756_s22 + $0x48] sm:$0xf] }
  0x9e   : > { %5765 = vmatpush3.bf16.msra.mxu1 %v6054_v57  ;;  %v6089_v57 = vld [vmem:[%s7846_s4 + $0x3d8] sm:$0xff]  }
  0x9f   : > { %5766 = vmatprep.subr.bf16.mxu1 %v6062_v60  ;;  %2132 = vmatmul.mubr.bf16.gmra.mxu0 %v6997_v62 }
  0xa0   : > { %5411 = vmatpush3.bf16.msra.mxu0 %v6059_v17  ;;  %2139 = vmatprep.mubr.bf16.mxu0 %v7010_v37  ;;  %v6102_v17 = vld [vmem:[%s7846_s4 + $0x4f8] sm:$0xff]  }
  0xa1   : > { %5412 = vmatprep.subr.bf16.mxu0 %v6063_v4  ;;  %v6107_v4 = vld [vmem:[%s7846_s4 + $0x530] sm:$0xff]  }
  0xa2   : > { %5767 = vmatpush3.bf16.msra.mxu1 %v6062_v60  ;;  %v6099_v60 = vld [vmem:[%s7846_s4 + $0x400] sm:$0xff]  }
  0xa3   : > { %5768 = vmatprep.subr.bf16.mxu1 %v6065_v42 }
  0xa4   : > { %5413 = vmatpush3.bf16.msra.mxu0 %v6064_v2  ;;  %v4674_v2 = vcombine.low %v7153_v16, %v471_v52  ;;  %v483_v52 = vld [vmem:[%s7165_s20 + $0x2c] sm:$0x1] }
  0xa5   : > { %5414 = vmatprep.subr.bf16.mxu0 %v6067_v10  ;;  %v473_v10 = vld [vmem:[%s7165_s20 + $0x4] sm:$0x1] }
  0xa6   : > { %5769 = vmatpush3.bf16.msra.mxu1 %v6065_v42  ;;  %v6103_v42 = vld [vmem:[%s7846_s4 + $0x4b8] sm:$0xff]  }
  0xa7   : > { %5770 = vmatprep.subr.bf16.mxu1 %v6069_v5  ;;  %2140 = vmatmul.mubr.bf16.gmra.mxu0 %v7025_v14 }
  0xa8   : > { %5415 = vmatpush3.bf16.msra.mxu0 %v6068_v15  ;;  %2488 = vmatprep.mubr.bf16.mxu0 %v4808_v1  ;;  %v7186_v15 = vld [vmem:[%s7165_s20 + $0x8] sm:$0xf]  ;;  %v6106_v1 = vld [vmem:[%s7846_s4 + $0x4b0] sm:$0xff]  }
  0xa9   : > { %5416 = vmatprep.subr.bf16.mxu0 %v6070_v51  ;;  %v1849_v51 = vrot.slane %v4674_v2, 1 }
  0xaa   : > { %5771 = vmatpush3.bf16.msra.mxu1 %v6069_v5  ;;  %v6105_v5 = vld [vmem:[%s7846_s4 + $0x4f0] sm:$0xff]  }
  0xab   : > { %5772 = vmatprep.subr.bf16.mxu1 %v6072_v45 }
  0xac   : > { %5417 = vmatpush3.bf16.msra.mxu0 %v6071_v19  ;;  %v6110_v19 = vld [vmem:[%s7846_s4 + $0x528] sm:$0xff]  }
  0xad   : > { %5454 = vmatprep.subr.bf16.mxu0 %v6074_v8  ;;  %v4893_v8 = vcombine.low %v1848_v46, %v1849_v51  ;;  %v7228_v46 = vld [vmem:[%s7165_s20 + $0x18] sm:$0xf]  ;;  %v6126_v51 = vld [vmem:[%s7846_s4 + $0x480] sm:$0xff]  }
  0xae   : > { %5773 = vmatpush3.bf16.msra.mxu1 %v6072_v45  ;;  %v475_v45 = vld [vmem:[%s7165_s20 + $0xc] sm:$0x1] }
  0xaf   : > { %5782 = vmatprep.subr.bf16.mxu1 %v6076_v12  ;;  %2489 = vmatmul.mubr.bf16.vlgmr.msra.gmra.mxu0 %v4807_v6 }
  0xb0   : > { %5455 = vmatpush3.bf16.msra.mxu0 %v6075_v30  ;;  %2496 = vmatprep.mubr.bf16.mxu0 %v4811_v28  ;;  %v1834_v30 = vshrl.u32 %v4674_v2, 16  ;;  %v477_v28 = vld [vmem:[%s7165_s20 + $0x14] sm:$0x1] }
  0xb1   : > { %5775 = vmatmul.mubr.bf16.vlgmr.msra.gmra.mxu1 %v4812_v9  ;;  %5456 = vmatprep.subr.bf16.mxu0 %v6077_v48  ;;  %v7222_v48 = vld [vmem:[%s7165_s20 + $0x10] sm:$0xf] }
  0xb2   : > { %5783 = vmatpush3.bf16.msra.mxu1 %v6076_v12  ;;  %5778 = vmatprep.mubr.bf16.mxu1 %v4815_v49  ;;  %v7201_v12 = vcombine.low %v7186_v15, %v475_v45  ;;  %v485_v45 = vld [vmem:[%s7165_s20 + $0x34] sm:$0x1] }
  0xb3   : > { %5784 = vmatprep.subr.bf16.mxu1 %v6079_v61 }
  0xb4   : > { %5457 = vmatpush3.bf16.msra.mxu0 %v6078_v7  ;;  %v3086_v6 = vrot.slane %v7201_v12, 1  ;;  %v479_v7 = vld [vmem:[%s7165_s20 + $0x1c] sm:$0x1]  ;;  %v3023_v39 = vshrl.u32 %v7201_v12, 16 }
  0xb5   : > { %5458 = vmatprep.subr.bf16.mxu0 %v6081_v59  ;;  %v6117_v59 = vld [vmem:[%s7846_s4 + $0x518] sm:$0xff]  }
  0xb6   : > { %5785 = vmatpush3.bf16.msra.mxu1 %v6079_v61 }
  0xb7   : > { %5786 = vmatprep.subr.bf16.mxu1 %v6083_v31  ;;  %2497 = vmatmul.mubr.bf16.gmra.mxu0 %v4810_v34  ;;  %v6115_v34 = vld [vmem:[%s7846_s4 + $0x498] sm:$0xff]  }
  0xb8   : > { %5459 = vmatpush3.bf16.msra.mxu0 %v6082_v53  ;;  %2504 = vmatprep.mubr.bf16.mxu0 %v4814_v33  ;;  %v6120_v33 = vld [vmem:[%s7846_s4 + $0x510] sm:$0xff]  }
  0xb9   : > { %5779 = vmatmul.mubr.bf16.gmra.mxu1 %v4818_v25  ;;  %5460 = vmatprep.subr.bf16.mxu0 %v6084_v35  ;;  %v3025_v25 = vshll.u32 %v7201_v12, 16  ;;  %v7248_v35 = vcombine.low %v7222_v48, %v477_v28  ;;  %v6150_v12 = vld [vmem:[%s7846_s4 + $0x598] sm:$0xff]  }
  0xba   : > { %5787 = vmatpush3.bf16.msra.mxu1 %v6083_v31  ;;  %5798 = vmatprep.mubr.bf16.mxu1 %v6905_v24  ;;  %v6092_v24 = vld [vmem:[%s7846_s4 + $0x410] sm:$0xff]   ;;  %v6112_v31 = vld [vmem:[%s7846_s4 + $0x4a0] sm:$0xff]  }
  0xbb   : > { %5788 = vmatprep.subr.bf16.mxu1 %v6086_v38 }
  0xbc   : > { %5461 = vmatpush3.bf16.msra.mxu0 %v6085_v13 }
  0xbd   : > { %5462 = vmatprep.subr.bf16.mxu0 %v6088_v32  ;;  %v3027_v32 = vrot.slane %v3025_v25, 1 }
  0xbe   : > { %5789 = vmatpush3.bf16.msra.mxu1 %v6086_v38  ;;  %v7251_v38 = vcombine.low %v7228_v46, %v479_v7 }
  0xbf   : > { %5790 = vmatprep.subr.bf16.mxu1 %v6091_v26  ;;  %2505 = vmatmul.mubr.bf16.gmra.mxu0 %v4813_v43  ;;  %v6119_v43 = vld [vmem:[%s7846_s4 + $0x490] sm:$0xff]  }
  0xc0   : > { %5463 = vmatpush3.bf16.msra.mxu0 %v6089_v57  ;;  %2512 = vmatprep.mubr.bf16.mxu0 %v4817_v44  ;;  %v6124_v57 = vld [vmem:[%s7846_s4 + $0x508] sm:$0xff]   ;;  %v3032_v44 = vshll.u32 %v7248_v35, 16 }
  0xc1   : > { %5464 = vmatprep.subr.bf16.mxu0 %v6092_v24  ;;  %v3088_v24 = vrot.slane %v7251_v38, 1 }
  0xc2   : > { %5791 = vmatpush3.bf16.msra.mxu1 %v6091_v26 }
  0xc3   : > { %5792 = vmatprep.subr.bf16.mxu1 %v6094_v18 }
  0xc4   : > { %5465 = vmatpush3.bf16.msra.mxu0 %v6093_v58  ;;  %v3039_v58 = vshll.u32 %v7251_v38, 16 }
  0xc5   : > { %5466 = vmatprep.subr.bf16.mxu0 %v6096_v50  ;;  %v481_v50 = vld [vmem:[%s7165_s20 + $0x24] sm:$0x1] }
  0xc6   : > { %5793 = vmatpush3.bf16.msra.mxu1 %v6094_v18  ;;  %v3087_v18 = vrot.slane %v7248_v35, 1 }
  0xc7   : > { %5794 = vmatprep.subr.bf16.mxu1 %v6098_v3  ;;  %2513 = vmatmul.mubr.bf16.gmra.mxu0 %v4816_v54 }
  0xc8   : > { %5467 = vmatpush3.bf16.msra.mxu0 %v6097_v55  ;;  %2843 = vmatprep.mubr.bf16.mxu0 %v6920_v20  ;;  %v7182_v20 = vld [vmem:[%s7165_s20] sm:$0xf]  ;;  %v7280_v55 = vor.u32 %v3027_v32, %v3023_v39 }
  0xc9   : > { %5468 = vmatprep.subr.bf16.mxu0 %v6099_v60  ;;  %v7198_v22 = vcombine.low %v7182_v20, %v473_v10  ;;  %v6127_v60 = vld [vmem:[%s7846_s4 + $0x500] sm:$0xff]   ;;  %v4976_v7 = vcombine.low %v7182_v20, %v7186_v15 }
  0xca   : > { %5795 = vmatpush3.bf16.msra.mxu1 %v6098_v3  ;;  %v7277_v3 = vld [vmem:[%s7165_s20 + $0x20] sm:$0xf] }
  0xcb   : > { %5796 = vmatprep.subr.bf16.mxu1 %v6101_v56  ;;  %v3085_v9 = vrot.slane %v7198_v22, 1  ;;  %v3018_v53 = vshll.u32 %v7198_v22, 16  ;;  %v3016_v27 = vshrl.u32 %v7198_v22, 16  ;;  %v7301_v10 = vcombine.low %v7277_v3, %v481_v50  ;;  %v487_v22 = vld [vmem:[%s7165_s20 + $0x3c] sm:$0x1] }
  0xcc   : > { %5469 = vmatpush3.bf16.msra.mxu0 %v6100_v11  ;;  %v4891_v11 = vcombine.low %v7042_v21, %v7153_v16  ;;  %v7307_v16 = vld [vmem:[%s7165_s20 + $0x30] sm:$0xf] }
  0xcd   : > { %5506 = vmatprep.subr.bf16.mxu0 %v6102_v17  ;;  %v4978_v49 = vcombine.low %v3085_v9, %v3086_v6  ;;  %v3020_v26 = vrot.slane %v3018_v53, 1  ;;  %v3030_v17 = vshrl.u32 %v7248_v35, 16  ;;  %v7341_v28 = vcombine.low %v7307_v16, %v485_v45 }
  0xce   : > { %5797 = vmatpush3.bf16.msra.mxu1 %v6101_v56  ;;  %v6123_v56 = vld [vmem:[%s7846_s4 + $0x488] sm:$0xff]  }
  0xcf   : > { %5806 = vmatprep.subr.bf16.mxu1 %v6104_v40  ;;  %2844 = vmatmul.mubr.bf16.vlgmr.msra.gmra.mxu0 %v6961_v63  ;;  %v1836_v63 = vshll.u32 %v4674_v2, 16  ;;  %v3021_v54 = vor.u32 %v3020_v26, %v3016_v27  ;;  %v3041_v2 = vrot.slane %v3039_v58, 1  ;;  %v3091_v27 = vrot.slane %v7341_v28, 1  ;;  %v6141_v26 = vld [vmem:[%s7846_s4 + $0x5a8] sm:$0xff]  }
  0xd0   : > { %5507 = vmatpush3.bf16.msra.mxu0 %v6103_v42  ;;  %2851 = vmatprep.mubr.bf16.mxu0 %v6973_v47  ;;  %v6109_v47 = vld [vmem:[%s7846_s4 + $0x4a8] sm:$0xff]   ;;  %v3037_v42 = vshrl.u32 %v7251_v38, 16  ;;  %v3060_v58 = vshll.u32 %v7341_v28, 16  ;;  %v6170_v38 = vld [vmem:[%s7846_s4 + $0x6b0] sm:$0xff]  }
  0xd1   : > { %5799 = vmatmul.mubr.bf16.vlgmr.msra.gmra.mxu1 %v6934_v29  ;;  %5508 = vmatprep.subr.bf16.mxu0 %v6105_v5  ;;  %v6108_v29 = vld [vmem:[%s7846_s4 + $0x4e8] sm:$0xff]   ;;  %v1838_v61 = vrot.slane %v1836_v63, 1  ;;  %v4977_v5 = vcombine.low %v3021_v54, %v7280_v55  ;;  %v6136_v63 = vld [vmem:[%s7846_s4 + $0x5f8] sm:$0xff]  }
  0xd2   : > { %5807 = vmatpush3.bf16.msra.mxu1 %v6104_v40  ;;  %5802 = vmatprep.mubr.bf16.mxu1 %v6957_v36  ;;  %v6111_v36 = vld [vmem:[%s7846_s4 + $0x4e0] sm:$0xff]   ;;  %v7331_v9 = vor.u32 %v3041_v2, %v3037_v42  ;;  %v3058_v2 = vshrl.u32 %v7341_v28, 16  ;;  %v6174_v28 = vld [vmem:[%s7846_s4 + $0x6a8] sm:$0xff]  }
  0xd3   : > { %5808 = vmatprep.subr.bf16.mxu1 %v6107_v4  ;;  %v6125_v40 = vld [vmem:[%s7846_s4 + $0x4c0] sm:$0xff]  }
  0xd4   : > { %5509 = vmatpush3.bf16.msra.mxu0 %v6106_v1  ;;  %v7314_v1 = vld [vmem:[%s7165_s20 + $0x38] sm:$0xf]  ;;  %v6146_v42 = vld [vmem:[%s7846_s4 + $0x5e0] sm:$0xff]  }
  0xd5   : > { %5510 = vmatprep.subr.bf16.mxu0 %v6108_v29  ;;  %v7324_v29 = vcombine.low %v3087_v18, %v3088_v24 }
  0xd6   : > { %5809 = vmatpush3.bf16.msra.mxu1 %v6107_v4  ;;  %v3034_v4 = vrot.slane %v3032_v44, 1 }
  0xd7   : > { %5810 = vmatprep.subr.bf16.mxu1 %v6110_v19  ;;  %2852 = vmatmul.mubr.bf16.gmra.mxu0 %v6997_v62  ;;  %v1839_v62 = vor.u32 %v1838_v61, %v1834_v30  ;;  %v3089_v30 = vrot.slane %v7301_v10, 1 }
  0xd8   : > { %5511 = vmatpush3.bf16.msra.mxu0 %v6109_v47  ;;  %2859 = vmatprep.mubr.bf16.mxu0 %v7010_v37  ;;  %v6118_v37 = vld [vmem:[%s7846_s4 + $0x4d0] sm:$0xff]   ;;  %v3046_v47 = vshll.u32 %v7301_v10, 16 }
  0xd9   : > { %5803 = vmatmul.mubr.bf16.gmra.mxu1 %v4893_v8  ;;  %5512 = vmatprep.subr.bf16.mxu0 %v6111_v36  ;;  %v4892_v13 = vcombine.low %v7115_v41, %v1839_v62  ;;  %v6122_v41 = vld [vmem:[%s7846_s4 + $0x4c8] sm:$0xff]   ;;  %v7329_v8 = vor.u32 %v3034_v4, %v3030_v17  ;;  %v6144_v17 = vld [vmem:[%s7846_s4 + $0x5a0] sm:$0xff]  }
  0xda   : > { %5811 = vmatpush3.bf16.msra.mxu1 %v6110_v19  ;;  %5822 = vmatprep.mubr.bf16.mxu1 %v4978_v49  ;;  %v6132_v19 = vld [vmem:[%s7846_s4 + $0x5b8] sm:$0xff]   ;;  %v7344_v49 = vcombine.low %v7314_v1, %v487_v22  ;;  %v3048_v20 = vrot.slane %v3046_v47, 1  ;;  %v3062_v22 = vrot.slane %v3060_v58, 1 }
  0xdb   : > { %5812 = vmatprep.subr.bf16.mxu1 %v6113_v23  ;;  %v7358_v53 = vcombine.low %v7329_v8, %v7331_v9 }
  0xdc   : > { %5513 = vmatpush3.bf16.msra.mxu0 %v6112_v31  ;;  %v6137_v31 = vld [vmem:[%s7846_s4 + $0x5b0] sm:$0xff]   ;;  %v3092_v39 = vrot.slane %v7344_v49, 1  ;;  %v3067_v50 = vshll.u32 %v7344_v49, 16 }
  0xdd   : > { %5514 = vmatprep.subr.bf16.mxu0 %v6114_v0  ;;  %v3044_v0 = vshrl.u32 %v7301_v10, 16 }
  0xde   : > { %5813 = vmatpush3.bf16.msra.mxu1 %v6113_v23  ;;  %v6133_v23 = vld [vmem:[%s7846_s4 + $0x578] sm:$0xff]  }
  0xdf   : > { %5814 = vmatprep.subr.bf16.mxu1 %v6117_v59  ;;  %2860 = vmatmul.mubr.bf16.gmra.mxu0 %v7025_v14  ;;  %v7283_v14 = vld [vmem:[%s7165_s20 + $0x28] sm:$0xf] }
  0xe0   : > { %5515 = vmatpush3.bf16.msra.mxu0 %v6115_v34  ;;  %2867 = vmatprep.mubr.bf16.mxu0 %v4892_v13  ;;  %v7304_v21 = vcombine.low %v7283_v14, %v483_v52  ;;  %v7395_v52 = vcombine.low %v3091_v27, %v3092_v39 }
  0xe1   : > { %5516 = vmatprep.subr.bf16.mxu0 %v6118_v37  ;;  %v6138_v37 = vld [vmem:[%s7846_s4 + $0x570] sm:$0xff]  }
  0xe2   : > { %5815 = vmatpush3.bf16.msra.mxu1 %v6117_v59  ;;  %v3053_v36 = vshll.u32 %v7304_v21, 16  ;;  %v3090_v61 = vrot.slane %v7304_v21, 1  ;;  %v6139_v59 = vld [vmem:[%s7846_s4 + $0x5f0] sm:$0xff]   ;;  %v3051_v62 = vshrl.u32 %v7304_v21, 16 }
  0xe3   : > { %5816 = vmatprep.subr.bf16.mxu1 %v6120_v33 }
  0xe4   : > { %5517 = vmatpush3.bf16.msra.mxu0 %v6119_v43  ;;  %v3055_v25 = vrot.slane %v3053_v36, 1  ;;  %v6143_v43 = vld [vmem:[%s7846_s4 + $0x5e8] sm:$0xff]   ;;  %v5062_v36 = vcombine.low %v3086_v6, %v3087_v18  ;;  %v7433_v6 = vor.u32 %v3062_v22, %v3058_v2 }
  0xe5   : > { %5518 = vmatprep.subr.bf16.mxu0 %v6122_v41  ;;  %v7381_v41 = vor.u32 %v3048_v20, %v3044_v0  ;;  %v7439_v20 = vcombine.low %v7277_v3, %v7283_v14  ;;  %v6160_v22 = vld [vmem:[%s7846_s4 + $0x548] sm:$0xff]  }
  0xe6   : > { %5817 = vmatpush3.bf16.msra.mxu1 %v6120_v33  ;;  %v7370_v33 = vcombine.low %v3089_v30, %v3090_v61  ;;  %v7383_v44 = vor.u32 %v3055_v25, %v3051_v62  ;;  %v6151_v25 = vld [vmem:[%s7846_s4 + $0x558] sm:$0xff]  }
  0xe7   : > { %5818 = vmatprep.subr.bf16.mxu1 %v6124_v57  ;;  %2868 = vmatmul.mubr.bf16.gmra.mxu0 %v4891_v11 }
  0xe8   : > { %5519 = vmatpush3.bf16.msra.mxu0 %v6123_v56  ;;  %3360 = vmatprep.mubr.bf16.mxu0 %v4977_v5  ;;  %v3065_v5 = vshrl.u32 %v7344_v49, 16  ;;  %v6175_v49 = vld [vmem:[%s7846_s4 + $0x660] sm:$0xff]  }
  0xe9   : > { %5520 = vmatprep.subr.bf16.mxu0 %v6125_v40  ;;  %v7399_v40 = vcombine.low %v7222_v48, %v7228_v46 }
  0xea   : > { %5819 = vmatpush3.bf16.msra.mxu1 %v6124_v57 }
  0xeb   : > { %5820 = vmatprep.subr.bf16.mxu1 %v6127_v60 }
  0xec   : > { %5521 = vmatpush3.bf16.msra.mxu0 %v6126_v51 }
  0xed   : > { %5558 = vmatprep.subr.bf16.mxu0 %v6132_v19  ;;  %v7413_v19 = vcombine.low %v7381_v41, %v7383_v44 }
  0xee   : > { %5821 = vmatpush3.bf16.msra.mxu1 %v6127_v60  ;;  %v6142_v60 = vld [vmem:[%s7846_s4 + $0x568] sm:$0xff]  }
  0xef   : > { %5830 = vmatprep.subr.bf16.mxu1 %v6136_v63  ;;  %v5210_v13 = vpop.f32.mrf.mxu0  ;;  %3361 = vmatmul.mubr.bf16.vlgmr.msra.gmra.mxu0 %v4976_v7  ;;  %v6145_v7 = vld [vmem:[%s7846_s4 + $0x560] sm:$0xff]  }
  0xf0   : > { %5559 = vmatpush3.bf16.msra.mxu0 %v6133_v23  ;;  %3368 = vmatprep.mubr.bf16.mxu0 %v7358_v53 }
  0xf1   : > { %v7360_v34 = vpop.f32.mrf.mxu1  ;;  %5823 = vmatmul.mubr.bf16.vlgmr.msra.gmra.mxu1 %v7324_v29  ;;  %v5211_v57 = vpop.f32.mrf.mxu0  ;;  %5560 = vmatprep.subr.bf16.mxu0 %v6137_v31  ;;  %v6154_v31 = vld [vmem:[%s7846_s4 + $0x5d8] sm:$0xff]  }
  0xf2   : > { %5831 = vmatpush3.bf16.msra.mxu1 %v6136_v63  ;;  %v5212_v54 = vadd.f32 %v5211_v57, %v5210_v13  ;;  %5826 = vmatprep.mubr.bf16.mxu1 %v7370_v33  ;;  %v3069_v63 = vrot.slane %v3067_v50, 1  ;;  %v6157_v13 = vld [vmem:[%s7846_s4 + $0x5d0] sm:$0xff]  }
  0xf3   : > { %v953_v32 = vpop.f32.mrf.mxu1  ;;  %5832 = vmatprep.subr.bf16.mxu1 %v6139_v59  ;;  %v5213_v11 = vpop.f32.mrf.mxu0 }
  0xf4   : > { %v7407_v4 = vadd.f32 %v5212_v54, %v953_v32  ;;  %5561 = vmatpush3.bf16.msra.mxu0 %v6138_v37  ;;  %v7435_v18 = vor.u32 %v3069_v63, %v3065_v5  ;;  %v6155_v32 = vld [vmem:[%s7846_s4 + $0x590] sm:$0xff]   ;;  %v6164_v63 = vld [vmem:[%s7846_s4 + $0x5c0] sm:$0xff]  }
  0xf5   : > { %v5681_v56 = vpop.f32.mrf.mxu1  ;;  %v5214_v45 = vpop.f32.mrf.mxu0  ;;  %5562 = vmatprep.subr.bf16.mxu0 %v6141_v26 }
  0xf6   : > { %5833 = vmatpush3.bf16.msra.mxu1 %v6139_v59  ;;  %v5215_v47 = vadd.f32 %v5214_v45, %v5213_v11  ;;  %v6161_v11 = vld [vmem:[%s7846_s4 + $0x5c8] sm:$0xff]   ;;  %v7472_v45 = vcombine.low %v7307_v16, %v7314_v1 }
  0xf7   : > { %5834 = vmatprep.subr.bf16.mxu1 %v6143_v43  ;;  %v956_v51 = vpop.f32.mrf.mxu1  ;;  %v5216_v23 = vpop.f32.mrf.mxu0  ;;  %3369 = vmatmul.mubr.bf16.gmra.mxu0 %v7399_v40 }
  0xf8   : > { %v7427_v59 = vadd.f32 %v5215_v47, %v956_v51  ;;  %5563 = vmatpush3.bf16.msra.mxu0 %v6142_v60  ;;  %3376 = vmatprep.mubr.bf16.mxu0 %v7413_v19  ;;  %v6156_v60 = vld [vmem:[%s7846_s4 + $0x550] sm:$0xff]  }
  0xf9   : > { %5827 = vmatmul.mubr.bf16.gmra.mxu1 %v7395_v52  ;;  %v5217_v35 = vpop.f32.mrf.mxu0  ;;  %5564 = vmatprep.subr.bf16.mxu0 %v6144_v17  ;;  %v5684_v58 = vpop.f32.mrf.mxu1 }
  0xfa   : > { %5835 = vmatpush3.bf16.msra.mxu1 %v6143_v43  ;;  %v5218_v0 = vadd.f32 %v5217_v35, %v5216_v23  ;;  %5846 = vmatprep.mubr.bf16.mxu1 %v5062_v36  ;;  %v7455_v43 = vcombine.low %v7433_v6, %v7435_v18  ;;  %v6162_v23 = vld [vmem:[%s7846_s4 + $0x580] sm:$0xff]  }
  0xfb   : > { %5836 = vmatprep.subr.bf16.mxu1 %v6146_v42  ;;  %v5219_v62 = vpop.f32.mrf.mxu0  ;;  %v969_v54 = vpop.f32.mrf.mxu1 }
  0xfc   : > { %v7445_v37 = vadd.f32 %v7360_v34, %v5218_v0  ;;  %5565 = vmatpush3.bf16.msra.mxu0 %v6145_v7  ;;  %v5061_v7 = vcombine.low %v7280_v55, %v7329_v8  ;;  %v489_v0 = vld [vmem:[%s7165_s20 + $0x44] sm:$0x1]  ;;  %v6167_v55 = vld [vmem:[%s7846_s4 + $0x6b8] sm:$0xff]  }
  0xfd   : > { %v5220_v26 = vpop.f32.mrf.mxu0  ;;  %5566 = vmatprep.subr.bf16.mxu0 %v6150_v12  ;;  %v5685_v2 = vpop.f32.mrf.mxu1  ;;  %v7489_v12 = vld [vmem:[%s7165_s20 + $0x40] sm:$0xf] }
  0xfe   : > { %5837 = vmatpush3.bf16.msra.mxu1 %v6146_v42  ;;  %v5221_v57 = vadd.f32 %v5220_v26, %v5219_v62  ;;  %v5065_v26 = vcombine.low %v3088_v24, %v3089_v30 }
  0xff   : > { %5838 = vmatprep.subr.bf16.mxu1 %v6154_v31  ;;  %v5222_v34 = vpop.f32.mrf.mxu0  ;;  %3377 = vmatmul.mubr.bf16.gmra.mxu0 %v7439_v20  ;;  %v972_v36 = vpop.f32.mrf.mxu1 }
 0x100   : > { %v7458_v50 = vadd.f32 %v5681_v56, %v5221_v57  ;;  %5567 = vmatpush3.bf16.msra.mxu0 %v6151_v25  ;;  %3384 = vmatprep.mubr.bf16.mxu0 %v7455_v43  ;;  %v6159_v56 = vld [vmem:[%s7846_s4 + $0x588] sm:$0xff]   ;;  %v6163_v25 = vld [vmem:[%s7846_s4 + $0x540] sm:$0xff]   ;;  %v7508_v57 = vcombine.low %v7489_v12, %v489_v0 }
 0x101   : > { %v5223_v17 = vpop.f32.mrf.mxu0  ;;  %5568 = vmatprep.subr.bf16.mxu0 %v6155_v32 }
 0x102   : > { %5839 = vmatpush3.bf16.msra.mxu1 %v6154_v31  ;;  %v5224_v42 = vadd.f32 %v5223_v17, %v5222_v34  ;;  %v5060_v34 = vcombine.low %v7186_v15, %v7222_v48  ;;  %v6168_v15 = vld [vmem:[%s7846_s4 + $0x670] sm:$0xff]   ;;  %v5064_v48 = vcombine.low %v7331_v9, %v7381_v41  ;;  %v3093_v17 = vrot.slane %v7508_v57, 1 }
 0x103   : > { %5840 = vmatprep.subr.bf16.mxu1 %v6157_v13  ;;  %v5225_v5 = vpop.f32.mrf.mxu0  ;;  %v6169_v9 = vld [vmem:[%s7846_s4 + $0x630] sm:$0xff]  }
 0x104   : > { %v7474_v51 = vadd.f32 %v5224_v42, %v969_v54  ;;  %5569 = vmatpush3.bf16.msra.mxu0 %v6156_v60 }
 0x105   : > { %v5226_v47 = vpop.f32.mrf.mxu0  ;;  %5570 = vmatprep.subr.bf16.mxu0 %v6159_v56 }
 0x106   : > { %5841 = vmatpush3.bf16.msra.mxu1 %v6157_v13  ;;  %v5227_v31 = vadd.f32 %v5226_v47, %v5225_v5  ;;  %v6165_v13 = vld [vmem:[%s7846_s4 + $0x678] sm:$0xff]   ;;  %v5063_v47 = vcombine.low %v7228_v46, %v7277_v3  ;;  %v5067_v46 = vcombine.low %v7383_v44, %v7433_v6  ;;  %v3072_v3 = vshrl.u32 %v7508_v57, 16 }
 0x107   : > { %5842 = vmatprep.subr.bf16.mxu1 %v6161_v11  ;;  %v5228_v35 = vpop.f32.mrf.mxu0  ;;  %3385 = vmatmul.mubr.bf16.gmra.mxu0 %v7472_v45  ;;  %v6182_v44 = vld [vmem:[%s7846_s4 + $0x698] sm:$0xff]  }
 0x108   : > { %v7492_v62 = vadd.f32 %v5227_v31, %v972_v36  ;;  %5571 = vmatpush3.bf16.msra.mxu0 %v6160_v22  ;;  %3733 = vmatprep.mubr.bf16.mxu0 %v5061_v7  ;;  %v5071_v22 = vcombine.low %v3092_v39, %v3093_v17  ;;  %v6177_v7 = vld [vmem:[%s7846_s4 + $0x6a0] sm:$0xff]  }
 0x109   : > { %v5229_v8 = vpop.f32.mrf.mxu0  ;;  %5572 = vmatprep.subr.bf16.mxu0 %v6162_v23  ;;  %v6173_v23 = vld [vmem:[%s7846_s4 + $0x628] sm:$0xff]  }
 0x10a   : > { %5843 = vmatpush3.bf16.msra.mxu1 %v6161_v11  ;;  %v5230_v32 = vadd.f32 %v5229_v8, %v5228_v35  ;;  %v6166_v11 = vld [vmem:[%s7846_s4 + $0x638] sm:$0xff]  }
 0x10b   : > { %5844 = vmatprep.subr.bf16.mxu1 %v6164_v63  ;;  %v5231_v54 = vpop.f32.mrf.mxu0 }
 0x10c   : > { %v7512_v60 = vadd.f32 %v5684_v58, %v5230_v32  ;;  %5573 = vmatpush3.bf16.msra.mxu0 %v6163_v25  ;;  %v5068_v58 = vcombine.low %v3090_v61, %v3091_v27  ;;  %v6172_v61 = vld [vmem:[%s7846_s4 + $0x668] sm:$0xff]   ;;  %v3074_v27 = vshll.u32 %v7508_v57, 16 }
 0x10d   : > { %v5232_v24 = vpop.f32.mrf.mxu0  ;;  %5610 = vmatprep.subr.bf16.mxu0 %v6165_v13  ;;  %v6176_v13 = vld [vmem:[%s7846_s4 + $0x620] sm:$0xff]  }
 0x10e   : > { %5845 = vmatpush3.bf16.msra.mxu1 %v6164_v63  ;;  %v5233_v10 = vadd.f32 %v5232_v24, %v5231_v54  ;;  %v3076_v39 = vrot.slane %v3074_v27, 1 }
 0x10f   : > { %5854 = vmatprep.subr.bf16.mxu1 %v6167_v55  ;;  %v5262_v56 = vpop.f32.mrf.mxu0  ;;  %3734 = vmatmul.mubr.bf16.vlgmr.msra.gmra.mxu0 %v5060_v34 }
 0x110   : > { %v7530_v42 = vadd.f32 %v5685_v2, %v5233_v10  ;;  %5611 = vmatpush3.bf16.msra.mxu0 %v6166_v11  ;;  %3741 = vmatprep.mubr.bf16.mxu0 %v5064_v48 }
 0x111   : > { %v5704_v30 = vpop.f32.mrf.mxu1  ;;  %5847 = vmatmul.mubr.bf16.vlgmr.msra.gmra.mxu1 %v5065_v26  ;;  %v5263_v21 = vpop.f32.mrf.mxu0  ;;  %5612 = vmatprep.subr.bf16.mxu0 %v6168_v15  ;;  %v7572_v26 = vor.u32 %v3076_v39, %v3072_v3  ;;  %v6180_v15 = vld [vmem:[%s7846_s4 + $0x618] sm:$0xff]  }
 0x112   : > { %5855 = vmatpush3.bf16.msra.mxu1 %v6167_v55  ;;  %v5264_v41 = vadd.f32 %v5263_v21, %v5262_v56  ;;  %5850 = vmatprep.mubr.bf16.mxu1 %v5068_v58 }
 0x113   : > { %v1310_v5 = vpop.f32.mrf.mxu1  ;;  %5856 = vmatprep.subr.bf16.mxu1 %v6170_v38  ;;  %v5265_v63 = vpop.f32.mrf.mxu0 }
 0x114   : > { %v1311_v36 = vadd.f32 %v5264_v41, %v1310_v5  ;;  %5613 = vmatpush3.bf16.msra.mxu0 %v6169_v9  ;;  %v6184_v5 = vld [vmem:[%s7846_s4 + $0x610] sm:$0xff]   ;;  %v6189_v9 = vld [vmem:[%s7846_s4 + $0x688] sm:$0xff]   ;;  %v5069_v41 = vcombine.low %v7314_v1, %v7489_v12 }
 0x115   : > { %v5705_v2 = vpop.f32.mrf.mxu1  ;;  %v5266_v31 = vpop.f32.mrf.mxu0  ;;  %5614 = vmatprep.subr.bf16.mxu0 %v6172_v61 }
 0x116   : > { %5857 = vmatpush3.bf16.msra.mxu1 %v6170_v38  ;;  %v7561_v0 = vadd.f32 %v1311_v36, %v7407_v4  ;;  %v5267_v25 = vadd.f32 %v5266_v31, %v5265_v63  ;;  %v6179_v4 = vld [vmem:[%s7846_s4 + $0x658] sm:$0xff]   ;;  %v5066_v38 = vcombine.low %v7283_v14, %v7307_v16  ;;  %v5070_v14 = vcombine.low %v7435_v18, %v7572_v26  ;;  %v6190_v36 = vld [vmem:[%s7846_s4 + $0x640] sm:$0xff]   ;;  %v7623_v31 = vld [vmem:[%s7165_s20 + $0x48] sm:$0xf] }
 0x117   : > { %5858 = vmatprep.subr.bf16.mxu1 %v6174_v28  ;;  %v1313_v35 = vpop.f32.mrf.mxu1  ;;  %v5268_v55 = vpop.f32.mrf.mxu0  ;;  %3742 = vmatmul.mubr.bf16.gmra.mxu0 %v5063_v47 }
 0x118   : > { %v1314_v8 = vadd.f32 %v5267_v25, %v1313_v35  ;;  %5615 = vmatpush3.bf16.msra.mxu0 %v6173_v23  ;;  %3749 = vmatprep.mubr.bf16.mxu0 %v5067_v46  ;;  %v491_v35 = vld [vmem:[%s7165_s20 + $0x4c] sm:$0x1]  ;;  %v6191_v46 = vld [vmem:[%s7846_s4 + $0x600] sm:$0xff]   ;;  %s4454_s20 = sshll.u32 %s7873_s24, 3 }
 0x119   : > { %5851 = vmatmul.mubr.bf16.gmra.mxu1 %v5071_v22  ;;  %v5269_v6 = vpop.f32.mrf.mxu0  ;;  %5616 = vmatprep.subr.bf16.mxu0 %v6175_v49  ;;  %v7577_v54 = vpop.f32.mrf.mxu1  ;;  %v6188_v22 = vld [vmem:[%s7846_s4 + $0x608] sm:$0xff]   ;;  %v4927_v25 = vcombine.low %v7623_v31, %v491_v35  ;;  %s7733_s15 = sadd.s32 %s4455_s13, %s4454_s20 }
 0x11a   : > { %5859 = vmatpush3.bf16.msra.mxu1 %v6174_v28  ;;  %v7575_v32 = vadd.f32 %v1314_v8, %v7427_v59  ;;  %v5270_v34 = vadd.f32 %v5269_v6, %v5268_v55  ;;  %5870 = vmatprep.mubr.bf16.mxu1 %v7324_v29  ;;  %v6185_v59 = vld [vmem:[%s7846_s4 + $0x690] sm:$0xff]   ;;  %s4456_s14 = sshll.u32 %s7733_s15, 2  ;;  %s4459_s22 = sshll.u32 %s7733_s15, 3 }
 0x11b   : > { %5860 = vmatprep.subr.bf16.mxu1 %v6177_v7  ;;  %v5271_v11 = vpop.f32.mrf.mxu0  ;;  %v1326_v10 = vpop.f32.mrf.mxu1  ;;  %v6183_v29 = vld [vmem:[%s7846_s4 + $0x650] sm:$0xff]   ;;  %s7742_s9 = scalar_lea.vmem %s7845_s3, %s4456_s14  ;;  %s7780_s8 = scalar_lea.vmem %s7849_s7, %s4459_s22 }
 0x11c   : > { %v1319_v24 = vadd.f32 %v5704_v30, %v5270_v34  ;;  %5617 = vmatpush3.bf16.msra.mxu0 %v6176_v13 }
 0x11d   : > { %v5272_v48 = vpop.f32.mrf.mxu0  ;;  %5618 = vmatprep.subr.bf16.mxu0 %v6179_v4  ;;  %v5709_v18 = vpop.f32.mrf.mxu1 }
 0x11e   : > { %5861 = vmatpush3.bf16.msra.mxu1 %v6177_v7  ;;  %v7594_v16 = vadd.f32 %v1319_v24, %v7445_v37  ;;  %v5273_v30 = vadd.f32 %v5272_v48, %v5271_v11  ;;  %v6187_v37 = vld [vmem:[%s7846_s4 + $0x648] sm:$0xff]  }
 0x11f   : > { %5862 = vmatprep.subr.bf16.mxu1 %v6182_v44  ;;  %v5274_v58 = vpop.f32.mrf.mxu0  ;;  %3750 = vmatmul.mubr.bf16.gmra.mxu0 %v5066_v38  ;;  %v1329_v47 = vpop.f32.mrf.mxu1 }
 0x120   : > { %v1322_v56 = vadd.f32 %v5705_v2, %v5273_v30  ;;  %5619 = vmatpush3.bf16.msra.mxu0 %v6180_v15  ;;  %3757 = vmatprep.mubr.bf16.mxu0 %v5070_v14 }
 0x121   : > { %v5275_v28 = vpop.f32.mrf.mxu0  ;;  %5620 = vmatprep.subr.bf16.mxu0 %v6183_v29 }
 0x122   : > { %5863 = vmatpush3.bf16.msra.mxu1 %v6182_v44  ;;  %v7606_v21 = vadd.f32 %v1322_v56, %v7458_v50  ;;  %v5276_v61 = vadd.f32 %v5275_v28, %v5274_v58  ;;  %v6192_v50 = vld [vmem:[%s7846_s4 + $0x680] sm:$0xff]  }
 0x123   : > { %5864 = vmatprep.subr.bf16.mxu1 %v6185_v59  ;;  %v5277_v27 = vpop.f32.mrf.mxu0 }
 0x124   : > { %v1327_v2 = vadd.f32 %v5276_v61, %v1326_v10  ;;  %5621 = vmatpush3.bf16.msra.mxu0 %v6184_v5  ;;  %v3079_v10 = vshrl.u32 %v4927_v25, 16 }
 0x125   : > { %v5278_v63 = vpop.f32.mrf.mxu0  ;;  %5622 = vmatprep.subr.bf16.mxu0 %v6187_v37 }
 0x126   : > { %5865 = vmatpush3.bf16.msra.mxu1 %v6185_v59  ;;  %v7620_v1 = vadd.f32 %v1327_v2, %v7474_v51  ;;  %v5279_v23 = vadd.f32 %v5278_v63, %v5277_v27  ;;  %v5144_v63 = vcombine.low %v7489_v12, %v7623_v31 }
 0x127   : > { %5866 = vmatprep.subr.bf16.mxu1 %v6189_v9  ;;  %v5280_v7 = vpop.f32.mrf.mxu0  ;;  %3758 = vmatmul.mubr.bf16.gmra.mxu0 %v5069_v41 }
 0x128   : > { %v1330_v49 = vadd.f32 %v5279_v23, %v1329_v47  ;;  %5623 = vmatpush3.bf16.msra.mxu0 %v6188_v22  ;;  %4088 = vmatprep.mubr.bf16.mxu0 %v7358_v53  ;;  %v3094_v53 = vrot.slane %v4927_v25, 1 }
 0x129   : > { %v5281_v3 = vpop.f32.mrf.mxu0  ;;  %5624 = vmatprep.subr.bf16.mxu0 %v6190_v36 }
 0x12a   : > { %5867 = vmatpush3.bf16.msra.mxu1 %v6189_v9  ;;  %v7631_v51 = vadd.f32 %v1330_v49, %v7492_v62  ;;  %v5282_v39 = vadd.f32 %v5281_v3, %v5280_v7  ;;  %v5146_v59 = vcombine.low %v3093_v17, %v3094_v53 }
 0x12b   : > { %5868 = vmatprep.subr.bf16.mxu1 %v6192_v50  ;;  %v5283_v55 = vpop.f32.mrf.mxu0 }
 0x12c   : > { %v1335_v8 = vadd.f32 %v7577_v54, %v5282_v39  ;;  %5625 = vmatpush3.bf16.msra.mxu0 %v6191_v46  ;;  %v3081_v54 = vshll.u32 %v4927_v25, 16 }
 0x12d   : > { %v5284_v13 = vpop.f32.mrf.mxu0 }
 0x12e   : > { %5869 = vmatpush3.bf16.msra.mxu1 %v6192_v50  ;;  %v7636_v44 = vadd.f32 %v1335_v8, %v7512_v60  ;;  %v5285_v6 = vadd.f32 %v5284_v13, %v5283_v55  ;;  %v3083_v29 = vrot.slane %v3081_v54, 1 }
 0x12f   : > { %v5314_v34 = vpop.f32.mrf.mxu0  ;;  %4089 = vmatmul.mubr.bf16.vlgmr.msra.gmra.mxu0 %v7399_v40 }
 0x130   : > { %v1338_v62 = vadd.f32 %v5709_v18, %v5285_v6  ;;  %4096 = vmatprep.mubr.bf16.mxu0 %v7413_v19 }
 0x131   : > { %v5728_v4 = vpop.f32.mrf.mxu1  ;;  %5871 = vmatmul.mubr.bf16.vlgmr.msra.gmra.mxu1 %v7370_v33  ;;  %v5315_v38 = vpop.f32.mrf.mxu0 }
 0x132   : > { %5874 = vmatprep.mubr.bf16.mxu1 %v7395_v52  ;;  %v1356_v24 = vadd.f32 %v1338_v62, %v7530_v42  ;;  %v5316_v60 = vadd.f32 %v5315_v38, %v5314_v34  ;;  %v3084_v42 = vor.u32 %v3083_v29, %v3079_v10 }
 0x133   : > { %v1665_v11 = vpop.f32.mrf.mxu1  ;;  %v5317_v33 = vpop.f32.mrf.mxu0 }
 0x134   : > { %v1666_v48 = vadd.f32 %v5316_v60, %v1665_v11  ;;  %v5145_v18 = vcombine.low %v7572_v26, %v3084_v42 }
 0x135   : > { %v5729_v15 = vpop.f32.mrf.mxu1  ;;  %v5318_v40 = vpop.f32.mrf.mxu0 }
 0x136   : > { %v1704_v52 = vadd.f32 %v1666_v48, %v7561_v0  ;;  %v5319_v30 = vadd.f32 %v5318_v40, %v5317_v33 }
 0x137   : > { %v1668_v14 = vpop.f32.mrf.mxu1  ;;  %v5320_v19 = vpop.f32.mrf.mxu0  ;;  %4097 = vmatmul.mubr.bf16.gmra.mxu0 %v7439_v20 }
 0x138   : > { %v1669_v58 = vadd.f32 %v5319_v30, %v1668_v14  ;;  %4104 = vmatprep.mubr.bf16.mxu0 %v7455_v43 }
 0x139   : > { %5875 = vmatmul.mubr.bf16.gmra.mxu1 %v5146_v59  ;;  %v5321_v56 = vpop.f32.mrf.mxu0  ;;  %v5732_v57 = vpop.f32.mrf.mxu1 }
 0x13a   : > { %v1705_v17 = vadd.f32 %v1669_v58, %v7575_v32  ;;  %v5322_v5 = vadd.f32 %v5321_v56, %v5320_v19 }
 0x13b   : > { %v5323_v9 = vpop.f32.mrf.mxu0  ;;  %v1681_v0 = vpop.f32.mrf.mxu1 }
 0x13c   : > { %v1674_v28 = vadd.f32 %v5728_v4, %v5322_v5 }
 0x13d   : > { %v5324_v37 = vpop.f32.mrf.mxu0  ;;  %v5733_v2 = vpop.f32.mrf.mxu1 }
 0x13e   : > { %v1706_v61 = vadd.f32 %v1674_v28, %v7594_v16  ;;  %v5325_v27 = vadd.f32 %v5324_v37, %v5323_v9 }
 0x13f   : > { %v5326_v41 = vpop.f32.mrf.mxu0  ;;  %4105 = vmatmul.mubr.bf16.gmra.mxu0 %v7472_v45  ;;  %v1684_v36 = vpop.f32.mrf.mxu1 }
 0x140   : > { %v1677_v20 = vadd.f32 %v5729_v15, %v5325_v27  ;;  %4112 = vmatprep.mubr.bf16.mxu0 %v5145_v18 }
 0x141   : > { %v5327_v43 = vpop.f32.mrf.mxu0 }
 0x142   : > { %v1707_v22 = vadd.f32 %v1677_v20, %v7606_v21  ;;  %v5328_v32 = vadd.f32 %v5327_v43, %v5326_v41 }
 0x143   : > { %v5329_v50 = vpop.f32.mrf.mxu0 }
 0x144   : > { %v1682_v26 = vadd.f32 %v5328_v32, %v1681_v0 }
 0x145   : > { %v5330_v47 = vpop.f32.mrf.mxu0 }
 0x146   : > { %v1708_v16 = vadd.f32 %v1682_v26, %v7620_v1  ;;  %v5331_v23 = vadd.f32 %v5330_v47, %v5329_v50 }
 0x147   : > { %v5332_v7 = vpop.f32.mrf.mxu0  ;;  %4113 = vmatmul.mubr.bf16.gmra.mxu0 %v5144_v63 }
 0x148   : > { %v1685_v45 = vadd.f32 %v5331_v23, %v1684_v36 }
 0x149   : > { %v5333_v35 = vpop.f32.mrf.mxu0 }
 0x14a   : > { %v1709_v49 = vadd.f32 %v1685_v45, %v7631_v51  ;;  %v5334_v46 = vadd.f32 %v5333_v35, %v5332_v7 }
 0x14b   : > { %v5335_v3 = vpop.f32.mrf.mxu0 }
 0x14c   : > { %v1690_v21 = vadd.f32 %v5732_v57, %v5334_v46 }
 0x14d   : > { %v5336_v39 = vpop.f32.mrf.mxu0 }
 0x14e   : > { %v1710_v25 = vadd.f32 %v1690_v21, %v7636_v44  ;;  %v5337_v55 = vadd.f32 %v5336_v39, %v5335_v3 }
 0x14f   : > { %v5366_v31 = vpop.f32.mrf.mxu0 }
 0x150   : > { %v1693_v8 = vadd.f32 %v5733_v2, %v5337_v55 }
 0x151   : > { %v5752_v12 = vpop.f32.mrf.mxu1  ;;  %v5367_v6 = vpop.f32.mrf.mxu0 }
 0x152   : > { %v1711_v1 = vadd.f32 %v1693_v8, %v1356_v24  ;;  %v5368_v4 = vadd.f32 %v5367_v6, %v5366_v31 }
 0x153   : > { %v2182_v13 = vpop.f32.mrf.mxu1  ;;  %v5369_v34 = vpop.f32.mrf.mxu0 }
 0x154   : > { %v2183_v62 = vadd.f32 %v5368_v4, %v2182_v13 }
 0x155   : > { %v5753_v53 = vpop.f32.mrf.mxu1  ;;  %v5370_v11 = vpop.f32.mrf.mxu0 }
 0x156   : > { %v2221_v51 = vadd.f32 %v2183_v62, %v1704_v52  ;;  %v5371_v38 = vadd.f32 %v5370_v11, %v5369_v34 }
 0x157   : > { %v2185_v54 = vpop.f32.mrf.mxu1  ;;  %v5372_v60 = vpop.f32.mrf.mxu0 }
 0x158   : > { %v2186_v15 = vadd.f32 %v5371_v38, %v2185_v54 }
 0x159   : > { %v5373_v59 = vpop.f32.mrf.mxu0  ;;  %v5756_v33 = vpop.f32.mrf.mxu1 }
 0x15a   : > { %v2222_v44 = vadd.f32 %v2186_v15, %v1705_v17  ;;  %v5374_v48 = vadd.f32 %v5373_v59, %v5372_v60 }
 0x15b   : > { %v5375_v10 = vpop.f32.mrf.mxu0  ;;  %v2198_v14 = vpop.f32.mrf.mxu1 }
 0x15c   : > { %v2191_v29 = vadd.f32 %v5752_v12, %v5374_v48 }
 0x15d   : > { %v5376_v40 = vpop.f32.mrf.mxu0  ;;  %v5757_v56 = vpop.f32.mrf.mxu1 }
 0x15e   : > { %v2223_v30 = vadd.f32 %v2191_v29, %v1706_v61  ;;  %v5377_v24 = vadd.f32 %v5376_v40, %v5375_v10 }
 0x15f   : > { %v5378_v19 = vpop.f32.mrf.mxu0  ;;  %v2201_v18 = vpop.f32.mrf.mxu1 }
 0x160   : > { %v2194_v58 = vadd.f32 %v5753_v53, %v5377_v24 }
 0x161   : > { %v5379_v42 = vpop.f32.mrf.mxu0 }
 0x162   : > { %v2224_v57 = vadd.f32 %v2194_v58, %v1707_v22  ;;  %v5380_v5 = vadd.f32 %v5379_v42, %v5378_v19 }
 0x163   : > { %v5381_v52 = vpop.f32.mrf.mxu0 }
 0x164   : > { %v2199_v9 = vadd.f32 %v5380_v5, %v2198_v14 }
 0x165   : > { %v5382_v28 = vpop.f32.mrf.mxu0 }
 0x166   : > { %v2225_v37 = vadd.f32 %v2199_v9, %v1708_v16  ;;  %v5383_v0 = vadd.f32 %v5382_v28, %v5381_v52 }
 0x167   : > { %v5384_v17 = vpop.f32.mrf.mxu0 }
 0x168   : > { %v2202_v27 = vadd.f32 %v5383_v0, %v2201_v18 }
 0x169   : > { %v5385_v41 = vpop.f32.mrf.mxu0 }
 0x16a   : > { %v2226_v20 = vadd.f32 %v2202_v27, %v1709_v49  ;;  %v5386_v43 = vadd.f32 %v5385_v41, %v5384_v17 }
 0x16b   : > { %v5387_v2 = vpop.f32.mrf.mxu0 }
 0x16c   : > { %v2207_v61 = vadd.f32 %v5756_v33, %v5386_v43 }
 0x16d   : > { %v5388_v32 = vpop.f32.mrf.mxu0 }
 0x16e   : > { %v2227_v50 = vadd.f32 %v2207_v61, %v1710_v25  ;;  %v5389_v63 = vadd.f32 %v5388_v32, %v5387_v2 }
 0x16f   : > { %v5418_v47 = vpop.f32.mrf.mxu0 }
 0x170   : > { %v2210_v22 = vadd.f32 %v5757_v56, %v5389_v63 }
 0x171   : > { %v5776_v26 = vpop.f32.mrf.mxu1  ;;  %v5419_v23 = vpop.f32.mrf.mxu0 }
 0x172   : > { %v2228_v7 = vadd.f32 %v2210_v22, %v1711_v1  ;;  %v5420_v45 = vadd.f32 %v5419_v23, %v5418_v47 }
 0x173   : > { %v2555_v36 = vpop.f32.mrf.mxu1  ;;  %v5421_v16 = vpop.f32.mrf.mxu0 }
 0x174   : > { %v2556_v46 = vadd.f32 %v5420_v45, %v2555_v36 }
 0x175   : > { %v5777_v35 = vpop.f32.mrf.mxu1  ;;  %v5422_v3 = vpop.f32.mrf.mxu0 }
 0x176   : > { %v2594_v39 = vadd.f32 %v2556_v46, %v2221_v51  ;;  %v5423_v49 = vadd.f32 %v5422_v3, %v5421_v16 }
 0x177   : > { %v2558_v21 = vpop.f32.mrf.mxu1  ;;  %v5424_v55 = vpop.f32.mrf.mxu0 }
 0x178   : > { %v2559_v12 = vadd.f32 %v5423_v49, %v2558_v21 }
 0x179   : > { %v5425_v31 = vpop.f32.mrf.mxu0  ;;  %v5780_v8 = vpop.f32.mrf.mxu1 }
 0x17a   : > { %v2595_v25 = vadd.f32 %v2559_v12, %v2222_v44  ;;  %v5426_v13 = vadd.f32 %v5425_v31, %v5424_v55 }
 0x17b   : > { %v5427_v6 = vpop.f32.mrf.mxu0  ;;  %v2571_v34 = vpop.f32.mrf.mxu1 }
 0x17c   : > { %v2564_v4 = vadd.f32 %v5776_v26, %v5426_v13 }
 0x17d   : > { %v5428_v53 = vpop.f32.mrf.mxu0  ;;  %v5781_v60 = vpop.f32.mrf.mxu1 }
 0x17e   : > { %v2596_v62 = vadd.f32 %v2564_v4, %v2223_v30  ;;  %v5429_v1 = vadd.f32 %v5428_v53, %v5427_v6 }
 0x17f   : > { %v5430_v11 = vpop.f32.mrf.mxu0  ;;  %v2574_v10 = vpop.f32.mrf.mxu1 }
 0x180   : > { %v2567_v54 = vadd.f32 %v5777_v35, %v5429_v1 }
 0x181   : > { %v5431_v38 = vpop.f32.mrf.mxu0 }
 0x182   : > { %v2597_v15 = vadd.f32 %v2567_v54, %v2224_v57  ;;  %v5432_v59 = vadd.f32 %v5431_v38, %v5430_v11 }
 0x183   : > { %v5433_v51 = vpop.f32.mrf.mxu0 }
 0x184   : > { %v2572_v33 = vadd.f32 %v5432_v59, %v2571_v34 }
 0x185   : > { %v5434_v48 = vpop.f32.mrf.mxu0 }
 0x186   : > { %v2598_v29 = vadd.f32 %v2572_v33, %v2225_v37  ;;  %v5435_v40 = vadd.f32 %v5434_v48, %v5433_v51 }
 0x187   : > { %v5436_v44 = vpop.f32.mrf.mxu0 }
 0x188   : > { %v2575_v14 = vadd.f32 %v5435_v40, %v2574_v10 }
 0x189   : > { %v5437_v24 = vpop.f32.mrf.mxu0 }
 0x18a   : > { %v2599_v19 = vadd.f32 %v2575_v14, %v2226_v20  ;;  %v5438_v58 = vadd.f32 %v5437_v24, %v5436_v44 }
 0x18b   : > { %v5439_v42 = vpop.f32.mrf.mxu0 }
 0x18c   : > { %v2580_v30 = vadd.f32 %v5780_v8, %v5438_v58 }
 0x18d   : > { %v5440_v56 = vpop.f32.mrf.mxu0 }
 0x18e   : > { %v2600_v5 = vadd.f32 %v2580_v30, %v2227_v50  ;;  %v5441_v52 = vadd.f32 %v5440_v56, %v5439_v42 }
 0x18f   : > { %v5470_v28 = vpop.f32.mrf.mxu0 }
 0x190   : > { %v2583_v57 = vadd.f32 %v5781_v60, %v5441_v52 }
 0x191   : > { %v5800_v9 = vpop.f32.mrf.mxu1  ;;  %v5471_v0 = vpop.f32.mrf.mxu0 }
 0x192   : > { %v2601_v17 = vadd.f32 %v2583_v57, %v2228_v7  ;;  %v5472_v27 = vadd.f32 %v5471_v0, %v5470_v28 }
 0x193   : > { %v2910_v18 = vpop.f32.mrf.mxu1  ;;  %v5473_v37 = vpop.f32.mrf.mxu0 }
 0x194   : > { %v2911_v43 = vadd.f32 %v5472_v27, %v2910_v18 }
 0x195   : > { %v5801_v41 = vpop.f32.mrf.mxu1  ;;  %v5474_v2 = vpop.f32.mrf.mxu0 }
 0x196   : > { %v7658_v32 = vadd.f32 %v2911_v43, %v2594_v39  ;;  %v5475_v20 = vadd.f32 %v5474_v2, %v5473_v37 }
 0x197   : > { %v2913_v61 = vpop.f32.mrf.mxu1  ;;  %v5476_v63 = vpop.f32.mrf.mxu0 }
 0x198   : > { %v2914_v26 = vadd.f32 %v5475_v20, %v2913_v61 }
 0x199   : > { %v5477_v47 = vpop.f32.mrf.mxu0  ;;  %v5804_v50 = vpop.f32.mrf.mxu1 }
 0x19a   : > { %v7660_v22 = vadd.f32 %v2914_v26, %v2595_v25  ;;  %v5478_v36 = vadd.f32 %v5477_v47, %v5476_v63 }
 0x19b   : > { %v5479_v23 = vpop.f32.mrf.mxu0  ;;  %v2926_v7 = vpop.f32.mrf.mxu1 }
 0x19c   : > { %v2919_v45 = vadd.f32 %v5800_v9, %v5478_v36 }
 0x19d   : > { %v5480_v35 = vpop.f32.mrf.mxu0  ;;  %v5805_v39 = vpop.f32.mrf.mxu1 }
 0x19e   : > { %v7662_v16 = vadd.f32 %v2919_v45, %v2596_v62  ;;  %v5481_v46 = vadd.f32 %v5480_v35, %v5479_v23 }
 0x19f   : > { %v5482_v3 = vpop.f32.mrf.mxu0  ;;  %v2929_v25 = vpop.f32.mrf.mxu1 }
 0x1a0   : > { %v2922_v21 = vadd.f32 %v5801_v41, %v5481_v46 }
 0x1a1   : > { %v5483_v49 = vpop.f32.mrf.mxu0 }
 0x1a2   : > { %v7664_v55 = vadd.f32 %v2922_v21, %v2597_v15  ;;  %v5484_v12 = vadd.f32 %v5483_v49, %v5482_v3 }
 0x1a3   : > { %v5485_v31 = vpop.f32.mrf.mxu0 }
 0x1a4   : > { %v2927_v8 = vadd.f32 %v5484_v12, %v2926_v7 }
 0x1a5   : > { %v5486_v13 = vpop.f32.mrf.mxu0 }
 0x1a6   : > { %v7666_v6 = vadd.f32 %v2927_v8, %v2598_v29  ;;  %v5487_v4 = vadd.f32 %v5486_v13, %v5485_v31 }
 0x1a7   : > { %v5488_v53 = vpop.f32.mrf.mxu0 }
 0x1a8   : > { %v2930_v34 = vadd.f32 %v5487_v4, %v2929_v25 }
 0x1a9   : > { %v5489_v1 = vpop.f32.mrf.mxu0 }
 0x1aa   : > { %v7668_v62 = vadd.f32 %v2930_v34, %v2599_v19  ;;  %v5490_v11 = vadd.f32 %v5489_v1, %v5488_v53 }
 0x1ab   : > { %v5491_v54 = vpop.f32.mrf.mxu0 }
 0x1ac   : > { %v2935_v38 = vadd.f32 %v5804_v50, %v5490_v11 }
 0x1ad   : > { %v5492_v60 = vpop.f32.mrf.mxu0 }
 0x1ae   : > { %v7670_v59 = vadd.f32 %v2935_v38, %v2600_v5  ;;  %v5493_v15 = vadd.f32 %v5492_v60, %v5491_v54 }
 0x1af   : > { %v5522_v51 = vpop.f32.mrf.mxu0 }
 0x1b0   : > { %v2938_v33 = vadd.f32 %v5805_v39, %v5493_v15 }
 0x1b1   : > { %v5523_v48 = vpop.f32.mrf.mxu0  ;;  %v7674_v44 = vpop.f32.mrf.mxu1 }
 0x1b2   : > { %v7672_v10 = vadd.f32 %v2938_v33, %v2601_v17  ;;  %v5524_v25 = vadd.f32 %v5523_v48, %v5522_v51 }
 0x1b3   : > { %v5525_v29 = vpop.f32.mrf.mxu0  ;;  %v3427_v19 = vpop.f32.mrf.mxu1 }
 0x1b4   : > { %7850 = vst [vmem:[#allocation3_spill] sm:$0xff] %v7672_v10  ;;  %v3428_v11 = vadd.f32 %v5524_v25, %v3427_v19 }
 0x1b5   : > { %v5526_v40 = vpop.f32.mrf.mxu0  ;;  %v7680_v30 = vpop.f32.mrf.mxu1 }
 0x1b6   : > { %v5527_v54 = vadd.f32 %v5526_v40, %v5525_v29  ;;  %v3466_v48 = vadd.f32 %v3428_v11, %v7658_v32  ;;  %v5176_v32 = vld [vmem:[%s7742_s9] sm:$0xff]  }
 0x1b7   : > { %v5528_v14 = vpop.f32.mrf.mxu0  ;;  %v3430_v52 = vpop.f32.mrf.mxu1 }
 0x1b9   : > { %v5529_v24 = vpop.f32.mrf.mxu0  ;;  %v7688_v28 = vpop.f32.mrf.mxu1 }
 0x1bb   : > { %v7676_v58 = vpop.f32.mrf.mxu0  ;;  %v7694_v0 = vpop.f32.mrf.mxu1 }
 0x1bd   : > { %v7678_v42 = vpop.f32.mrf.mxu0  ;;  %v7700_v41 = vpop.f32.mrf.mxu1 }
 0x1be   : > { %7851 = vst [vmem:[#allocation4_spill] sm:$0xff] %v7700_v41 }
 0x1bf   : > { %v7682_v56 = vpop.f32.mrf.mxu0  ;;  %v7704_v2 = vpop.f32.mrf.mxu1 }
 0x1c1   : > { %v7684_v5 = vpop.f32.mrf.mxu0 }
 0x1c3   : > { %v7686_v9 = vpop.f32.mrf.mxu0 }
 0x1c5   : > { %v7690_v57 = vpop.f32.mrf.mxu0 }
 0x1c7   : > { %v7692_v18 = vpop.f32.mrf.mxu0 }
 0x1c9   : > { %v7696_v17 = vpop.f32.mrf.mxu0 }
 0x1cb   : > { %v7698_v27 = vpop.f32.mrf.mxu0 }
 0x1cd   : > { %v7702_v37 = vpop.f32.mrf.mxu0 }
 0x1cf   : > { %v5574_v43 = vpop.f32.mrf.mxu0 }
 0x1d1   : > { %v5575_v61 = vpop.f32.mrf.mxu0  ;;  %v5848_v20 = vpop.f32.mrf.mxu1 }
 0x1d2   : > { %v5576_v53 = vadd.f32 %v5575_v61, %v5574_v43  ;;  %v3431_v43 = vadd.f32 %v5527_v54, %v3430_v52 }
 0x1d3   : > { %v5577_v63 = vpop.f32.mrf.mxu0  ;;  %v3800_v47 = vpop.f32.mrf.mxu1 }
 0x1d4   : > { %v3801_v15 = vadd.f32 %v5576_v53, %v3800_v47  ;;  %v3467_v53 = vadd.f32 %v3431_v43, %v7660_v22  ;;  %v5178_v43 = vunpack.c.h.bf16 %v5176_v32 }
 0x1d5   : > { %v5578_v26 = vpop.f32.mrf.mxu0  ;;  %v7706_v23 = vpop.f32.mrf.mxu1 }
 0x1d6   : > { %v5579_v33 = vadd.f32 %v5578_v26, %v5577_v63  ;;  %v3839_v25 = vadd.f32 %v3801_v15, %v3466_v48 }
 0x1d7   : > { %v5580_v50 = vpop.f32.mrf.mxu0  ;;  %v3803_v7 = vpop.f32.mrf.mxu1 }
 0x1d8   : > { %v3804_v41 = vadd.f32 %v5579_v33, %v3803_v7 }
 0x1d9   : > { %v5581_v36 = vpop.f32.mrf.mxu0  ;;  %v7710_v3 = vpop.f32.mrf.mxu1 }
 0x1da   : > { %v5582_v29 = vadd.f32 %v5581_v36, %v5580_v50 }
 0x1db   : > { %v5583_v45 = vpop.f32.mrf.mxu0  ;;  %v7717_v39 = vpop.f32.mrf.mxu1 }
 0x1dc   : > { %v3809_v7 = vadd.f32 %v5848_v20, %v5582_v29  ;;  %v5536_v20 = vadd.f32 %v7684_v5, %v7682_v56  ;;  %v5191_v5 = vld [vmem:[%s7742_s9 + $0x8] sm:$0xff]  }
 0x1dd   : > { %v5584_v35 = vpop.f32.mrf.mxu0  ;;  %v7724_v8 = vpop.f32.mrf.mxu1 }
 0x1de   : > { %7852 = vst [vmem:[#allocation5_spill] sm:$0xff] %v7724_v8  ;;  %v5530_v8 = vadd.f32 %v5529_v24, %v5528_v14  ;;  %v5533_v14 = vadd.f32 %v7678_v42, %v7676_v58  ;;  %v7751_v24 = vld [vmem:[%s7847_s5] ss:$0 sm:$0xff]  ;;  %v3840_v42 = vadd.f32 %v3804_v41, %v3467_v53 }
 0x1df   : > { %v7708_v46 = vpop.f32.mrf.mxu0  ;;  %v7731_v34 = vpop.f32.mrf.mxu1 }
 0x1e0   : > { %v3436_v63 = vadd.f32 %v7674_v44, %v5530_v8  ;;  %v7757_v44 = vld [vmem:[%s7848_s6] ss:$0 sm:$0xff]  ;;  %v5177_v8 = vunpack.c.l.bf16 %v5176_v32  ;;  %v3439_v22 = vadd.f32 %v7680_v30, %v5533_v14 }
 0x1e1   : > { %v7712_v21 = vpop.f32.mrf.mxu0 }
 0x1e3   : > { %v7715_v49 = vpop.f32.mrf.mxu0 }
 0x1e5   : > { %v7719_v12 = vpop.f32.mrf.mxu0 }
 0x1e7   : > { %v7722_v31 = vpop.f32.mrf.mxu0 }
 0x1e9   : > { %v7726_v13 = vpop.f32.mrf.mxu0 }
 0x1eb   : > { %v7729_v4 = vpop.f32.mrf.mxu0 }
 0x1ed   : > { %v7735_v1 = vpop.f32.mrf.mxu0 }
 0x1ef   : > { %v5626_v60 = vpop.f32.mrf.mxu0 }
 0x1f1   : > { %v5872_v38 = vpop.f32.mrf.mxu1  ;;  %v5627_v51 = vpop.f32.mrf.mxu0 }
 0x1f2   : > { %v5628_v61 = vadd.f32 %v5627_v51, %v5626_v60  ;;  %v3468_v60 = vadd.f32 %v3436_v63, %v7662_v16  ;;  %v5588_v16 = vadd.f32 %v7712_v21, %v7708_v46 }
 0x1f3   : > { %v4155_v10 = vpop.f32.mrf.mxu1  ;;  %v5629_v40 = vpop.f32.mrf.mxu0 }
 0x1f4   : > { %v4156_v47 = vadd.f32 %v5628_v61, %v4155_v10  ;;  %v5585_v10 = vadd.f32 %v5584_v35, %v5583_v45  ;;  %v3841_v51 = vadd.f32 %v3809_v7, %v3468_v60  ;;  %v5542_v7 = vadd.f32 %v7696_v17, %v7692_v18  ;;  %v5192_v60 = vld [vmem:[%s7742_s9 + $0x10] sm:$0xff]  }
 0x1f5   : > { %v5873_v19 = vpop.f32.mrf.mxu1  ;;  %v5630_v52 = vpop.f32.mrf.mxu0 }
 0x1f6   : > { %v4194_v50 = vadd.f32 %v4156_v47, %v3839_v25  ;;  %v5631_v36 = vadd.f32 %v5630_v52, %v5629_v40  ;;  %v3812_v48 = vadd.f32 %v7706_v23, %v5585_v10  ;;  %v3469_v40 = vadd.f32 %v3439_v22, %v7664_v55 }
 0x1f7   : > { %v4158_v26 = vpop.f32.mrf.mxu1  ;;  %v5632_v58 = vpop.f32.mrf.mxu0  ;;  %v3444_v25 = vadd.f32 %v5536_v20, %v7694_v0  ;;  %v5539_v47 = vadd.f32 %v7690_v57, %v7686_v9  ;;  %v5591_v55 = vadd.f32 %v7719_v12, %v7715_v49  ;;  %v5181_v0 = vunpack.c.l.bf16 %v5191_v5 }
 0x1f8   : > { %v4241_v11 = vmul.f32 %v7751_v24, %v4194_v50  ;;  %v4159_v54 = vadd.f32 %v5631_v36, %v4158_v26  ;;  %v3842_v32 = vadd.f32 %v3812_v48, %v3469_v40  ;;  %v3817_v9 = vadd.f32 %v5588_v16, %v7717_v39 }
 0x1f9   : > { %v5633_v45 = vpop.f32.mrf.mxu0  ;;  %v7764_v35 = vpop.f32.mrf.mxu1  ;;  %v3470_v50 = vadd.f32 %v3444_v25, %v7666_v6  ;;  %v3447_v36 = vadd.f32 %v5539_v47, %v7704_v2  ;;  %v3452_v20 = vadd.f32 %v7688_v28, %v5542_v7 }
 0x1fa   : > { %v4256_v15 = vadd.f32 %v7757_v44, %v4241_v11  ;;  %v4195_v33 = vadd.f32 %v4159_v54, %v3840_v42  ;;  %v5634_v41 = vadd.f32 %v5633_v45, %v5632_v58  ;;  %v5182_v11 = vunpack.c.h.bf16 %v5191_v5 }
 0x1fb   : > { %v5635_v61 = vpop.f32.mrf.mxu0  ;;  %v4171_v46 = vpop.f32.mrf.mxu1  ;;  %v3843_v54 = vadd.f32 %v3817_v9, %v3470_v50  ;;  %v3471_v22 = vadd.f32 %v3447_v36, %v7668_v62  ;;  %v5597_v62 = vadd.f32 %v7735_v1, %v7729_v4  ;;  %v3472_v16 = vadd.f32 %v3452_v20, %v7670_v59  ;;  %v7854_v1 = vld [vmem:[#allocation5_spill] sm:$0xff] }
 0x1fc   : > { %v4264_v30 = vadd.f32 %v5177_v8, %v4256_v15  ;;  %v4242_v29 = vmul.f32 %v7751_v24, %v4195_v33  ;;  %v4164_v56 = vadd.f32 %v5872_v38, %v5634_v41  ;;  %v3820_v8 = vadd.f32 %v5591_v55, %v7731_v34 }
 0x1fd   : > { %v5636_v23 = vpop.f32.mrf.mxu0  ;;  %v5877_v49 = vpop.f32.mrf.mxu1  ;;  %v5545_v34 = vadd.f32 %v7702_v37, %v7698_v27 }
 0x1fe   : > { %v4272_v21 = vmax.f32 %v4264_v30, 0.0  ;;  %v4257_v63 = vadd.f32 %v7757_v44, %v4242_v29  ;;  %v4196_v38 = vadd.f32 %v4164_v56, %v3841_v51  ;;  %v5637_v14 = vadd.f32 %v5636_v23, %v5635_v61  ;;  %v7853_v30 = vld [vmem:[#allocation4_spill] sm:$0xff] }
 0x1ff   : > { %v5638_v52 = vpop.f32.mrf.mxu0  ;;  %v4174_v15 = vpop.f32.mrf.mxu1  ;;  %v3844_v51 = vadd.f32 %v3820_v8, %v3471_v22  ;;  %v3455_v29 = vadd.f32 %v7853_v30, %v5545_v34  ;;  %v5186_v23 = vunpack.c.h.bf16 %v5192_v60 }
 0x200   : > { %4280 = vst [vmem:[%s7780_s8] sm:$0xff] %v4272_v21  ;;  %v4265_v57 = vadd.f32 %v5178_v43, %v4257_v63  ;;  %v4243_v26 = vmul.f32 %v7751_v24, %v4196_v38  ;;  %v4167_v53 = vadd.f32 %v5873_v19, %v5637_v14  ;;  %v5594_v19 = vadd.f32 %v7726_v13, %v7722_v31  ;;  %v5193_v38 = vld [vmem:[%s7742_s9 + $0x18] sm:$0xff]   ;;  %v7855_v14 = vld [vmem:[#allocation3_spill] sm:$0xff] }
 0x201   : > { %v5639_v10 = vpop.f32.mrf.mxu0  ;;  %v5185_v43 = vunpack.c.l.bf16 %v5192_v60 }
 0x202   : > { %v4273_v12 = vmax.f32 %v4265_v57, 0.0  ;;  %v4258_v58 = vadd.f32 %v7757_v44, %v4243_v26  ;;  %v4197_v39 = vadd.f32 %v4167_v53, %v3842_v32  ;;  %v5640_v42 = vadd.f32 %v5639_v10, %v5638_v52 }
 0x203   : > { %v5641_v6 = vpop.f32.mrf.mxu0  ;;  %v3825_v48 = vadd.f32 %v7710_v3, %v5594_v19  ;;  %v3473_v32 = vadd.f32 %v3455_v29, %v7855_v14  ;;  %v5189_v26 = vunpack.c.l.bf16 %v5193_v38 }
 0x204   : > { %4281 = vst [vmem:[%s7780_s8 + $0x8] sm:$0xff] %v4273_v12  ;;  %v4266_v2 = vadd.f32 %v5181_v0, %v4258_v58  ;;  %v4244_v18 = vmul.f32 %v7751_v24, %v4197_v39  ;;  %v4172_v17 = vadd.f32 %v5640_v42, %v4171_v46  ;;  %v3828_v46 = vadd.f32 %v7854_v1, %v5597_v62 }
 0x205   : > { %v5642_v45 = vpop.f32.mrf.mxu0  ;;  %v3845_v47 = vadd.f32 %v3825_v48, %v3472_v16  ;;  %v5190_v39 = vunpack.c.h.bf16 %v5193_v38 }
 0x206   : > { %v4274_v31 = vmax.f32 %v4266_v2, 0.0  ;;  %v4259_v13 = vadd.f32 %v7757_v44, %v4244_v18  ;;  %v4198_v33 = vadd.f32 %v4172_v17, %v3843_v54  ;;  %v5643_v41 = vadd.f32 %v5642_v45, %v5641_v6 }
 0x207   : > { %v5644_v61 = vpop.f32.mrf.mxu0  ;;  %v3846_v53 = vadd.f32 %v3828_v46, %v3473_v32 }
 0x208   : > { %4282 = vst [vmem:[%s7780_s8 + $0x10] sm:$0xff] %v4274_v31  ;;  %v4267_v28 = vadd.f32 %v5182_v11, %v4259_v13  ;;  %v4245_v27 = vmul.f32 %v7751_v24, %v4198_v33  ;;  %v4175_v37 = vadd.f32 %v5643_v41, %v4174_v15 }
 0x209   : > { %v5645_v56 = vpop.f32.mrf.mxu0 }
 0x20a   : > { %v4275_v5 = vmax.f32 %v4267_v28, 0.0  ;;  %v4260_v3 = vadd.f32 %v7757_v44, %v4245_v27  ;;  %v4199_v40 = vadd.f32 %v4175_v37, %v3844_v51  ;;  %v5646_v25 = vadd.f32 %v5645_v56, %v5644_v61 }
 0x20b   : > { %v5647_v4 = vpop.f32.mrf.mxu0 }
 0x20c   : > { %4283 = vst [vmem:[%s7780_s8 + $0x18] sm:$0xff] %v4275_v5  ;;  %v4268_v21 = vadd.f32 %v5185_v43, %v4260_v3  ;;  %v4246_v63 = vmul.f32 %v7751_v24, %v4199_v40  ;;  %v4180_v59 = vadd.f32 %v7764_v35, %v5646_v25 }
 0x20d   : > { %v5648_v55 = vpop.f32.mrf.mxu0 }
 0x20e   : > { %v4276_v0 = vmax.f32 %v4268_v21, 0.0  ;;  %v4261_v52 = vadd.f32 %v7757_v44, %v4246_v63  ;;  %v4200_v9 = vadd.f32 %v4180_v59, %v3845_v47  ;;  %v5649_v57 = vadd.f32 %v5648_v55, %v5647_v4 }
 0x210   : > { %4284 = vst [vmem:[%s7780_s8 + $0x20] sm:$0xff] %v4276_v0  ;;  %v4269_v50 = vadd.f32 %v5186_v23, %v4261_v52  ;;  %v4247_v36 = vmul.f32 %v7751_v24, %v4200_v9  ;;  %v4183_v7 = vadd.f32 %v5877_v49, %v5649_v57 }
 0x212   : > { %v4277_v35 = vmax.f32 %v4269_v50, 0.0  ;;  %v4262_v10 = vadd.f32 %v7757_v44, %v4247_v36  ;;  %v4201_v12 = vadd.f32 %v4183_v7, %v3846_v53 }
 0x214   : > { %4285 = vst [vmem:[%s7780_s8 + $0x28] sm:$0xff] %v4277_v35  ;;  %v4270_v58 = vadd.f32 %v5189_v26, %v4262_v10  ;;  %v4248_v42 = vmul.f32 %v7751_v24, %v4201_v12 }
 0x216   : > { %v4278_v8 = vmax.f32 %v4270_v58, 0.0  ;;  %v4263_v19 = vadd.f32 %v7757_v44, %v4248_v42 }
 0x218   : > { %4286 = vst [vmem:[%s7780_s8 + $0x30] sm:$0xff] %v4278_v8  ;;  %v4271_v11 = vadd.f32 %v5190_v39, %v4263_v19 }
 0x21a   : > { %v4279_v6 = vmax.f32 %v4271_v11, 0.0 }
 0x21c   : > { %4287 = vst [vmem:[%s7780_s8 + $0x38] sm:$0xff] %v4279_v6 }
 0x21d PF: > { %s17_s28 = sadd.s32 1, %s6233_s28   ;;  %s7856_s24 = smov %s6225_s26 }
 0x21e   : > { %p14_p10 = scmp.ge.s32.totalorder %s17_s28, 18   ;;  %s7857_s25 = smov %s6229_s27 }
 0x21f   : > { %s7858_s26 = smov %s7861_s29  ;;  %s7859_s27 = smov %s7865_s30 }
 0x220   :  { %16 = sbr.rel (!%p14_p10) target bundleno = 3 (0x3), region = 95 }

// kernel: basic_block_forward.2
= control target key start
LH: loop header
LB: loop body
LE: loop exit
PB: predicated region body
PF: predicated region fallthrough
CT: control target
= control target key end

     0   :  { %s6512_s21 = smov 0   ;;  %s6514_s22 = smov 0   ;;  %s8250_s0 = inlined_call_operand.vmem [shape: bf16[2,10,10,10,128], index: 0, kind: input, shape index: {}, may-alias: {0,1,2}]   ;;  %s8251_s1 = inlined_call_operand.vmem [shape: bf16[2,10,10,10,128], index: 1, kind: input, shape index: {}, may-alias: {0,1,2}]   ;;  %s8252_s2 = inlined_call_operand.vmem [shape: bf16[2,10,10,10,128], index: 2, kind: input, shape index: {}, may-alias: {0,1,2}]   ;;  %s8253_s3 = inlined_call_operand.vmem [shape: bf16[9,384,128], index: 3, kind: input, shape index: {}]   ;;  %s8254_s4 = inlined_call_operand.vmem [shape: f32[1,128], index: 4, kind: input, shape index: {}]   ;;  %s8255_s5 = inlined_call_operand.vmem [shape: f32[1,128], index: 5, kind: input, shape index: {}]   ;;  %s8256_s6 = inlined_call_operand.vmem [shape: bf16[2,10,10,10,128], index: 6, kind: output, shape index: {}]  }
   0x1   :  { %s6516_s23 = smov 0   ;;  %s6518_s24 = smov 0  }
   0x2   :  { %s6520_s25 = smov 0  }
   0x3 LB: > { %s25_s26 = sadd.s32 1, %s6465_s23  ;;  %s28_s27 = sadd.s32 1, %s6469_s24  ;;  %s6473_s25 = sphi %s6520_s25, %s16_s25   ;;  %s6469_s24 = sphi %s6518_s24, %s8281_s24   ;;  %s6465_s23 = sphi %s6516_s23, %s8280_s23   ;;  %s6461_s22 = sphi %s6514_s22, %s8279_s22   ;;  %s6457_s21 = sphi %s6512_s21, %s8278_s21  }
   0x4   : > { %p26_p0 = scmp.ge.s32.totalorder %s25_s26, 10  ;;  %p4619_p1 = scmp.ge.s32.totalorder %s6473_s25, 1 }
   0x5   : > { %p288_p2 = scmp.lt.s32.totalorder %s6473_s25, 21 }
   0x6   : > { %s8283_s26 = smov (%p26_p0, %s25_s26), 0  ;;  %s8285_s27 = smov (!%p26_p0, %s28_s27), %s6469_s24 }
   0x7   : > { %p289_p3 = pnand %p4619_p1, %p288_p2  ;;  %p30_p4 = scmp.ge.s32.totalorder %s8285_s27, 2 }
   0x8   : > { %s4620_s28 = sadd.s32 (!%p289_p3), 4294967295, %s6457_s21  ;;  %p353_p5 = scmp.lt.s32.totalorder (!%p289_p3), %s6461_s22, 1 }
   0x9   : > { %s8287_s27 = smov (%p30_p4, %s8285_s27), 0  ;;  %292 = sbr.rel (%p289_p3) target bundleno = 577 (0x241), region = 44 }
   0xa   : > { %p351_p6 = scmp.gt.s32.totalorder (!%p289_p3), %s4620_s28, 0  ;;  %p4621_p7 = scmp.lt.s32.totalorder (!%p289_p3), %s4620_s28, 9 }
   0xb   : > { %p367_p8 = scmp.lt.s32.totalorder (!%p289_p3), %s6457_s21, 9  ;;  %s374_s8 = sadd.s32 (!%p289_p3), 1, %s6457_s21 }
   0xc   : > { %p6550_p9 = scmp.lt.s32.totalorder (!%p289_p3), %s374_s8, 9  ;;  %p399_p10 = scmp.eq.s32.totalorder (!%p289_p3), %s6457_s21, 0 }
   0xd   : > { %p400_p11 = scmp.eq.s32.totalorder (!%p289_p3), %s6457_s21, 9 }
   0xe   : > { %s8289_s22 = smov (!%p353_p5, %s6461_s22), 1  ;;  %s8291_s28 = smov (!%p351_p6, %s4620_s28), 0 }
   0xf   : > { %s6117_s29 = smul.u32 200, %s8289_s22  ;;  %s8293_s28 = smov (!%p4621_p7, %s8291_s28), 9 }
  0x10   : > { %s368_s30 = scalar_select %p367_p8, %s6457_s21, 9 }
  0x11   : > { %s6116_s7 = smul.u32 20, %s8293_s28  ;;  %s8295_s8 = smov (!%p6550_p9, %s374_s8), 9 }
  0x12   : > { %s6118_s9 = smul.u32 20, %s368_s30  ;;  %s8297_s8 = smov (!%p6550_p9, %s8295_s8), 9 }
  0x13   : > { %s359_s11 = sadd.s32 %s6117_s29, %s6116_s7  ;;  %p401_p12 = por %p400_p11, %p399_p10 }
  0x14   : > { %s4626_s12 = sshll.u32 %s359_s11, 2  ;;  %s371_s13 = sadd.s32 %s6118_s9, %s6117_s29  ;;  %v6475_v0 = vmov (%p401_p12), 0  }
  0x15   : > { %s6558_s16 = scalar_lea.vmem %s8250_s0, %s4626_s12  ;;  %s4627_s17 = sshll.u32 %s371_s13, 2 }
  0x16   : > { %s6563_s20 = scalar_lea.vmem %s8251_s1, %s4627_s17  ;;  %s6568_s30 = scalar_lea.vmem %s8256_s6, %s4627_s17 }
  0x17   : > { %s6119_s7 = smul.u32 20, %s8297_s8  ;;  %405 = vst [vmem:[%s6568_s30] sm:$0xf] (%p401_p12), %v6475_v0  ;;  %406 = vst [vmem:[%s6568_s30 + $0x4] sm:$0x1] (%p401_p12), %v6475_v0 }
  0x18   : > { %404 = sbr.rel (!%p401_p12) target bundleno = 33 (0x21), region = 48  ;;  %407 = vst [vmem:[%s6568_s30 + $0x8] sm:$0xf] (%p401_p12), %v6475_v0  ;;  %408 = vst [vmem:[%s6568_s30 + $0xc] sm:$0x1] (%p401_p12), %v6475_v0 }
  0x19   : > { %s383_s9 = sadd.s32 %s6119_s7, %s6117_s29  ;;  %409 = vst [vmem:[%s6568_s30 + $0x10] sm:$0xf] (%p401_p12), %v6475_v0  ;;  %410 = vst [vmem:[%s6568_s30 + $0x14] sm:$0x1] (%p401_p12), %v6475_v0 }
  0x1a   : > { %s4631_s11 = sshll.u32 %s383_s9, 2  ;;  %411 = vst [vmem:[%s6568_s30 + $0x18] sm:$0xf] (%p401_p12), %v6475_v0  ;;  %412 = vst [vmem:[%s6568_s30 + $0x1c] sm:$0x1] (%p401_p12), %v6475_v0 }
  0x1b   : > { %s6578_s14 = scalar_lea.vmem %s8252_s2, %s4631_s11  ;;  %413 = vst [vmem:[%s6568_s30 + $0x20] sm:$0xf] (%p401_p12), %v6475_v0  ;;  %414 = vst [vmem:[%s6568_s30 + $0x24] sm:$0x1] (%p401_p12), %v6475_v0 }
  0x1c   : > { %415 = vst [vmem:[%s6568_s30 + $0x28] sm:$0xf] (%p401_p12), %v6475_v0  ;;  %416 = vst [vmem:[%s6568_s30 + $0x2c] sm:$0x1] (%p401_p12), %v6475_v0 }
  0x1d   : > { %417 = vst [vmem:[%s6568_s30 + $0x30] sm:$0xf] %v6475_v0  ;;  %418 = vst [vmem:[%s6568_s30 + $0x34] sm:$0x1] %v6475_v0 }
  0x1e   : > { %419 = vst [vmem:[%s6568_s30 + $0x38] sm:$0xf] %v6475_v0  ;;  %420 = vst [vmem:[%s6568_s30 + $0x3c] sm:$0x1] %v6475_v0 }
  0x1f   : > { %421 = vst [vmem:[%s6568_s30 + $0x40] sm:$0xf] %v6475_v0  ;;  %422 = vst [vmem:[%s6568_s30 + $0x44] sm:$0x1] %v6475_v0 }
  0x20   : > { %423 = vst [vmem:[%s6568_s30 + $0x48] sm:$0xf] %v6475_v0  ;;  %424 = vst [vmem:[%s6568_s30 + $0x4c] sm:$0x1] %v6475_v0 }
  0x21 PF: > { %p425_p13 = scmp.gt.s32.totalorder %s6457_s21, 0 }
  0x23   : > { %p427_p0 = pnand %p425_p13, %p367_p8 }
  0x25   : > { %430 = sbr.rel (%p427_p0) target bundleno = 577 (0x241), region = 52 }
  0x2a   : > { %v6162_v1 = vld [vmem:[%s8253_s3 + $0x78] sm:$0xff]   ;;  %v6165_v4 = vld [vmem:[%s8253_s3 + $0x70] sm:$0xff]   ;;  %v6168_v7 = vld [vmem:[%s8253_s3 + $0x68] sm:$0xff]   ;;  %vm4269_vm0 = vcmask 1040384   ;;  %vm4270_vm1 = vsmask.f32 256 }
  0x2b   : > { %v6163_v2 = vld [vmem:[%s8253_s3 + $0x38] sm:$0xff]   ;;  %5432 = vmatprep.subr.bf16.mxu0 %v6162_v1  ;;  %v6166_v5 = vld [vmem:[%s8253_s3 + $0x30] sm:$0xff]   ;;  %v6169_v8 = vld [vmem:[%s8253_s3 + $0x28] sm:$0xff]   ;;  %vm4296_vm2 = vsmask.f32 7938  ;;  %vm4426_vm5 = vcmask 1043456  }
  0x2c   : > { %v6164_v3 = vld [vmem:[%s8253_s3 + $0xb8] sm:$0xff]   ;;  %5433 = vmatpush3.bf16.msra.mxu0 %v6163_v2  ;;  %v6167_v6 = vld [vmem:[%s8253_s3 + $0xb0] sm:$0xff]   ;;  %v6170_v9 = vld [vmem:[%s8253_s3 + $0xa8] sm:$0xff]  }
  0x2d   : > { %5900 = vmatprep.subr.bf16.mxu1 %v6164_v3  ;;  %5434 = vmatprep.subr.bf16.mxu0 %v6165_v4  ;;  %v6171_v10 = vld [vmem:[%s8253_s3 + $0x60] sm:$0xff]   ;;  %v6174_v13 = vld [vmem:[%s8253_s3 + $0x58] sm:$0xff]   ;;  %v6177_v16 = vld [vmem:[%s8253_s3 + $0x50] sm:$0xff]  }
  0x2e   : > { %5901 = vmatpush3.bf16.msra.mxu1 %v6164_v3  ;;  %v6172_v11 = vld [vmem:[%s8253_s3 + $0x20] sm:$0xff]   ;;  %v6176_v14 = vld [vmem:[%s8253_s3 + $0x98] sm:$0xff]   ;;  %v6179_v17 = vld [vmem:[%s8253_s3 + $0x90] sm:$0xff]  }
  0x2f   : > { %5902 = vmatprep.subr.bf16.mxu1 %v6167_v6  ;;  %v6173_v12 = vld [vmem:[%s8253_s3 + $0xa0] sm:$0xff]   ;;  %v6175_v15 = vld [vmem:[%s8253_s3 + $0x18] sm:$0xff]   ;;  %v6178_v18 = vld [vmem:[%s8253_s3 + $0x10] sm:$0xff]  }
  0x30   : > { %5435 = vmatpush3.bf16.msra.mxu0 %v6166_v5  ;;  %v6180_v19 = vld [vmem:[%s8253_s3 + $0x48] sm:$0xff]   ;;  %v6183_v22 = vld [vmem:[%s8253_s3 + $0x40] sm:$0xff]   ;;  %v6685_v34 = vld [vmem:[%s6558_s16 + $0x10] sm:$0xf] }
  0x31   : > { %5436 = vmatprep.subr.bf16.mxu0 %v6168_v7  ;;  %v6181_v20 = vld [vmem:[%s8253_s3 + $0x8] sm:$0xff]   ;;  %v431_v23 = vld [vmem:[%s6558_s16] sm:$0xf]  ;;  %v432_v24 = vld [vmem:[%s6558_s16 + $0x4] sm:$0x1] }
  0x32   : > { %5903 = vmatpush3.bf16.msra.mxu1 %v6167_v6  ;;  %v6182_v21 = vld [vmem:[%s8253_s3 + $0x88] sm:$0xff]   ;;  %v4633_v27 = vcombine.low %v431_v23, %v432_v24  ;;  %v6185_v28 = vld [vmem:[%s8253_s3 + $0x80] sm:$0xff]   ;;  %v6189_v37 = vld [vmem:[%s8253_s3 + $0x138] sm:$0xff]  }
  0x33   : > { %5904 = vmatprep.subr.bf16.mxu1 %v6170_v9  ;;  %v6672_v25 = vld [vmem:[%s6558_s16 + $0x8] sm:$0xf]  ;;  %v434_v26 = vld [vmem:[%s6558_s16 + $0xc] sm:$0x1]  ;;  %v6184_v30 = vld [vmem:[%s8253_s3] sm:$0xff]  }
  0x34   : > { %5437 = vmatpush3.bf16.msra.mxu0 %v6169_v8  ;;  %v6679_v29 = vcombine.low %v6672_v25, %v434_v26  ;;  %v542_v31 = vshrl.u32 %v4633_v27, 16  ;;  %v544_v32 = vshll.u32 %v4633_v27, 16  ;;  %v611_v33 = vrot.slane %v4633_v27, 1  ;;  %v436_v39 = vld [vmem:[%s6558_s16 + $0x14] sm:$0x1]  ;;  %v6193_v47 = vld [vmem:[%s8253_s3 + $0x178] sm:$0xff]   ;;  %vm7941_vm3 = vmand %vm4269_vm0, %vm4270_vm1 }
  0x35   : > { %5438 = vmatprep.subr.bf16.mxu0 %v6171_v10  ;;  %v6695_v41 = vld [vmem:[%s6558_s16 + $0x18] sm:$0xf]  ;;  %v438_v42 = vld [vmem:[%s6558_s16 + $0x1c] sm:$0x1]  ;;  %v6699_v43 = vcombine.low %v6685_v34, %v436_v39  ;;  %v6196_v53 = vld [vmem:[%s8253_s3 + $0x170] sm:$0xff]   ;;  %v4643_v54 = vcombine.low %v431_v23, %v6672_v25 }
  0x36   : > { %5905 = vmatpush3.bf16.msra.mxu1 %v6170_v9  ;;  %v549_v35 = vshrl.u32 %v6679_v29, 16  ;;  %v551_v36 = vshll.u32 %v6679_v29, 16  ;;  %v612_v38 = vrot.slane %v6679_v29, 1  ;;  %v546_v40 = vrot.slane %v544_v32, 1  ;;  %v6190_v51 = vld [vmem:[%s8253_s3 + $0xf8] sm:$0xff]   ;;  %v6194_v61 = vld [vmem:[%s8253_s3 + $0x130] sm:$0xff]   ;;  %vm7950_vm4 = vmand %vm4269_vm0, %vm4296_vm2 }
  0x37   : > { %5906 = vmatprep.subr.bf16.mxu1 %v6173_v12  ;;  %v6704_v46 = vcombine.low %v6695_v41, %v438_v42  ;;  %v613_v49 = vrot.slane %v6699_v43, 1  ;;  %v556_v55 = vshrl.u32 %v6699_v43, 16  ;;  %v558_v56 = vshll.u32 %v6699_v43, 16  ;;  %v6195_v0 = vld [vmem:[%s8253_s3 + $0xf0] sm:$0xff]   ;;  %v6198_v3 = vld [vmem:[%s8253_s3 + $0x128] sm:$0xff]   ;;  %v6202_v24 = vld [vmem:[%s8253_s3 + $0xe0] sm:$0xff]  }
  0x38   : > { %5439 = vmatpush3.bf16.msra.mxu0 %v6172_v11  ;;  %v553_v44 = vrot.slane %v551_v36, 1  ;;  %v4645_v45 = vcombine.low %v611_v33, %v612_v38  ;;  %v547_v48 = vor.u32 %v546_v40, %v542_v31  ;;  %v6200_v4 = vld [vmem:[%s8253_s3 + $0x168] sm:$0xff]   ;;  %v6756_v7 = vld [vmem:[%s6558_s16 + $0x20] sm:$0xf]  ;;  %v440_v8 = vld [vmem:[%s6558_s16 + $0x24] sm:$0x1]  ;;  %v6764_v10 = vcombine.low %v6685_v34, %v6695_v41 }
  0x39   : > { %5440 = vmatprep.subr.bf16.mxu0 %v6174_v13  ;;  %v614_v52 = vrot.slane %v6704_v46, 1  ;;  %v563_v59 = vshrl.u32 %v6704_v46, 16  ;;  %v565_v60 = vshll.u32 %v6704_v46, 16  ;;  %v560_v62 = vrot.slane %v558_v56, 1  ;;  %v6199_v6 = vld [vmem:[%s8253_s3 + $0xe8] sm:$0xff]   ;;  %v6203_v13 = vld [vmem:[%s8253_s3 + $0x160] sm:$0xff]   ;;  %vm8148_vm6 = vmand %vm4426_vm5, %vm4296_vm2 }
  0x3a   : > { %5907 = vmatpush3.bf16.msra.mxu1 %v6173_v12  ;;  %v6710_v50 = vor.u32 %v553_v44, %v549_v35  ;;  %5916 = vmatprep.mubr.bf16.mxu1 %v4645_v45  ;;  %v6760_v9 = vld [vmem:[%s6558_s16 + $0x28] sm:$0xf]  ;;  %v442_v11 = vld [vmem:[%s6558_s16 + $0x2c] sm:$0x1]  ;;  %v6768_v12 = vcombine.low %v6756_v7, %v440_v8  ;;  %v444_v23 = vld [vmem:[%s6558_s16 + $0x34] sm:$0x1] }
  0x3b   : > { %5908 = vmatprep.subr.bf16.mxu1 %v6176_v14  ;;  %v6727_v58 = vcombine.low %v613_v49, %v614_v52  ;;  %v567_v63 = vrot.slane %v565_v60, 1  ;;  %v6738_v1 = vor.u32 %v560_v62, %v556_v55  ;;  %v6795_v27 = vld [vmem:[%s6558_s16 + $0x38] sm:$0xf]  ;;  %v6214_v45 = vld [vmem:[%s8253_s3 + $0x150] sm:$0xff]   ;;  %v4729_v60 = vcombine.low %v612_v38, %v613_v49  ;;  %v6216_v29 = vld [vmem:[%s8253_s3 + $0x108] sm:$0xff]  }
  0x3c   : > { %5441 = vmatpush3.bf16.msra.mxu0 %v6175_v15  ;;  %v4644_v57 = vcombine.low %v547_v48, %v6710_v50  ;;  %v6201_v15 = vld [vmem:[%s8253_s3 + $0x120] sm:$0xff]   ;;  %v6211_v35 = vld [vmem:[%s8253_s3 + $0x158] sm:$0xff]   ;;  %v6213_v62 = vld [vmem:[%s8253_s3 + $0xd0] sm:$0xff]  }
  0x3d   : > { %5442 = vmatprep.subr.bf16.mxu0 %v6177_v16  ;;  %v6740_v2 = vor.u32 %v567_v63, %v563_v59  ;;  %v570_v16 = vshrl.u32 %v6768_v12, 16  ;;  %v6208_v42 = vld [vmem:[%s8253_s3 + $0xd8] sm:$0xff]   ;;  %v6218_v38 = vld [vmem:[%s8253_s3 + $0x148] sm:$0xff]   ;;  %v4728_v8 = vcombine.low %v6710_v50, %v6738_v1  ;;  %v6226_v46 = vld [vmem:[%s8253_s3 + $0x1f0] sm:$0xff]  }
  0x3e   : > { %5909 = vmatpush3.bf16.msra.mxu1 %v6176_v14  ;;  %885 = vmatprep.mubr.bf16.mxu0 %v4644_v57  ;;  %v6775_v14 = vcombine.low %v6760_v9, %v442_v11  ;;  %v6212_v57 = vld [vmem:[%s8253_s3 + $0x110] sm:$0xff]   ;;  %v6220_v11 = vld [vmem:[%s8253_s3 + $0xc0] sm:$0xff]  }
  0x3f   : > { %5910 = vmatprep.subr.bf16.mxu1 %v6179_v17  ;;  %v6750_v5 = vcombine.low %v6738_v1, %v6740_v2  ;;  %v4727_v1 = vcombine.low %v6672_v25, %v6685_v34  ;;  %v6227_v34 = vld [vmem:[%s8253_s3 + $0x1b0] sm:$0xff]  }
  0x40   : > { %5443 = vmatpush3.bf16.msra.mxu0 %v6178_v18  ;;  %v615_v18 = vrot.slane %v6768_v12, 1 }
  0x41   : > { %5444 = vmatprep.subr.bf16.mxu0 %v6180_v19  ;;  %v6784_v19 = vld [vmem:[%s6558_s16 + $0x30] sm:$0xf] }
  0x42   : > { %5911 = vmatpush3.bf16.msra.mxu1 %v6179_v17  ;;  %v572_v17 = vshll.u32 %v6768_v12, 16  ;;  %v4732_v50 = vcombine.low %v614_v52, %v615_v18  ;;  %v6232_v12 = vld [vmem:[%s8253_s3 + $0x228] sm:$0xff]  }
  0x43   : > { %5912 = vmatprep.subr.bf16.mxu1 %v6182_v21 }
  0x44   : > { %5445 = vmatpush3.bf16.msra.mxu0 %v6181_v20  ;;  %v577_v20 = vshrl.u32 %v6775_v14, 16  ;;  %v574_v26 = vrot.slane %v572_v17, 1  ;;  %v6228_v17 = vld [vmem:[%s8253_s3 + $0x230] sm:$0xff]  }
  0x45   : > { %5446 = vmatprep.subr.bf16.mxu0 %v6183_v22  ;;  %v616_v22 = vrot.slane %v6775_v14, 1 }
  0x46   : > { %5913 = vmatpush3.bf16.msra.mxu1 %v6182_v21  ;;  %v579_v21 = vshll.u32 %v6775_v14, 16  ;;  %v6813_v36 = vor.u32 %v574_v26, %v570_v16  ;;  %v6224_v16 = vld [vmem:[%s8253_s3 + $0x1b8] sm:$0xff]   ;;  %v6235_v26 = vld [vmem:[%s8253_s3 + $0x220] sm:$0xff]  }
  0x47   : > { %5914 = vmatprep.subr.bf16.mxu1 %v6185_v28  ;;  %v6805_v32 = vcombine.low %v615_v18, %v616_v22  ;;  %v6928_v18 = vld [vmem:[%s6558_s16 + $0x40] sm:$0xf] }
  0x48   : > { %5447 = vmatpush3.bf16.msra.mxu0 %v6184_v30  ;;  %v6799_v30 = vcombine.low %v6784_v19, %v444_v23  ;;  %v581_v31 = vrot.slane %v579_v21, 1  ;;  %v4731_v25 = vcombine.low %v6740_v2, %v6813_v36  ;;  %v448_v2 = vld [vmem:[%s6558_s16 + $0x44] sm:$0x1]  ;;  %v4730_v21 = vcombine.low %v6695_v41, %v6756_v7 }
  0x49   : > { %5484 = vmatprep.subr.bf16.mxu0 %v6189_v37  ;;  %v6207_v37 = vld [vmem:[%s8253_s3 + $0x118] sm:$0xff]   ;;  %v6935_v14 = vcombine.low %v6928_v18, %v448_v2 }
  0x4a   : > { %5915 = vmatpush3.bf16.msra.mxu1 %v6185_v28  ;;  %v446_v28 = vld [vmem:[%s6558_s16 + $0x3c] sm:$0x1]  ;;  %v617_v39 = vrot.slane %v6799_v30, 1  ;;  %v6819_v40 = vor.u32 %v581_v31, %v577_v20  ;;  %v584_v48 = vshrl.u32 %v6799_v30, 16  ;;  %v6230_v20 = vld [vmem:[%s8253_s3 + $0x1e8] sm:$0xff]  }
  0x4b   : > { %5924 = vmatprep.subr.bf16.mxu1 %v6193_v47  ;;  %886 = vmatmul.mubr.bf16.vlgmr.msra.gmra.mxu0 %v4643_v54  ;;  %v6808_v33 = vcombine.low %v6795_v27, %v446_v28  ;;  %v619_v23 = vrot.slane %v6935_v14, 1  ;;  %v598_v28 = vshrl.u32 %v6935_v14, 16  ;;  %v600_v41 = vshll.u32 %v6935_v14, 16  ;;  %v7078_v14 = vld [vmem:[%s6563_s20 + $0x18] sm:$0xf] }
  0x4c   : > { %5485 = vmatpush3.bf16.msra.mxu0 %v6190_v51  ;;  %893 = vmatprep.mubr.bf16.mxu0 %v6750_v5  ;;  %v586_v51 = vshll.u32 %v6799_v30, 16  ;;  %v4735_v52 = vcombine.low %v616_v22, %v617_v39  ;;  %v6231_v22 = vld [vmem:[%s8253_s3 + $0x1a8] sm:$0xff]  }
  0x4d   : > { %5917 = vmatmul.mubr.bf16.vlgmr.msra.gmra.mxu1 %v6727_v58  ;;  %5486 = vmatprep.subr.bf16.mxu0 %v6194_v61  ;;  %v618_v44 = vrot.slane %v6808_v33, 1  ;;  %v591_v55 = vshrl.u32 %v6808_v33, 16  ;;  %v593_v56 = vshll.u32 %v6808_v33, 16  ;;  %v602_v31 = vrot.slane %v600_v41, 1  ;;  %v6237_v33 = vld [vmem:[%s8253_s3 + $0x1d8] sm:$0xff]  }
  0x4e   : > { %5925 = vmatpush3.bf16.msra.mxu1 %v6193_v47  ;;  %5920 = vmatprep.mubr.bf16.mxu1 %v6805_v32  ;;  %v6831_v47 = vcombine.low %v6756_v7, %v6760_v9  ;;  %v588_v59 = vrot.slane %v586_v51, 1  ;;  %v6246_v51 = vld [vmem:[%s8253_s3 + $0x188] sm:$0xff]  }
  0x4f   : > { %5926 = vmatprep.subr.bf16.mxu1 %v6196_v53  ;;  %v6843_v54 = vcombine.low %v617_v39, %v618_v44  ;;  %v595_v61 = vrot.slane %v593_v56, 1  ;;  %v4738_v30 = vcombine.low %v618_v44, %v619_v23  ;;  %v4733_v39 = vcombine.low %v6760_v9, %v6784_v19  ;;  %v6241_v44 = vld [vmem:[%s8253_s3 + $0x1d0] sm:$0xff]   ;;  %v6248_v56 = vld [vmem:[%s8253_s3 + $0x1c0] sm:$0xff]  }
  0x50   : > { %5487 = vmatpush3.bf16.msra.mxu0 %v6195_v0  ;;  %v6860_v63 = vor.u32 %v588_v59, %v584_v48  ;;  %v6876_v0 = vcombine.low %v6784_v19, %v6795_v27  ;;  %v6247_v19 = vld [vmem:[%s8253_s3 + $0x208] sm:$0xff]   ;;  %v4736_v48 = vcombine.low %v6795_v27, %v6928_v18  ;;  %v6249_v27 = vld [vmem:[%s8253_s3 + $0x180] sm:$0xff]   ;;  %v6253_v59 = vld [vmem:[%s8253_s3 + $0x2f8] sm:$0xff]  }
  0x51   : > { %5488 = vmatprep.subr.bf16.mxu0 %v6198_v3  ;;  %v6862_v43 = vor.u32 %v595_v61, %v591_v55  ;;  %v6217_v3 = vld [vmem:[%s8253_s3 + $0xc8] sm:$0xff]   ;;  %v6250_v55 = vld [vmem:[%s8253_s3 + $0x200] sm:$0xff]  }
  0x52   : > { %5927 = vmatpush3.bf16.msra.mxu1 %v6196_v53  ;;  %v6837_v53 = vcombine.low %v6813_v36, %v6819_v40  ;;  %v4734_v7 = vcombine.low %v6819_v40, %v6860_v63  ;;  %v6240_v36 = vld [vmem:[%s8253_s3 + $0x218] sm:$0xff]   ;;  %v450_v61 = vld [vmem:[%s6558_s16 + $0x4c] sm:$0x1] }
  0x53   : > { %5928 = vmatprep.subr.bf16.mxu1 %v6200_v4  ;;  %894 = vmatmul.mubr.bf16.gmra.mxu0 %v6764_v10  ;;  %v6872_v49 = vcombine.low %v6860_v63, %v6862_v43  ;;  %v6238_v40 = vld [vmem:[%s8253_s3 + $0x198] sm:$0xff]  }
  0x54   : > { %5489 = vmatpush3.bf16.msra.mxu0 %v6199_v6  ;;  %901 = vmatprep.mubr.bf16.mxu0 %v6837_v53  ;;  %v6219_v6 = vld [vmem:[%s8253_s3 + $0x100] sm:$0xff]   ;;  %v6252_v63 = vld [vmem:[%s8253_s3 + $0x278] sm:$0xff]  }
  0x55   : > { %5490 = vmatprep.subr.bf16.mxu0 %v6201_v15  ;;  %5921 = vmatmul.mubr.bf16.gmra.mxu1 %v6843_v54  ;;  %v6223_v15 = vld [vmem:[%s8253_s3 + $0x1f8] sm:$0xff]  }
  0x56   : > { %5929 = vmatpush3.bf16.msra.mxu1 %v6200_v4  ;;  %5940 = vmatprep.mubr.bf16.mxu1 %v4729_v60  ;;  %v6221_v4 = vld [vmem:[%s8253_s3 + $0x140] sm:$0xff]   ;;  %v7012_v60 = vld [vmem:[%s6558_s16 + $0x48] sm:$0xf] }
  0x57   : > { %5930 = vmatprep.subr.bf16.mxu1 %v6203_v13 }
  0x58   : > { %5491 = vmatpush3.bf16.msra.mxu0 %v6202_v24  ;;  %v6233_v24 = vld [vmem:[%s8253_s3 + $0x1e0] sm:$0xff]  }
  0x59   : > { %5492 = vmatprep.subr.bf16.mxu0 %v6207_v37  ;;  %v6966_v37 = vor.u32 %v602_v31, %v598_v28  ;;  %v6267_v28 = vld [vmem:[%s8253_s3 + $0x290] sm:$0xff]  }
  0x5a   : > { %5931 = vmatpush3.bf16.msra.mxu1 %v6203_v13  ;;  %v6225_v13 = vld [vmem:[%s8253_s3 + $0x238] sm:$0xff]  }
  0x5b   : > { %5932 = vmatprep.subr.bf16.mxu1 %v6211_v35  ;;  %902 = vmatmul.mubr.bf16.gmra.mxu0 %v6831_v47  ;;  %v4737_v9 = vcombine.low %v6862_v43, %v6966_v37  ;;  %v6256_v43 = vld [vmem:[%s8253_s3 + $0x2f0] sm:$0xff]  }
  0x5c   : > { %5493 = vmatpush3.bf16.msra.mxu0 %v6208_v42  ;;  %909 = vmatprep.mubr.bf16.mxu0 %v6872_v49  ;;  %v6243_v42 = vld [vmem:[%s8253_s3 + $0x210] sm:$0xff]  }
  0x5d   : > { %5494 = vmatprep.subr.bf16.mxu0 %v6212_v57  ;;  %v6251_v57 = vld [vmem:[%s8253_s3 + $0x2b8] sm:$0xff]  }
  0x5e   : > { %5933 = vmatpush3.bf16.msra.mxu1 %v6211_v35  ;;  %v6234_v35 = vld [vmem:[%s8253_s3 + $0x1a0] sm:$0xff]  }
  0x5f   : > { %5934 = vmatprep.subr.bf16.mxu1 %v6214_v45 }
  0x60   : > { %5495 = vmatpush3.bf16.msra.mxu0 %v6213_v62  ;;  %v4642_v62 = vcombine.low %v7012_v60, %v450_v61  ;;  %v462_v61 = vld [vmem:[%s6563_s20 + $0x2c] sm:$0x1] }
  0x61   : > { %5496 = vmatprep.subr.bf16.mxu0 %v6216_v29  ;;  %v6254_v29 = vld [vmem:[%s8253_s3 + $0x2b0] sm:$0xff]  }
  0x62   : > { %5935 = vmatpush3.bf16.msra.mxu1 %v6214_v45  ;;  %v6245_v45 = vld [vmem:[%s8253_s3 + $0x1c8] sm:$0xff]  }
  0x63   : > { %5936 = vmatprep.subr.bf16.mxu1 %v6218_v38  ;;  %910 = vmatmul.mubr.bf16.gmra.mxu0 %v6876_v0 }
  0x64   : > { %5497 = vmatpush3.bf16.msra.mxu0 %v6217_v3  ;;  %1242 = vmatprep.mubr.bf16.mxu0 %v4728_v8  ;;  %v607_v3 = vshll.u32 %v4642_v62, 16 }
  0x65   : > { %5498 = vmatprep.subr.bf16.mxu0 %v6219_v6  ;;  %v6262_v6 = vld [vmem:[%s8253_s3 + $0x2e0] sm:$0xff]  }
  0x66   : > { %5937 = vmatpush3.bf16.msra.mxu1 %v6218_v38  ;;  %v6255_v38 = vld [vmem:[%s8253_s3 + $0x270] sm:$0xff]  }
  0x67   : > { %5938 = vmatprep.subr.bf16.mxu1 %v6221_v4 }
  0x68   : > { %5499 = vmatpush3.bf16.msra.mxu0 %v6220_v11  ;;  %v605_v11 = vshrl.u32 %v4642_v62, 16 }
  0x69   : > { %5536 = vmatprep.subr.bf16.mxu0 %v6223_v15  ;;  %v452_v15 = vld [vmem:[%s6563_s20 + $0x4] sm:$0x1] }
  0x6a   : > { %5939 = vmatpush3.bf16.msra.mxu1 %v6221_v4  ;;  %v6259_v4 = vld [vmem:[%s8253_s3 + $0x2e8] sm:$0xff]  }
  0x6b   : > { %5948 = vmatprep.subr.bf16.mxu1 %v6225_v13  ;;  %1243 = vmatmul.mubr.bf16.vlgmr.msra.gmra.mxu0 %v4727_v1  ;;  %v454_v1 = vld [vmem:[%s6563_s20 + $0xc] sm:$0x1] }
  0x6c   : > { %5537 = vmatpush3.bf16.msra.mxu0 %v6224_v16  ;;  %1250 = vmatprep.mubr.bf16.mxu0 %v4731_v25  ;;  %v6261_v25 = vld [vmem:[%s8253_s3 + $0x260] sm:$0xff]  }
  0x6d   : > { %5941 = vmatmul.mubr.bf16.vlgmr.msra.gmra.mxu1 %v4732_v50  ;;  %5538 = vmatprep.subr.bf16.mxu0 %v6226_v46  ;;  %v7052_v50 = vld [vmem:[%s6563_s20 + $0x8] sm:$0xf] }
  0x6e   : > { %5949 = vmatpush3.bf16.msra.mxu1 %v6225_v13  ;;  %5944 = vmatprep.mubr.bf16.mxu1 %v4735_v52  ;;  %v7048_v13 = vld [vmem:[%s6563_s20] sm:$0xf]  ;;  %v6266_v52 = vld [vmem:[%s8253_s3 + $0x2d8] sm:$0xff]  }
  0x6f   : > { %5950 = vmatprep.subr.bf16.mxu1 %v6228_v17  ;;  %v4838_v16 = vcombine.low %v7048_v13, %v452_v15 }
  0x70   : > { %5539 = vmatpush3.bf16.msra.mxu0 %v6227_v34  ;;  %v6263_v34 = vld [vmem:[%s8253_s3 + $0x298] sm:$0xff]  }
  0x71   : > { %5540 = vmatprep.subr.bf16.mxu0 %v6230_v20  ;;  %v1839_v46 = vrot.slane %v4838_v16, 1  ;;  %v456_v20 = vld [vmem:[%s6563_s20 + $0x14] sm:$0x1]  ;;  %v1770_v31 = vshrl.u32 %v4838_v16, 16 }
  0x72   : > { %5951 = vmatpush3.bf16.msra.mxu1 %v6228_v17  ;;  %v7060_v17 = vcombine.low %v7052_v50, %v454_v1 }
  0x73   : > { %5952 = vmatprep.subr.bf16.mxu1 %v6232_v12  ;;  %1251 = vmatmul.mubr.bf16.gmra.mxu0 %v4730_v21  ;;  %v1772_v21 = vshll.u32 %v4838_v16, 16  ;;  %v466_v16 = vld [vmem:[%s6563_s20 + $0x3c] sm:$0x1] }
  0x74   : > { %5541 = vmatpush3.bf16.msra.mxu0 %v6231_v22  ;;  %1258 = vmatprep.mubr.bf16.mxu0 %v4734_v7  ;;  %v1779_v22 = vshll.u32 %v7060_v17, 16  ;;  %v6269_v7 = vld [vmem:[%s8253_s3 + $0x2d0] sm:$0xff]  }
  0x75   : > { %5542 = vmatprep.subr.bf16.mxu0 %v6233_v24  ;;  %5945 = vmatmul.mubr.bf16.gmra.mxu1 %v4738_v30  ;;  %v458_v24 = vld [vmem:[%s6563_s20 + $0x1c] sm:$0x1] }
  0x76   : > { %5953 = vmatpush3.bf16.msra.mxu1 %v6232_v12  ;;  %5964 = vmatprep.mubr.bf16.mxu1 %v6727_v58  ;;  %v6242_v58 = vld [vmem:[%s8253_s3 + $0x190] sm:$0xff]   ;;  %v1840_v12 = vrot.slane %v7060_v17, 1 }
  0x77   : > { %5954 = vmatprep.subr.bf16.mxu1 %v6235_v26 }
  0x78   : > { %5543 = vmatpush3.bf16.msra.mxu0 %v6234_v35  ;;  %v1774_v35 = vrot.slane %v1772_v21, 1 }
  0x79   : > { %5544 = vmatprep.subr.bf16.mxu0 %v6237_v33  ;;  %v1781_v33 = vrot.slane %v1779_v22, 1 }
  0x7a   : > { %5955 = vmatpush3.bf16.msra.mxu1 %v6235_v26  ;;  %v6264_v26 = vld [vmem:[%s8253_s3 + $0x258] sm:$0xff]  }
  0x7b   : > { %5956 = vmatprep.subr.bf16.mxu1 %v6240_v36  ;;  %1259 = vmatmul.mubr.bf16.gmra.mxu0 %v4733_v39  ;;  %v6268_v39 = vld [vmem:[%s8253_s3 + $0x250] sm:$0xff]  }
  0x7c   : > { %5545 = vmatpush3.bf16.msra.mxu0 %v6238_v40  ;;  %1266 = vmatprep.mubr.bf16.mxu0 %v4737_v9  ;;  %v6273_v40 = vld [vmem:[%s8253_s3 + $0x2c8] sm:$0xff]  }
  0x7d   : > { %5546 = vmatprep.subr.bf16.mxu0 %v6241_v44  ;;  %v1775_v44 = vor.u32 %v1774_v35, %v1770_v31  ;;  %v6289_v31 = vld [vmem:[%s8253_s3 + $0x368] sm:$0xff]  }
  0x7e   : > { %5957 = vmatpush3.bf16.msra.mxu1 %v6240_v36  ;;  %v1777_v36 = vshrl.u32 %v7060_v17, 16  ;;  %v6291_v35 = vld [vmem:[%s8253_s3 + $0x3a8] sm:$0xff]   ;;  %v6298_v17 = vld [vmem:[%s8253_s3 + $0x358] sm:$0xff]  }
  0x7f   : > { %5958 = vmatprep.subr.bf16.mxu1 %v6243_v42 }
  0x80   : > { %5547 = vmatpush3.bf16.msra.mxu0 %v6242_v58  ;;  %v7114_v9 = vor.u32 %v1781_v33, %v1777_v36  ;;  %v6272_v58 = vld [vmem:[%s8253_s3 + $0x248] sm:$0xff]  }
  0x81   : > { %5548 = vmatprep.subr.bf16.mxu0 %v6245_v45 }
  0x82   : > { %5959 = vmatpush3.bf16.msra.mxu1 %v6243_v42 }
  0x83   : > { %5960 = vmatprep.subr.bf16.mxu1 %v6247_v19  ;;  %1267 = vmatmul.mubr.bf16.gmra.mxu0 %v4736_v48 }
  0x84   : > { %5549 = vmatpush3.bf16.msra.mxu0 %v6246_v51  ;;  %1597 = vmatprep.mubr.bf16.mxu0 %v6750_v5  ;;  %v620_v5 = vrot.slane %v4642_v62, 1  ;;  %v4811_v51 = vcombine.low %v6928_v18, %v7012_v60  ;;  %v4897_v18 = vcombine.low %v1775_v44, %v7114_v9  ;;  %v6292_v44 = vld [vmem:[%s8253_s3 + $0x360] sm:$0xff]  }
  0x85   : > { %5550 = vmatprep.subr.bf16.mxu0 %v6248_v56 }
  0x86   : > { %5961 = vmatpush3.bf16.msra.mxu1 %v6247_v19  ;;  %v4813_v8 = vcombine.low %v619_v23, %v620_v5  ;;  %v4898_v23 = vcombine.low %v1839_v46, %v1840_v12  ;;  %v6276_v19 = vld [vmem:[%s8253_s3 + $0x2c0] sm:$0xff]   ;;  %v6281_v46 = vld [vmem:[%s8253_s3 + $0x338] sm:$0xff]  }
  0x87   : > { %5962 = vmatprep.subr.bf16.mxu1 %v6250_v55 }
  0x88   : > { %5551 = vmatpush3.bf16.msra.mxu0 %v6249_v27  ;;  %v7127_v27 = vld [vmem:[%s6563_s20 + $0x20] sm:$0xf] }
  0x89   : > { %5588 = vmatprep.subr.bf16.mxu0 %v6251_v57  ;;  %v460_v57 = vld [vmem:[%s6563_s20 + $0x24] sm:$0x1] }
  0x8a   : > { %5963 = vmatpush3.bf16.msra.mxu1 %v6250_v55  ;;  %v7135_v62 = vcombine.low %v7127_v27, %v460_v57  ;;  %v6293_v57 = vld [vmem:[%s8253_s3 + $0x320] sm:$0xff]  }
  0x8b   : > { %5972 = vmatprep.subr.bf16.mxu1 %v6253_v59  ;;  %1598 = vmatmul.mubr.bf16.vlgmr.msra.gmra.mxu0 %v6764_v10  ;;  %v6257_v10 = vld [vmem:[%s8253_s3 + $0x2a8] sm:$0xff]  }
  0x8c   : > { %5589 = vmatpush3.bf16.msra.mxu0 %v6252_v63  ;;  %1605 = vmatprep.mubr.bf16.mxu0 %v6837_v53  ;;  %v609_v53 = vrot.slane %v607_v3, 1  ;;  %v6274_v63 = vld [vmem:[%s8253_s3 + $0x280] sm:$0xff]   ;;  %v6284_v3 = vld [vmem:[%s8253_s3 + $0x3b8] sm:$0xff]   ;;  %v1798_v22 = vshrl.u32 %v7135_v62, 16 }
  0x8d   : > { %5965 = vmatmul.mubr.bf16.vlgmr.msra.gmra.mxu1 %v6805_v32  ;;  %5590 = vmatprep.subr.bf16.mxu0 %v6254_v29  ;;  %v6258_v32 = vld [vmem:[%s8253_s3 + $0x268] sm:$0xff]  }
  0x8e   : > { %5973 = vmatpush3.bf16.msra.mxu1 %v6253_v59  ;;  %5968 = vmatprep.mubr.bf16.mxu1 %v6843_v54  ;;  %v6260_v54 = vld [vmem:[%s8253_s3 + $0x2a0] sm:$0xff]   ;;  %v610_v2 = vor.u32 %v609_v53, %v605_v11  ;;  %v7131_v59 = vld [vmem:[%s6563_s20 + $0x28] sm:$0xf]  ;;  %v464_v11 = vld [vmem:[%s6563_s20 + $0x34] sm:$0x1] }
  0x8f   : > { %5974 = vmatprep.subr.bf16.mxu1 %v6256_v43  ;;  %v7142_v60 = vcombine.low %v7131_v59, %v462_v61  ;;  %v7166_v53 = vld [vmem:[%s6563_s20 + $0x38] sm:$0xf] }
  0x90   : > { %5591 = vmatpush3.bf16.msra.mxu0 %v6255_v38  ;;  %v4812_v30 = vcombine.low %v6966_v37, %v610_v2  ;;  %v6280_v38 = vld [vmem:[%s8253_s3 + $0x378] sm:$0xff]   ;;  %v6285_v2 = vld [vmem:[%s8253_s3 + $0x370] sm:$0xff]  }
  0x91   : > { %5592 = vmatprep.subr.bf16.mxu0 %v6257_v10  ;;  %v1807_v15 = vshll.u32 %v7142_v60, 16  ;;  %v1844_v1 = vrot.slane %v7142_v60, 1  ;;  %v6302_v61 = vld [vmem:[%s8253_s3 + $0x398] sm:$0xff]  }
  0x92   : > { %5975 = vmatpush3.bf16.msra.mxu1 %v6256_v43  ;;  %v6275_v43 = vld [vmem:[%s8253_s3 + $0x240] sm:$0xff]  }
  0x93   : > { %5976 = vmatprep.subr.bf16.mxu1 %v6259_v4  ;;  %1606 = vmatmul.mubr.bf16.gmra.mxu0 %v6831_v47  ;;  %v7074_v47 = vld [vmem:[%s6563_s20 + $0x10] sm:$0xf] }
  0x94   : > { %5593 = vmatpush3.bf16.msra.mxu0 %v6258_v32  ;;  %1613 = vmatprep.mubr.bf16.mxu0 %v6872_v49  ;;  %v7092_v41 = vcombine.low %v7074_v47, %v456_v20  ;;  %v7095_v49 = vcombine.low %v7078_v14, %v458_v24  ;;  %v6287_v20 = vld [vmem:[%s8253_s3 + $0x3b0] sm:$0xff]   ;;  %v1809_v24 = vrot.slane %v1807_v15, 1 }
  0x95   : > { %5969 = vmatmul.mubr.bf16.gmra.mxu1 %v4813_v8  ;;  %5594 = vmatprep.subr.bf16.mxu0 %v6260_v54  ;;  %v1843_v8 = vrot.slane %v7135_v62, 1 }
  0x96   : > { %5977 = vmatpush3.bf16.msra.mxu1 %v6259_v4  ;;  %5988 = vmatprep.mubr.bf16.mxu1 %v4898_v23  ;;  %v1786_v42 = vshll.u32 %v7092_v41, 16  ;;  %v1793_v37 = vshll.u32 %v7095_v49, 16  ;;  %v1784_v45 = vshrl.u32 %v7092_v41, 16  ;;  %v1791_v48 = vshrl.u32 %v7095_v49, 16  ;;  %v7156_v4 = vld [vmem:[%s6563_s20 + $0x30] sm:$0xf] }
  0x97   : > { %5978 = vmatprep.subr.bf16.mxu1 %v6262_v6  ;;  %v1841_v29 = vrot.slane %v7092_v41, 1  ;;  %v1842_v5 = vrot.slane %v7095_v49, 1  ;;  %v7172_v54 = vcombine.low %v7156_v4, %v464_v11  ;;  %v1805_v23 = vshrl.u32 %v7142_v60, 16  ;;  %v6307_v11 = vld [vmem:[%s8253_s3 + $0x348] sm:$0xff]   ;;  %v6317_v49 = vld [vmem:[%s8253_s3 + $0x430] sm:$0xff]  }
  0x98   : > { %5595 = vmatpush3.bf16.msra.mxu0 %v6261_v25  ;;  %v1788_v55 = vrot.slane %v1786_v42, 1  ;;  %v1795_v56 = vrot.slane %v1793_v37, 1  ;;  %v6290_v42 = vld [vmem:[%s8253_s3 + $0x328] sm:$0xff]   ;;  %v7301_v15 = vcombine.low %v7156_v4, %v7166_v53 }
  0x99   : > { %5596 = vmatprep.subr.bf16.mxu0 %v6263_v34  ;;  %v7181_v25 = vcombine.low %v1841_v29, %v1842_v5  ;;  %v7184_v34 = vcombine.low %v7166_v53, %v466_v16  ;;  %v7221_v33 = vor.u32 %v1809_v24, %v1805_v23  ;;  %v6308_v16 = vld [vmem:[%s8253_s3 + $0x308] sm:$0xff]   ;;  %v468_v23 = vld [vmem:[%s6563_s20 + $0x44] sm:$0x1] }
  0x9a   : > { %5979 = vmatpush3.bf16.msra.mxu1 %v6262_v6  ;;  %v7158_v10 = vor.u32 %v1788_v55, %v1784_v45  ;;  %v7160_v32 = vor.u32 %v1795_v56, %v1791_v48  ;;  %v1800_v6 = vshll.u32 %v7135_v62, 16  ;;  %v4982_v56 = vcombine.low %v1840_v12, %v1841_v29  ;;  %v6303_v29 = vld [vmem:[%s8253_s3 + $0x350] sm:$0xff]   ;;  %v6321_v60 = vld [vmem:[%s8253_s3 + $0x428] sm:$0xff]  }
  0x9b   : > { %5980 = vmatprep.subr.bf16.mxu1 %v6266_v52  ;;  %1614 = vmatmul.mubr.bf16.gmra.mxu0 %v6876_v0  ;;  %v6271_v0 = vld [vmem:[%s8253_s3 + $0x288] sm:$0xff]   ;;  %v1819_v45 = vshrl.u32 %v7184_v34, 16  ;;  %v6319_v62 = vld [vmem:[%s8253_s3 + $0x470] sm:$0xff]  }
  0x9c   : > { %5597 = vmatpush3.bf16.msra.mxu0 %v6264_v26  ;;  %1621 = vmatprep.mubr.bf16.mxu0 %v4812_v30  ;;  %v7196_v21 = vcombine.low %v7158_v10, %v7160_v32  ;;  %v1845_v26 = vrot.slane %v7172_v54, 1  ;;  %v7210_v30 = vcombine.low %v1843_v8, %v1844_v1 }
  0x9d   : > { %5598 = vmatprep.subr.bf16.mxu0 %v6267_v28  ;;  %v1846_v28 = vrot.slane %v7184_v34, 1 }
  0x9e   : > { %5981 = vmatpush3.bf16.msra.mxu1 %v6266_v52  ;;  %v4896_v52 = vcombine.low %v7048_v13, %v7052_v50  ;;  %v1802_v13 = vrot.slane %v1800_v6, 1  ;;  %v6309_v6 = vld [vmem:[%s8253_s3 + $0x388] sm:$0xff]  }
  0x9f   : > { %5982 = vmatprep.subr.bf16.mxu1 %v6269_v7  ;;  %v7233_v37 = vcombine.low %v1845_v26, %v1846_v28 }
  0xa0   : > { %5599 = vmatpush3.bf16.msra.mxu0 %v6268_v39  ;;  %v7219_v36 = vor.u32 %v1802_v13, %v1798_v22  ;;  %v1814_v39 = vshll.u32 %v7172_v54, 16  ;;  %v7318_v22 = vld [vmem:[%s6563_s20 + $0x40] sm:$0xf]  ;;  %v6316_v13 = vld [vmem:[%s8253_s3 + $0x478] sm:$0xff]  }
  0xa1   : > { %5600 = vmatprep.subr.bf16.mxu0 %v6271_v0  ;;  %v7237_v0 = vcombine.low %v7074_v47, %v7078_v14  ;;  %v7333_v24 = vcombine.low %v7318_v22, %v468_v23 }
  0xa2   : > { %5983 = vmatpush3.bf16.msra.mxu1 %v6269_v7  ;;  %v6286_v7 = vld [vmem:[%s8253_s3 + $0x330] sm:$0xff]   ;;  %v7249_v48 = vcombine.low %v7219_v36, %v7221_v33 }
  0xa3   : > { %5984 = vmatprep.subr.bf16.mxu1 %v6273_v40  ;;  %1622 = vmatmul.mubr.bf16.gmra.mxu0 %v4811_v51  ;;  %v1816_v51 = vrot.slane %v1814_v39, 1  ;;  %v6326_v39 = vld [vmem:[%s8253_s3 + $0x460] sm:$0xff]  }
  0xa4   : > { %5601 = vmatpush3.bf16.msra.mxu0 %v6272_v58  ;;  %2114 = vmatprep.mubr.bf16.mxu0 %v4897_v18  ;;  %v6294_v58 = vld [vmem:[%s8253_s3 + $0x3a0] sm:$0xff]   ;;  %v6299_v18 = vld [vmem:[%s8253_s3 + $0x318] sm:$0xff]  }
  0xa5   : > { %5602 = vmatprep.subr.bf16.mxu0 %v6274_v63  ;;  %v7273_v63 = vcombine.low %v7127_v27, %v7131_v59 }
  0xa6   : > { %5985 = vmatpush3.bf16.msra.mxu1 %v6273_v40  ;;  %v1821_v40 = vshll.u32 %v7184_v34, 16  ;;  %v1826_v34 = vshrl.u32 %v7333_v24, 16 }
  0xa7   : > { %5986 = vmatprep.subr.bf16.mxu1 %v6276_v19 }
  0xa8   : > { %5603 = vmatpush3.bf16.msra.mxu0 %v6275_v43  ;;  %v1823_v55 = vrot.slane %v1821_v40, 1  ;;  %v6305_v43 = vld [vmem:[%s8253_s3 + $0x390] sm:$0xff]  }
  0xa9   : > { %5640 = vmatprep.subr.bf16.mxu0 %v6280_v38 }
  0xaa   : > { %5987 = vmatpush3.bf16.msra.mxu1 %v6276_v19  ;;  %v1812_v19 = vshrl.u32 %v7172_v54, 16  ;;  %v7269_v41 = vor.u32 %v1823_v55, %v1819_v45  ;;  %v6322_v54 = vld [vmem:[%s8253_s3 + $0x3e8] sm:$0xff]   ;;  %v6332_v45 = vld [vmem:[%s8253_s3 + $0x410] sm:$0xff]   ;;  %v4989_v55 = vcombine.low %v7166_v53, %v7318_v22 }
  0xab   : > { %5996 = vmatprep.subr.bf16.mxu1 %v6284_v3  ;;  %2115 = vmatmul.mubr.bf16.vlgmr.msra.gmra.mxu0 %v4896_v52  ;;  %v6310_v52 = vld [vmem:[%s8253_s3 + $0x340] sm:$0xff]   ;;  %v470_v53 = vld [vmem:[%s6563_s20 + $0x4c] sm:$0x1] }
  0xac   : > { %5641 = vmatpush3.bf16.msra.mxu0 %v6281_v46  ;;  %2122 = vmatprep.mubr.bf16.mxu0 %v7196_v21  ;;  %v7267_v12 = vor.u32 %v1816_v51, %v1812_v19  ;;  %v6312_v46 = vld [vmem:[%s8253_s3 + $0x380] sm:$0xff]   ;;  %v6334_v19 = vld [vmem:[%s8253_s3 + $0x450] sm:$0xff]   ;;  %v6336_v51 = vld [vmem:[%s8253_s3 + $0x408] sm:$0xff]  }
  0xad   : > { %5989 = vmatmul.mubr.bf16.vlgmr.msra.gmra.mxu1 %v7181_v25  ;;  %5642 = vmatprep.subr.bf16.mxu0 %v6285_v2  ;;  %v4981_v2 = vcombine.low %v7114_v9, %v7158_v10  ;;  %v6314_v9 = vld [vmem:[%s8253_s3 + $0x438] sm:$0xff]   ;;  %v4985_v10 = vcombine.low %v1842_v5, %v1843_v8  ;;  %v4984_v5 = vcombine.low %v7160_v32, %v7219_v36  ;;  %v6318_v8 = vld [vmem:[%s8253_s3 + $0x3f0] sm:$0xff]   ;;  %v6323_v32 = vld [vmem:[%s8253_s3 + $0x468] sm:$0xff]  }
  0xae   : > { %5997 = vmatpush3.bf16.msra.mxu1 %v6284_v3  ;;  %5992 = vmatprep.mubr.bf16.mxu1 %v7210_v30  ;;  %v7286_v38 = vcombine.low %v7267_v12, %v7269_v41  ;;  %v6304_v3 = vld [vmem:[%s8253_s3 + $0x310] sm:$0xff]   ;;  %v6324_v36 = vld [vmem:[%s8253_s3 + $0x420] sm:$0xff]   ;;  %v4987_v40 = vcombine.low %v7221_v33, %v7267_v12  ;;  %v6328_v33 = vld [vmem:[%s8253_s3 + $0x418] sm:$0xff]  }
  0xaf   : > { %5998 = vmatprep.subr.bf16.mxu1 %v6287_v20  ;;  %v6340_v12 = vld [vmem:[%s8253_s3 + $0x3c0] sm:$0xff]  }
  0xb0   : > { %5643 = vmatpush3.bf16.msra.mxu0 %v6286_v7  ;;  %v4980_v7 = vcombine.low %v7052_v50, %v7074_v47  ;;  %v4988_v50 = vcombine.low %v1844_v1, %v1845_v26  ;;  %v1847_v47 = vrot.slane %v7333_v24, 1  ;;  %v1828_v1 = vshll.u32 %v7333_v24, 16  ;;  %v6353_v24 = vld [vmem:[%s8253_s3 + $0x520] sm:$0xff]  }
  0xb1   : > { %5644 = vmatprep.subr.bf16.mxu0 %v6289_v31  ;;  %v6315_v31 = vld [vmem:[%s8253_s3 + $0x3f8] sm:$0xff]  }
  0xb2   : > { %5999 = vmatpush3.bf16.msra.mxu1 %v6287_v20  ;;  %v6311_v20 = vld [vmem:[%s8253_s3 + $0x300] sm:$0xff]   ;;  %v4991_v26 = vcombine.low %v1846_v28, %v1847_v47  ;;  %v1830_v28 = vrot.slane %v1828_v1, 1  ;;  %v6354_v1 = vld [vmem:[%s8253_s3 + $0x4d8] sm:$0xff]  }
  0xb3   : > { %6000 = vmatprep.subr.bf16.mxu1 %v6291_v35  ;;  %2123 = vmatmul.mubr.bf16.gmra.mxu0 %v7237_v0 }
  0xb4   : > { %5645 = vmatpush3.bf16.msra.mxu0 %v6290_v42  ;;  %2130 = vmatprep.mubr.bf16.mxu0 %v7249_v48  ;;  %v7390_v42 = vor.u32 %v1830_v28, %v1826_v34 }
  0xb5   : > { %5993 = vmatmul.mubr.bf16.gmra.mxu1 %v7233_v37  ;;  %5646 = vmatprep.subr.bf16.mxu0 %v6292_v44  ;;  %v4986_v44 = vcombine.low %v7131_v59, %v7156_v4  ;;  %v6333_v59 = vld [vmem:[%s8253_s3 + $0x3d0] sm:$0xff]   ;;  %v6338_v4 = vld [vmem:[%s8253_s3 + $0x448] sm:$0xff]  }
  0xb6   : > { %6001 = vmatpush3.bf16.msra.mxu1 %v6291_v35  ;;  %6012 = vmatprep.mubr.bf16.mxu1 %v4982_v56  ;;  %v4983_v35 = vcombine.low %v7078_v14, %v7127_v27  ;;  %v6325_v14 = vld [vmem:[%s8253_s3 + $0x3e0] sm:$0xff]   ;;  %v6331_v27 = vld [vmem:[%s8253_s3 + $0x458] sm:$0xff]   ;;  %v6337_v56 = vld [vmem:[%s8253_s3 + $0x3c8] sm:$0xff]  }
  0xb7   : > { %6002 = vmatprep.subr.bf16.mxu1 %v6294_v58 }
  0xb8   : > { %5647 = vmatpush3.bf16.msra.mxu0 %v6293_v57  ;;  %v6341_v57 = vld [vmem:[%s8253_s3 + $0x440] sm:$0xff]  }
  0xb9   : > { %5648 = vmatprep.subr.bf16.mxu0 %v6298_v17  ;;  %v7427_v17 = vld [vmem:[%s6563_s20 + $0x48] sm:$0xf] }
  0xba   : > { %6003 = vmatpush3.bf16.msra.mxu1 %v6294_v58  ;;  %v6329_v58 = vld [vmem:[%s8253_s3 + $0x3d8] sm:$0xff]  }
  0xbb   : > { %6004 = vmatprep.subr.bf16.mxu1 %v6302_v61  ;;  %2131 = vmatmul.mubr.bf16.gmra.mxu0 %v7273_v63 }
  0xbc   : > { %5649 = vmatpush3.bf16.msra.mxu0 %v6299_v18  ;;  %2138 = vmatprep.mubr.bf16.mxu0 %v7286_v38  ;;  %v6342_v18 = vld [vmem:[%s8253_s3 + $0x4f8] sm:$0xff]  }
  0xbd   : > { %5650 = vmatprep.subr.bf16.mxu0 %v6303_v29  ;;  %v6347_v29 = vld [vmem:[%s8253_s3 + $0x530] sm:$0xff]  }
  0xbe   : > { %6005 = vmatpush3.bf16.msra.mxu1 %v6302_v61  ;;  %v6339_v61 = vld [vmem:[%s8253_s3 + $0x400] sm:$0xff]  }
  0xbf   : > { %6006 = vmatprep.subr.bf16.mxu1 %v6305_v43 }
  0xc0   : > { %5651 = vmatpush3.bf16.msra.mxu0 %v6304_v3  ;;  %v4847_v3 = vcombine.low %v7427_v17, %v470_v53  ;;  %v482_v53 = vld [vmem:[%s6578_s14 + $0x2c] sm:$0x1] }
  0xc1   : > { %5652 = vmatprep.subr.bf16.mxu0 %v6307_v11  ;;  %v472_v11 = vld [vmem:[%s6578_s14 + $0x4] sm:$0x1] }
  0xc2   : > { %6007 = vmatpush3.bf16.msra.mxu1 %v6305_v43  ;;  %v6343_v43 = vld [vmem:[%s8253_s3 + $0x4b8] sm:$0xff]  }
  0xc3   : > { %6008 = vmatprep.subr.bf16.mxu1 %v6309_v6  ;;  %2139 = vmatmul.mubr.bf16.gmra.mxu0 %v7301_v15 }
  0xc4   : > { %5653 = vmatpush3.bf16.msra.mxu0 %v6308_v16  ;;  %2487 = vmatprep.mubr.bf16.mxu0 %v4981_v2  ;;  %v7455_v16 = vld [vmem:[%s6578_s14 + $0x8] sm:$0xf]  ;;  %v6346_v2 = vld [vmem:[%s8253_s3 + $0x4b0] sm:$0xff]  }
  0xc5   : > { %5654 = vmatprep.subr.bf16.mxu0 %v6310_v52  ;;  %v1848_v52 = vrot.slane %v4847_v3, 1 }
  0xc6   : > { %6009 = vmatpush3.bf16.msra.mxu1 %v6309_v6  ;;  %v6345_v6 = vld [vmem:[%s8253_s3 + $0x4f0] sm:$0xff]  }
  0xc7   : > { %6010 = vmatprep.subr.bf16.mxu1 %v6312_v46 }
  0xc8   : > { %5655 = vmatpush3.bf16.msra.mxu0 %v6311_v20  ;;  %v6350_v20 = vld [vmem:[%s8253_s3 + $0x528] sm:$0xff]  }
  0xc9   : > { %5692 = vmatprep.subr.bf16.mxu0 %v6314_v9  ;;  %v5066_v9 = vcombine.low %v1847_v47, %v1848_v52  ;;  %v7497_v47 = vld [vmem:[%s6578_s14 + $0x18] sm:$0xf]  ;;  %v6366_v52 = vld [vmem:[%s8253_s3 + $0x480] sm:$0xff]  }
  0xca   : > { %6011 = vmatpush3.bf16.msra.mxu1 %v6312_v46  ;;  %v474_v46 = vld [vmem:[%s6578_s14 + $0xc] sm:$0x1] }
  0xcb   : > { %6020 = vmatprep.subr.bf16.mxu1 %v6316_v13  ;;  %2488 = vmatmul.mubr.bf16.vlgmr.msra.gmra.mxu0 %v4980_v7 }
  0xcc   : > { %5693 = vmatpush3.bf16.msra.mxu0 %v6315_v31  ;;  %2495 = vmatprep.mubr.bf16.mxu0 %v4984_v5  ;;  %v1833_v31 = vshrl.u32 %v4847_v3, 16  ;;  %v476_v5 = vld [vmem:[%s6578_s14 + $0x14] sm:$0x1] }
  0xcd   : > { %6013 = vmatmul.mubr.bf16.vlgmr.msra.gmra.mxu1 %v4985_v10  ;;  %5694 = vmatprep.subr.bf16.mxu0 %v6317_v49  ;;  %v7491_v49 = vld [vmem:[%s6578_s14 + $0x10] sm:$0xf] }
  0xce   : > { %6021 = vmatpush3.bf16.msra.mxu1 %v6316_v13  ;;  %6016 = vmatprep.mubr.bf16.mxu1 %v4988_v50  ;;  %v7470_v13 = vcombine.low %v7455_v16, %v474_v46  ;;  %v484_v46 = vld [vmem:[%s6578_s14 + $0x34] sm:$0x1] }
  0xcf   : > { %6022 = vmatprep.subr.bf16.mxu1 %v6319_v62 }
  0xd0   : > { %5695 = vmatpush3.bf16.msra.mxu0 %v6318_v8  ;;  %v3085_v7 = vrot.slane %v7470_v13, 1  ;;  %v478_v8 = vld [vmem:[%s6578_s14 + $0x1c] sm:$0x1]  ;;  %v3022_v28 = vshrl.u32 %v7470_v13, 16 }
  0xd1   : > { %5696 = vmatprep.subr.bf16.mxu0 %v6321_v60  ;;  %v6357_v60 = vld [vmem:[%s8253_s3 + $0x518] sm:$0xff]  }
  0xd2   : > { %6023 = vmatpush3.bf16.msra.mxu1 %v6319_v62 }
  0xd3   : > { %6024 = vmatprep.subr.bf16.mxu1 %v6323_v32  ;;  %2496 = vmatmul.mubr.bf16.gmra.mxu0 %v4983_v35  ;;  %v6355_v35 = vld [vmem:[%s8253_s3 + $0x498] sm:$0xff]  }
  0xd4   : > { %5697 = vmatpush3.bf16.msra.mxu0 %v6322_v54  ;;  %2503 = vmatprep.mubr.bf16.mxu0 %v4987_v40  ;;  %v6360_v40 = vld [vmem:[%s8253_s3 + $0x510] sm:$0xff]  }
  0xd5   : > { %6017 = vmatmul.mubr.bf16.gmra.mxu1 %v4991_v26  ;;  %5698 = vmatprep.subr.bf16.mxu0 %v6324_v36  ;;  %v3024_v26 = vshll.u32 %v7470_v13, 16  ;;  %v7517_v36 = vcombine.low %v7491_v49, %v476_v5  ;;  %v6390_v13 = vld [vmem:[%s8253_s3 + $0x598] sm:$0xff]  }
  0xd6   : > { %6025 = vmatpush3.bf16.msra.mxu1 %v6323_v32  ;;  %6036 = vmatprep.mubr.bf16.mxu1 %v7181_v25  ;;  %v4990_v25 = vcombine.low %v7269_v41, %v7390_v42  ;;  %v6344_v41 = vld [vmem:[%s8253_s3 + $0x538] sm:$0xff]   ;;  %v6352_v32 = vld [vmem:[%s8253_s3 + $0x4a0] sm:$0xff]  }
  0xd7   : > { %6026 = vmatprep.subr.bf16.mxu1 %v6326_v39 }
  0xd8   : > { %5699 = vmatpush3.bf16.msra.mxu0 %v6325_v14 }
  0xd9   : > { %5700 = vmatprep.subr.bf16.mxu0 %v6328_v33  ;;  %v3026_v33 = vrot.slane %v3024_v26, 1 }
  0xda   : > { %6027 = vmatpush3.bf16.msra.mxu1 %v6326_v39  ;;  %v7520_v39 = vcombine.low %v7497_v47, %v478_v8 }
  0xdb   : > { %6028 = vmatprep.subr.bf16.mxu1 %v6331_v27  ;;  %2504 = vmatmul.mubr.bf16.gmra.mxu0 %v4986_v44  ;;  %v6359_v44 = vld [vmem:[%s8253_s3 + $0x490] sm:$0xff]  }
  0xdc   : > { %5701 = vmatpush3.bf16.msra.mxu0 %v6329_v58  ;;  %2511 = vmatprep.mubr.bf16.mxu0 %v4990_v25  ;;  %v6364_v58 = vld [vmem:[%s8253_s3 + $0x508] sm:$0xff]   ;;  %v3031_v25 = vshll.u32 %v7517_v36, 16 }
  0xdd   : > { %5702 = vmatprep.subr.bf16.mxu0 %v6332_v45  ;;  %v3087_v45 = vrot.slane %v7520_v39, 1 }
  0xde   : > { %6029 = vmatpush3.bf16.msra.mxu1 %v6331_v27 }
  0xdf   : > { %6030 = vmatprep.subr.bf16.mxu1 %v6334_v19 }
  0xe0   : > { %5703 = vmatpush3.bf16.msra.mxu0 %v6333_v59  ;;  %v3038_v59 = vshll.u32 %v7520_v39, 16 }
  0xe1   : > { %5704 = vmatprep.subr.bf16.mxu0 %v6336_v51  ;;  %v480_v51 = vld [vmem:[%s6578_s14 + $0x24] sm:$0x1] }
  0xe2   : > { %6031 = vmatpush3.bf16.msra.mxu1 %v6334_v19  ;;  %v3086_v19 = vrot.slane %v7517_v36, 1 }
  0xe3   : > { %6032 = vmatprep.subr.bf16.mxu1 %v6338_v4  ;;  %2512 = vmatmul.mubr.bf16.gmra.mxu0 %v4989_v55 }
  0xe4   : > { %5705 = vmatpush3.bf16.msra.mxu0 %v6337_v56  ;;  %2842 = vmatprep.mubr.bf16.mxu0 %v7196_v21  ;;  %v7451_v21 = vld [vmem:[%s6578_s14] sm:$0xf]  ;;  %v7549_v56 = vor.u32 %v3026_v33, %v3022_v28 }
  0xe5   : > { %5706 = vmatprep.subr.bf16.mxu0 %v6339_v61  ;;  %v7467_v23 = vcombine.low %v7451_v21, %v472_v11  ;;  %v6367_v61 = vld [vmem:[%s8253_s3 + $0x500] sm:$0xff]   ;;  %v5149_v8 = vcombine.low %v7451_v21, %v7455_v16 }
  0xe6   : > { %6033 = vmatpush3.bf16.msra.mxu1 %v6338_v4  ;;  %v7546_v4 = vld [vmem:[%s6578_s14 + $0x20] sm:$0xf] }
  0xe7   : > { %6034 = vmatprep.subr.bf16.mxu1 %v6341_v57  ;;  %v3084_v10 = vrot.slane %v7467_v23, 1  ;;  %v3017_v54 = vshll.u32 %v7467_v23, 16  ;;  %v3015_v34 = vshrl.u32 %v7467_v23, 16  ;;  %v7570_v11 = vcombine.low %v7546_v4, %v480_v51  ;;  %v486_v23 = vld [vmem:[%s6578_s14 + $0x3c] sm:$0x1] }
  0xe8   : > { %5707 = vmatpush3.bf16.msra.mxu0 %v6340_v12  ;;  %v5064_v12 = vcombine.low %v7318_v22, %v7427_v17  ;;  %v7576_v17 = vld [vmem:[%s6578_s14 + $0x30] sm:$0xf] }
  0xe9   : > { %5744 = vmatprep.subr.bf16.mxu0 %v6342_v18  ;;  %v5151_v50 = vcombine.low %v3084_v10, %v3085_v7  ;;  %v3019_v27 = vrot.slane %v3017_v54, 1  ;;  %v3029_v18 = vshrl.u32 %v7517_v36, 16  ;;  %v7610_v5 = vcombine.low %v7576_v17, %v484_v46 }
  0xea   : > { %6035 = vmatpush3.bf16.msra.mxu1 %v6341_v57  ;;  %v6363_v57 = vld [vmem:[%s8253_s3 + $0x488] sm:$0xff]  }
  0xeb   : > { %6044 = vmatprep.subr.bf16.mxu1 %v6344_v41  ;;  %2843 = vmatmul.mubr.bf16.vlgmr.msra.gmra.mxu0 %v7237_v0  ;;  %v1835_v0 = vshll.u32 %v4847_v3, 16  ;;  %v3020_v55 = vor.u32 %v3019_v27, %v3015_v34  ;;  %v3040_v3 = vrot.slane %v3038_v59, 1  ;;  %v3090_v34 = vrot.slane %v7610_v5, 1  ;;  %v6381_v27 = vld [vmem:[%s8253_s3 + $0x5a8] sm:$0xff]  }
  0xec   : > { %5745 = vmatpush3.bf16.msra.mxu0 %v6343_v43  ;;  %2850 = vmatprep.mubr.bf16.mxu0 %v7249_v48  ;;  %v6349_v48 = vld [vmem:[%s8253_s3 + $0x4a8] sm:$0xff]   ;;  %v3036_v43 = vshrl.u32 %v7520_v39, 16  ;;  %v3059_v59 = vshll.u32 %v7610_v5, 16  ;;  %v6410_v39 = vld [vmem:[%s8253_s3 + $0x6b0] sm:$0xff]  }
  0xed   : > { %6037 = vmatmul.mubr.bf16.vlgmr.msra.gmra.mxu1 %v7210_v30  ;;  %5746 = vmatprep.subr.bf16.mxu0 %v6345_v6  ;;  %v6348_v30 = vld [vmem:[%s8253_s3 + $0x4e8] sm:$0xff]   ;;  %v1837_v62 = vrot.slane %v1835_v0, 1  ;;  %v5150_v6 = vcombine.low %v3020_v55, %v7549_v56  ;;  %v6376_v0 = vld [vmem:[%s8253_s3 + $0x5f8] sm:$0xff]  }
  0xee   : > { %6045 = vmatpush3.bf16.msra.mxu1 %v6344_v41  ;;  %6040 = vmatprep.mubr.bf16.mxu1 %v7233_v37  ;;  %v6351_v37 = vld [vmem:[%s8253_s3 + $0x4e0] sm:$0xff]   ;;  %v7600_v10 = vor.u32 %v3040_v3, %v3036_v43  ;;  %v3057_v3 = vshrl.u32 %v7610_v5, 16  ;;  %v6414_v5 = vld [vmem:[%s8253_s3 + $0x6a8] sm:$0xff]  }
  0xef   : > { %6046 = vmatprep.subr.bf16.mxu1 %v6347_v29  ;;  %v6365_v41 = vld [vmem:[%s8253_s3 + $0x4c0] sm:$0xff]  }
  0xf0   : > { %5747 = vmatpush3.bf16.msra.mxu0 %v6346_v2  ;;  %v7583_v2 = vld [vmem:[%s6578_s14 + $0x38] sm:$0xf]  ;;  %v6386_v43 = vld [vmem:[%s8253_s3 + $0x5e0] sm:$0xff]  }
  0xf1   : > { %5748 = vmatprep.subr.bf16.mxu0 %v6348_v30  ;;  %v7593_v30 = vcombine.low %v3086_v19, %v3087_v45 }
  0xf2   : > { %6047 = vmatpush3.bf16.msra.mxu1 %v6347_v29  ;;  %v3033_v29 = vrot.slane %v3031_v25, 1 }
  0xf3   : > { %6048 = vmatprep.subr.bf16.mxu1 %v6350_v20  ;;  %2851 = vmatmul.mubr.bf16.gmra.mxu0 %v7273_v63  ;;  %v1838_v63 = vor.u32 %v1837_v62, %v1833_v31  ;;  %v3088_v31 = vrot.slane %v7570_v11, 1 }
  0xf4   : > { %5749 = vmatpush3.bf16.msra.mxu0 %v6349_v48  ;;  %2858 = vmatprep.mubr.bf16.mxu0 %v7286_v38  ;;  %v6358_v38 = vld [vmem:[%s8253_s3 + $0x4d0] sm:$0xff]   ;;  %v3045_v48 = vshll.u32 %v7570_v11, 16 }
  0xf5   : > { %6041 = vmatmul.mubr.bf16.gmra.mxu1 %v5066_v9  ;;  %5750 = vmatprep.subr.bf16.mxu0 %v6351_v37  ;;  %v5065_v14 = vcombine.low %v7390_v42, %v1838_v63  ;;  %v6362_v42 = vld [vmem:[%s8253_s3 + $0x4c8] sm:$0xff]   ;;  %v7598_v9 = vor.u32 %v3033_v29, %v3029_v18  ;;  %v6384_v18 = vld [vmem:[%s8253_s3 + $0x5a0] sm:$0xff]  }
  0xf6   : > { %6049 = vmatpush3.bf16.msra.mxu1 %v6350_v20  ;;  %6060 = vmatprep.mubr.bf16.mxu1 %v5151_v50  ;;  %v6372_v20 = vld [vmem:[%s8253_s3 + $0x5b8] sm:$0xff]   ;;  %v7613_v50 = vcombine.low %v7583_v2, %v486_v23  ;;  %v3047_v21 = vrot.slane %v3045_v48, 1  ;;  %v3061_v23 = vrot.slane %v3059_v59, 1 }
  0xf7   : > { %6050 = vmatprep.subr.bf16.mxu1 %v6353_v24  ;;  %v7627_v54 = vcombine.low %v7598_v9, %v7600_v10 }
  0xf8   : > { %5751 = vmatpush3.bf16.msra.mxu0 %v6352_v32  ;;  %v6377_v32 = vld [vmem:[%s8253_s3 + $0x5b0] sm:$0xff]   ;;  %v3091_v28 = vrot.slane %v7613_v50, 1  ;;  %v3066_v51 = vshll.u32 %v7613_v50, 16 }
  0xf9   : > { %5752 = vmatprep.subr.bf16.mxu0 %v6354_v1  ;;  %v3043_v1 = vshrl.u32 %v7570_v11, 16 }
  0xfa   : > { %6051 = vmatpush3.bf16.msra.mxu1 %v6353_v24  ;;  %v6373_v24 = vld [vmem:[%s8253_s3 + $0x578] sm:$0xff]  }
  0xfb   : > { %6052 = vmatprep.subr.bf16.mxu1 %v6357_v60  ;;  %2859 = vmatmul.mubr.bf16.gmra.mxu0 %v7301_v15  ;;  %v7552_v15 = vld [vmem:[%s6578_s14 + $0x28] sm:$0xf] }
  0xfc   : > { %5753 = vmatpush3.bf16.msra.mxu0 %v6355_v35  ;;  %2866 = vmatprep.mubr.bf16.mxu0 %v5065_v14  ;;  %v7573_v22 = vcombine.low %v7552_v15, %v482_v53  ;;  %v7664_v53 = vcombine.low %v3090_v34, %v3091_v28 }
  0xfd   : > { %5754 = vmatprep.subr.bf16.mxu0 %v6358_v38  ;;  %v6378_v38 = vld [vmem:[%s8253_s3 + $0x570] sm:$0xff]  }
  0xfe   : > { %6053 = vmatpush3.bf16.msra.mxu1 %v6357_v60  ;;  %v3052_v37 = vshll.u32 %v7573_v22, 16  ;;  %v3089_v62 = vrot.slane %v7573_v22, 1  ;;  %v6379_v60 = vld [vmem:[%s8253_s3 + $0x5f0] sm:$0xff]   ;;  %v3050_v63 = vshrl.u32 %v7573_v22, 16 }
  0xff   : > { %6054 = vmatprep.subr.bf16.mxu1 %v6360_v40 }
 0x100   : > { %5755 = vmatpush3.bf16.msra.mxu0 %v6359_v44  ;;  %v3054_v26 = vrot.slane %v3052_v37, 1  ;;  %v6383_v44 = vld [vmem:[%s8253_s3 + $0x5e8] sm:$0xff]   ;;  %v5235_v37 = vcombine.low %v3085_v7, %v3086_v19  ;;  %v7702_v7 = vor.u32 %v3061_v23, %v3057_v3 }
 0x101   : > { %5756 = vmatprep.subr.bf16.mxu0 %v6362_v42  ;;  %v7650_v42 = vor.u32 %v3047_v21, %v3043_v1  ;;  %v7708_v21 = vcombine.low %v7546_v4, %v7552_v15  ;;  %v6400_v23 = vld [vmem:[%s8253_s3 + $0x548] sm:$0xff]  }
 0x102   : > { %6055 = vmatpush3.bf16.msra.mxu1 %v6360_v40  ;;  %v7639_v40 = vcombine.low %v3088_v31, %v3089_v62  ;;  %v7652_v25 = vor.u32 %v3054_v26, %v3050_v63  ;;  %v6391_v26 = vld [vmem:[%s8253_s3 + $0x558] sm:$0xff]  }
 0x103   : > { %6056 = vmatprep.subr.bf16.mxu1 %v6364_v58  ;;  %2867 = vmatmul.mubr.bf16.gmra.mxu0 %v5064_v12 }
 0x104   : > { %5757 = vmatpush3.bf16.msra.mxu0 %v6363_v57  ;;  %3359 = vmatprep.mubr.bf16.mxu0 %v5150_v6  ;;  %v3064_v6 = vshrl.u32 %v7613_v50, 16  ;;  %v6415_v50 = vld [vmem:[%s8253_s3 + $0x660] sm:$0xff]  }
 0x105   : > { %5758 = vmatprep.subr.bf16.mxu0 %v6365_v41  ;;  %v7668_v41 = vcombine.low %v7491_v49, %v7497_v47 }
 0x106   : > { %6057 = vmatpush3.bf16.msra.mxu1 %v6364_v58 }
 0x107   : > { %6058 = vmatprep.subr.bf16.mxu1 %v6367_v61 }
 0x108   : > { %5759 = vmatpush3.bf16.msra.mxu0 %v6366_v52 }
 0x109   : > { %5796 = vmatprep.subr.bf16.mxu0 %v6372_v20  ;;  %v7682_v20 = vcombine.low %v7650_v42, %v7652_v25 }
 0x10a   : > { %6059 = vmatpush3.bf16.msra.mxu1 %v6367_v61  ;;  %v6382_v61 = vld [vmem:[%s8253_s3 + $0x568] sm:$0xff]  }
 0x10b   : > { %6068 = vmatprep.subr.bf16.mxu1 %v6376_v0  ;;  %v5448_v14 = vpop.f32.mrf.mxu0  ;;  %3360 = vmatmul.mubr.bf16.vlgmr.msra.gmra.mxu0 %v5149_v8  ;;  %v6385_v8 = vld [vmem:[%s8253_s3 + $0x560] sm:$0xff]  }
 0x10c   : > { %5797 = vmatpush3.bf16.msra.mxu0 %v6373_v24  ;;  %3367 = vmatprep.mubr.bf16.mxu0 %v7627_v54 }
 0x10d   : > { %v7629_v35 = vpop.f32.mrf.mxu1  ;;  %6061 = vmatmul.mubr.bf16.vlgmr.msra.gmra.mxu1 %v7593_v30  ;;  %v5449_v58 = vpop.f32.mrf.mxu0  ;;  %5798 = vmatprep.subr.bf16.mxu0 %v6377_v32  ;;  %v6394_v32 = vld [vmem:[%s8253_s3 + $0x5d8] sm:$0xff]  }
 0x10e   : > { %6069 = vmatpush3.bf16.msra.mxu1 %v6376_v0  ;;  %v5450_v55 = vadd.f32 %v5449_v58, %v5448_v14  ;;  %6064 = vmatprep.mubr.bf16.mxu1 %v7639_v40  ;;  %v3068_v0 = vrot.slane %v3066_v51, 1  ;;  %v6397_v14 = vld [vmem:[%s8253_s3 + $0x5d0] sm:$0xff]  }
 0x10f   : > { %v952_v33 = vpop.f32.mrf.mxu1  ;;  %6070 = vmatprep.subr.bf16.mxu1 %v6379_v60  ;;  %v5451_v12 = vpop.f32.mrf.mxu0 }
 0x110   : > { %v7676_v29 = vadd.f32 %v5450_v55, %v952_v33  ;;  %5799 = vmatpush3.bf16.msra.mxu0 %v6378_v38  ;;  %v7704_v19 = vor.u32 %v3068_v0, %v3064_v6  ;;  %v6395_v33 = vld [vmem:[%s8253_s3 + $0x590] sm:$0xff]   ;;  %v6404_v0 = vld [vmem:[%s8253_s3 + $0x5c0] sm:$0xff]  }
 0x111   : > { %v5919_v57 = vpop.f32.mrf.mxu1  ;;  %v5452_v46 = vpop.f32.mrf.mxu0  ;;  %5800 = vmatprep.subr.bf16.mxu0 %v6381_v27 }
 0x112   : > { %6071 = vmatpush3.bf16.msra.mxu1 %v6379_v60  ;;  %v5453_v48 = vadd.f32 %v5452_v46, %v5451_v12  ;;  %v6401_v12 = vld [vmem:[%s8253_s3 + $0x5c8] sm:$0xff]   ;;  %v7741_v46 = vcombine.low %v7576_v17, %v7583_v2 }
 0x113   : > { %6072 = vmatprep.subr.bf16.mxu1 %v6383_v44  ;;  %v955_v52 = vpop.f32.mrf.mxu1  ;;  %v5454_v24 = vpop.f32.mrf.mxu0  ;;  %3368 = vmatmul.mubr.bf16.gmra.mxu0 %v7668_v41 }
 0x114   : > { %v7696_v60 = vadd.f32 %v5453_v48, %v955_v52  ;;  %5801 = vmatpush3.bf16.msra.mxu0 %v6382_v61  ;;  %3375 = vmatprep.mubr.bf16.mxu0 %v7682_v20  ;;  %v6396_v61 = vld [vmem:[%s8253_s3 + $0x550] sm:$0xff]  }
 0x115   : > { %6065 = vmatmul.mubr.bf16.gmra.mxu1 %v7664_v53  ;;  %v5455_v36 = vpop.f32.mrf.mxu0  ;;  %5802 = vmatprep.subr.bf16.mxu0 %v6384_v18  ;;  %v5922_v59 = vpop.f32.mrf.mxu1 }
 0x116   : > { %6073 = vmatpush3.bf16.msra.mxu1 %v6383_v44  ;;  %v5456_v1 = vadd.f32 %v5455_v36, %v5454_v24  ;;  %6084 = vmatprep.mubr.bf16.mxu1 %v5235_v37  ;;  %v7724_v44 = vcombine.low %v7702_v7, %v7704_v19  ;;  %v6402_v24 = vld [vmem:[%s8253_s3 + $0x580] sm:$0xff]  }
 0x117   : > { %6074 = vmatprep.subr.bf16.mxu1 %v6386_v43  ;;  %v5457_v63 = vpop.f32.mrf.mxu0  ;;  %v968_v55 = vpop.f32.mrf.mxu1 }
 0x118   : > { %v7714_v38 = vadd.f32 %v7629_v35, %v5456_v1  ;;  %5803 = vmatpush3.bf16.msra.mxu0 %v6385_v8  ;;  %v5234_v8 = vcombine.low %v7549_v56, %v7598_v9  ;;  %v488_v1 = vld [vmem:[%s6578_s14 + $0x44] sm:$0x1]  ;;  %v6407_v56 = vld [vmem:[%s8253_s3 + $0x6b8] sm:$0xff]  }
 0x119   : > { %v5458_v27 = vpop.f32.mrf.mxu0  ;;  %5804 = vmatprep.subr.bf16.mxu0 %v6390_v13  ;;  %v5923_v3 = vpop.f32.mrf.mxu1  ;;  %v7758_v13 = vld [vmem:[%s6578_s14 + $0x40] sm:$0xf] }
 0x11a   : > { %6075 = vmatpush3.bf16.msra.mxu1 %v6386_v43  ;;  %v5459_v58 = vadd.f32 %v5458_v27, %v5457_v63  ;;  %v5238_v27 = vcombine.low %v3087_v45, %v3088_v31 }
 0x11b   : > { %6076 = vmatprep.subr.bf16.mxu1 %v6394_v32  ;;  %v5460_v35 = vpop.f32.mrf.mxu0  ;;  %3376 = vmatmul.mubr.bf16.gmra.mxu0 %v7708_v21  ;;  %v971_v37 = vpop.f32.mrf.mxu1 }
 0x11c   : > { %v7727_v51 = vadd.f32 %v5919_v57, %v5459_v58  ;;  %5805 = vmatpush3.bf16.msra.mxu0 %v6391_v26  ;;  %3383 = vmatprep.mubr.bf16.mxu0 %v7724_v44  ;;  %v6399_v57 = vld [vmem:[%s8253_s3 + $0x588] sm:$0xff]   ;;  %v6403_v26 = vld [vmem:[%s8253_s3 + $0x540] sm:$0xff]   ;;  %v7777_v58 = vcombine.low %v7758_v13, %v488_v1 }
 0x11d   : > { %v5461_v18 = vpop.f32.mrf.mxu0  ;;  %5806 = vmatprep.subr.bf16.mxu0 %v6395_v33 }
 0x11e   : > { %6077 = vmatpush3.bf16.msra.mxu1 %v6394_v32  ;;  %v5462_v43 = vadd.f32 %v5461_v18, %v5460_v35  ;;  %v5233_v35 = vcombine.low %v7455_v16, %v7491_v49  ;;  %v6408_v16 = vld [vmem:[%s8253_s3 + $0x670] sm:$0xff]   ;;  %v5237_v49 = vcombine.low %v7600_v10, %v7650_v42  ;;  %v3092_v18 = vrot.slane %v7777_v58, 1 }
 0x11f   : > { %6078 = vmatprep.subr.bf16.mxu1 %v6397_v14  ;;  %v5463_v6 = vpop.f32.mrf.mxu0  ;;  %v6409_v10 = vld [vmem:[%s8253_s3 + $0x630] sm:$0xff]  }
 0x120   : > { %v7743_v52 = vadd.f32 %v5462_v43, %v968_v55  ;;  %5807 = vmatpush3.bf16.msra.mxu0 %v6396_v61 }
 0x121   : > { %v5464_v48 = vpop.f32.mrf.mxu0  ;;  %5808 = vmatprep.subr.bf16.mxu0 %v6399_v57 }
 0x122   : > { %6079 = vmatpush3.bf16.msra.mxu1 %v6397_v14  ;;  %v5465_v32 = vadd.f32 %v5464_v48, %v5463_v6  ;;  %v6405_v14 = vld [vmem:[%s8253_s3 + $0x678] sm:$0xff]   ;;  %v5236_v48 = vcombine.low %v7497_v47, %v7546_v4  ;;  %v5240_v47 = vcombine.low %v7652_v25, %v7702_v7  ;;  %v3071_v4 = vshrl.u32 %v7777_v58, 16 }
 0x123   : > { %6080 = vmatprep.subr.bf16.mxu1 %v6401_v12  ;;  %v5466_v36 = vpop.f32.mrf.mxu0  ;;  %3384 = vmatmul.mubr.bf16.gmra.mxu0 %v7741_v46  ;;  %v6422_v25 = vld [vmem:[%s8253_s3 + $0x698] sm:$0xff]  }
 0x124   : > { %v7761_v63 = vadd.f32 %v5465_v32, %v971_v37  ;;  %5809 = vmatpush3.bf16.msra.mxu0 %v6400_v23  ;;  %3732 = vmatprep.mubr.bf16.mxu0 %v5234_v8  ;;  %v5244_v23 = vcombine.low %v3091_v28, %v3092_v18  ;;  %v6417_v8 = vld [vmem:[%s8253_s3 + $0x6a0] sm:$0xff]  }
 0x125   : > { %v5467_v9 = vpop.f32.mrf.mxu0  ;;  %5810 = vmatprep.subr.bf16.mxu0 %v6402_v24  ;;  %v6413_v24 = vld [vmem:[%s8253_s3 + $0x628] sm:$0xff]  }
 0x126   : > { %6081 = vmatpush3.bf16.msra.mxu1 %v6401_v12  ;;  %v5468_v33 = vadd.f32 %v5467_v9, %v5466_v36  ;;  %v6406_v12 = vld [vmem:[%s8253_s3 + $0x638] sm:$0xff]  }
 0x127   : > { %6082 = vmatprep.subr.bf16.mxu1 %v6404_v0  ;;  %v5469_v55 = vpop.f32.mrf.mxu0 }
 0x128   : > { %v7781_v61 = vadd.f32 %v5922_v59, %v5468_v33  ;;  %5811 = vmatpush3.bf16.msra.mxu0 %v6403_v26  ;;  %v5241_v59 = vcombine.low %v3089_v62, %v3090_v34  ;;  %v6412_v62 = vld [vmem:[%s8253_s3 + $0x668] sm:$0xff]   ;;  %v3073_v34 = vshll.u32 %v7777_v58, 16 }
 0x129   : > { %v5470_v45 = vpop.f32.mrf.mxu0  ;;  %5848 = vmatprep.subr.bf16.mxu0 %v6405_v14  ;;  %v6416_v14 = vld [vmem:[%s8253_s3 + $0x620] sm:$0xff]  }
 0x12a   : > { %6083 = vmatpush3.bf16.msra.mxu1 %v6404_v0  ;;  %v5471_v11 = vadd.f32 %v5470_v45, %v5469_v55  ;;  %v3075_v28 = vrot.slane %v3073_v34, 1 }
 0x12b   : > { %6092 = vmatprep.subr.bf16.mxu1 %v6407_v56  ;;  %v5500_v57 = vpop.f32.mrf.mxu0  ;;  %3733 = vmatmul.mubr.bf16.vlgmr.msra.gmra.mxu0 %v5233_v35 }
 0x12c   : > { %v7799_v43 = vadd.f32 %v5923_v3, %v5471_v11  ;;  %5849 = vmatpush3.bf16.msra.mxu0 %v6406_v12  ;;  %3740 = vmatprep.mubr.bf16.mxu0 %v5237_v49 }
 0x12d   : > { %v5942_v31 = vpop.f32.mrf.mxu1  ;;  %6085 = vmatmul.mubr.bf16.vlgmr.msra.gmra.mxu1 %v5238_v27  ;;  %v5501_v22 = vpop.f32.mrf.mxu0  ;;  %5850 = vmatprep.subr.bf16.mxu0 %v6408_v16  ;;  %v7841_v27 = vor.u32 %v3075_v28, %v3071_v4  ;;  %v6420_v16 = vld [vmem:[%s8253_s3 + $0x618] sm:$0xff]  }
 0x12e   : > { %6093 = vmatpush3.bf16.msra.mxu1 %v6407_v56  ;;  %v5502_v42 = vadd.f32 %v5501_v22, %v5500_v57  ;;  %6088 = vmatprep.mubr.bf16.mxu1 %v5241_v59 }
 0x12f   : > { %v1309_v6 = vpop.f32.mrf.mxu1  ;;  %6094 = vmatprep.subr.bf16.mxu1 %v6410_v39  ;;  %v5503_v0 = vpop.f32.mrf.mxu0 }
 0x130   : > { %v1310_v37 = vadd.f32 %v5502_v42, %v1309_v6  ;;  %5851 = vmatpush3.bf16.msra.mxu0 %v6409_v10  ;;  %v6424_v6 = vld [vmem:[%s8253_s3 + $0x610] sm:$0xff]   ;;  %v6429_v10 = vld [vmem:[%s8253_s3 + $0x688] sm:$0xff]   ;;  %v5242_v42 = vcombine.low %v7583_v2, %v7758_v13 }
 0x131   : > { %v5943_v3 = vpop.f32.mrf.mxu1  ;;  %v5504_v32 = vpop.f32.mrf.mxu0  ;;  %5852 = vmatprep.subr.bf16.mxu0 %v6412_v62 }
 0x132   : > { %6095 = vmatpush3.bf16.msra.mxu1 %v6410_v39  ;;  %v7830_v1 = vadd.f32 %v1310_v37, %v7676_v29  ;;  %v5505_v26 = vadd.f32 %v5504_v32, %v5503_v0  ;;  %v6419_v29 = vld [vmem:[%s8253_s3 + $0x658] sm:$0xff]   ;;  %v5239_v39 = vcombine.low %v7552_v15, %v7576_v17  ;;  %v5243_v15 = vcombine.low %v7704_v19, %v7841_v27  ;;  %v6430_v37 = vld [vmem:[%s8253_s3 + $0x640] sm:$0xff]   ;;  %v7892_v32 = vld [vmem:[%s6578_s14 + $0x48] sm:$0xf] }
 0x133   : > { %6096 = vmatprep.subr.bf16.mxu1 %v6414_v5  ;;  %v1312_v36 = vpop.f32.mrf.mxu1  ;;  %v5506_v56 = vpop.f32.mrf.mxu0  ;;  %3741 = vmatmul.mubr.bf16.gmra.mxu0 %v5236_v48 }
 0x134   : > { %v1313_v9 = vadd.f32 %v5505_v26, %v1312_v36  ;;  %5853 = vmatpush3.bf16.msra.mxu0 %v6413_v24  ;;  %3748 = vmatprep.mubr.bf16.mxu0 %v5240_v47  ;;  %v490_v36 = vld [vmem:[%s6578_s14 + $0x4c] sm:$0x1]  ;;  %v6431_v47 = vld [vmem:[%s8253_s3 + $0x600] sm:$0xff]  }
 0x135   : > { %6089 = vmatmul.mubr.bf16.gmra.mxu1 %v5244_v23  ;;  %v5507_v7 = vpop.f32.mrf.mxu0  ;;  %5854 = vmatprep.subr.bf16.mxu0 %v6415_v50  ;;  %v7846_v55 = vpop.f32.mrf.mxu1  ;;  %v6428_v23 = vld [vmem:[%s8253_s3 + $0x608] sm:$0xff]   ;;  %v5100_v26 = vcombine.low %v7892_v32, %v490_v36 }
 0x136   : > { %6097 = vmatpush3.bf16.msra.mxu1 %v6414_v5  ;;  %v7844_v33 = vadd.f32 %v1313_v9, %v7696_v60  ;;  %v5508_v35 = vadd.f32 %v5507_v7, %v5506_v56  ;;  %6108 = vmatprep.mubr.bf16.mxu1 %v7593_v30  ;;  %v6425_v60 = vld [vmem:[%s8253_s3 + $0x690] sm:$0xff]  }
 0x137   : > { %6098 = vmatprep.subr.bf16.mxu1 %v6417_v8  ;;  %v5509_v12 = vpop.f32.mrf.mxu0  ;;  %v1325_v11 = vpop.f32.mrf.mxu1  ;;  %v6423_v30 = vld [vmem:[%s8253_s3 + $0x650] sm:$0xff]  }
 0x138   : > { %v1318_v45 = vadd.f32 %v5942_v31, %v5508_v35  ;;  %5855 = vmatpush3.bf16.msra.mxu0 %v6416_v14 }
 0x139   : > { %v5510_v49 = vpop.f32.mrf.mxu0  ;;  %5856 = vmatprep.subr.bf16.mxu0 %v6419_v29  ;;  %v5947_v19 = vpop.f32.mrf.mxu1 }
 0x13a   : > { %6099 = vmatpush3.bf16.msra.mxu1 %v6417_v8  ;;  %v7863_v17 = vadd.f32 %v1318_v45, %v7714_v38  ;;  %v5511_v31 = vadd.f32 %v5510_v49, %v5509_v12  ;;  %v6427_v38 = vld [vmem:[%s8253_s3 + $0x648] sm:$0xff]  }
 0x13b   : > { %6100 = vmatprep.subr.bf16.mxu1 %v6422_v25  ;;  %v5512_v59 = vpop.f32.mrf.mxu0  ;;  %3749 = vmatmul.mubr.bf16.gmra.mxu0 %v5239_v39  ;;  %v1328_v48 = vpop.f32.mrf.mxu1 }
 0x13c   : > { %v1321_v57 = vadd.f32 %v5943_v3, %v5511_v31  ;;  %5857 = vmatpush3.bf16.msra.mxu0 %v6420_v16  ;;  %3756 = vmatprep.mubr.bf16.mxu0 %v5243_v15 }
 0x13d   : > { %v5513_v5 = vpop.f32.mrf.mxu0  ;;  %5858 = vmatprep.subr.bf16.mxu0 %v6423_v30 }
 0x13e   : > { %6101 = vmatpush3.bf16.msra.mxu1 %v6422_v25  ;;  %v7875_v22 = vadd.f32 %v1321_v57, %v7727_v51  ;;  %v5514_v62 = vadd.f32 %v5513_v5, %v5512_v59  ;;  %v6432_v51 = vld [vmem:[%s8253_s3 + $0x680] sm:$0xff]  }
 0x13f   : > { %6102 = vmatprep.subr.bf16.mxu1 %v6425_v60  ;;  %v5515_v34 = vpop.f32.mrf.mxu0 }
 0x140   : > { %v1326_v3 = vadd.f32 %v5514_v62, %v1325_v11  ;;  %5859 = vmatpush3.bf16.msra.mxu0 %v6424_v6  ;;  %v3078_v11 = vshrl.u32 %v5100_v26, 16 }
 0x141   : > { %v5516_v0 = vpop.f32.mrf.mxu0  ;;  %5860 = vmatprep.subr.bf16.mxu0 %v6427_v38 }
 0x142   : > { %6103 = vmatpush3.bf16.msra.mxu1 %v6425_v60  ;;  %v7889_v2 = vadd.f32 %v1326_v3, %v7743_v52  ;;  %v5517_v24 = vadd.f32 %v5516_v0, %v5515_v34  ;;  %v5317_v0 = vcombine.low %v7758_v13, %v7892_v32 }
 0x143   : > { %6104 = vmatprep.subr.bf16.mxu1 %v6429_v10  ;;  %v5518_v8 = vpop.f32.mrf.mxu0  ;;  %3757 = vmatmul.mubr.bf16.gmra.mxu0 %v5242_v42 }
 0x144   : > { %v1329_v50 = vadd.f32 %v5517_v24, %v1328_v48  ;;  %5861 = vmatpush3.bf16.msra.mxu0 %v6428_v23  ;;  %4087 = vmatprep.mubr.bf16.mxu0 %v7627_v54  ;;  %v3093_v54 = vrot.slane %v5100_v26, 1 }
 0x145   : > { %v5519_v4 = vpop.f32.mrf.mxu0  ;;  %5862 = vmatprep.subr.bf16.mxu0 %v6430_v37 }
 0x146   : > { %6105 = vmatpush3.bf16.msra.mxu1 %v6429_v10  ;;  %v7900_v52 = vadd.f32 %v1329_v50, %v7761_v63  ;;  %v5520_v28 = vadd.f32 %v5519_v4, %v5518_v8  ;;  %v5319_v60 = vcombine.low %v3092_v18, %v3093_v54 }
 0x147   : > { %6106 = vmatprep.subr.bf16.mxu1 %v6432_v51  ;;  %v5521_v56 = vpop.f32.mrf.mxu0 }
 0x148   : > { %v1334_v9 = vadd.f32 %v7846_v55, %v5520_v28  ;;  %5863 = vmatpush3.bf16.msra.mxu0 %v6431_v47  ;;  %v3080_v55 = vshll.u32 %v5100_v26, 16 }
 0x149   : > { %v5522_v14 = vpop.f32.mrf.mxu0 }
 0x14a   : > { %6107 = vmatpush3.bf16.msra.mxu1 %v6432_v51  ;;  %v7905_v25 = vadd.f32 %v1334_v9, %v7781_v61  ;;  %v5523_v7 = vadd.f32 %v5522_v14, %v5521_v56  ;;  %v3082_v30 = vrot.slane %v3080_v55, 1 }
 0x14b   : > { %v5552_v35 = vpop.f32.mrf.mxu0  ;;  %4088 = vmatmul.mubr.bf16.vlgmr.msra.gmra.mxu0 %v7668_v41 }
 0x14c   : > { %v1337_v63 = vadd.f32 %v5947_v19, %v5523_v7  ;;  %4095 = vmatprep.mubr.bf16.mxu0 %v7682_v20 }
 0x14d   : > { %v5966_v29 = vpop.f32.mrf.mxu1  ;;  %6109 = vmatmul.mubr.bf16.vlgmr.msra.gmra.mxu1 %v7639_v40  ;;  %v5553_v39 = vpop.f32.mrf.mxu0 }
 0x14e   : > { %6112 = vmatprep.mubr.bf16.mxu1 %v7664_v53  ;;  %v1355_v45 = vadd.f32 %v1337_v63, %v7799_v43  ;;  %v5554_v61 = vadd.f32 %v5553_v39, %v5552_v35  ;;  %v3083_v43 = vor.u32 %v3082_v30, %v3078_v11 }
 0x14f   : > { %v1664_v12 = vpop.f32.mrf.mxu1  ;;  %v5555_v40 = vpop.f32.mrf.mxu0 }
 0x150   : > { %v1665_v49 = vadd.f32 %v5554_v61, %v1664_v12  ;;  %v5318_v19 = vcombine.low %v7841_v27, %v3083_v43 }
 0x151   : > { %v5967_v16 = vpop.f32.mrf.mxu1  ;;  %v5556_v41 = vpop.f32.mrf.mxu0 }
 0x152   : > { %v1703_v53 = vadd.f32 %v1665_v49, %v7830_v1  ;;  %v5557_v31 = vadd.f32 %v5556_v41, %v5555_v40 }
 0x153   : > { %v1667_v15 = vpop.f32.mrf.mxu1  ;;  %v5558_v20 = vpop.f32.mrf.mxu0  ;;  %4096 = vmatmul.mubr.bf16.gmra.mxu0 %v7708_v21 }
 0x154   : > { %v1668_v59 = vadd.f32 %v5557_v31, %v1667_v15  ;;  %4103 = vmatprep.mubr.bf16.mxu0 %v7724_v44 }
 0x155   : > { %6113 = vmatmul.mubr.bf16.gmra.mxu1 %v5319_v60  ;;  %v5559_v57 = vpop.f32.mrf.mxu0  ;;  %v5970_v58 = vpop.f32.mrf.mxu1 }
 0x156   : > { %v1704_v18 = vadd.f32 %v1668_v59, %v7844_v33  ;;  %v5560_v6 = vadd.f32 %v5559_v57, %v5558_v20 }
 0x157   : > { %v5561_v10 = vpop.f32.mrf.mxu0  ;;  %v1680_v1 = vpop.f32.mrf.mxu1 }
 0x158   : > { %v1673_v5 = vadd.f32 %v5966_v29, %v5560_v6 }
 0x159   : > { %v5562_v38 = vpop.f32.mrf.mxu0  ;;  %v5971_v3 = vpop.f32.mrf.mxu1 }
 0x15a   : > { %v1705_v62 = vadd.f32 %v1673_v5, %v7863_v17  ;;  %v5563_v34 = vadd.f32 %v5562_v38, %v5561_v10 }
 0x15b   : > { %v5564_v42 = vpop.f32.mrf.mxu0  ;;  %4104 = vmatmul.mubr.bf16.gmra.mxu0 %v7741_v46  ;;  %v1683_v37 = vpop.f32.mrf.mxu1 }
 0x15c   : > { %v1676_v21 = vadd.f32 %v5967_v16, %v5563_v34  ;;  %4111 = vmatprep.mubr.bf16.mxu0 %v5318_v19 }
 0x15d   : > { %v5565_v44 = vpop.f32.mrf.mxu0 }
 0x15e   : > { %v1706_v23 = vadd.f32 %v1676_v21, %v7875_v22  ;;  %v5566_v33 = vadd.f32 %v5565_v44, %v5564_v42 }
 0x15f   : > { %v5567_v51 = vpop.f32.mrf.mxu0 }
 0x160   : > { %v1681_v27 = vadd.f32 %v5566_v33, %v1680_v1 }
 0x161   : > { %v5568_v48 = vpop.f32.mrf.mxu0 }
 0x162   : > { %v1707_v17 = vadd.f32 %v1681_v27, %v7889_v2  ;;  %v5569_v24 = vadd.f32 %v5568_v48, %v5567_v51 }
 0x163   : > { %v5570_v8 = vpop.f32.mrf.mxu0  ;;  %4112 = vmatmul.mubr.bf16.gmra.mxu0 %v5317_v0 }
 0x164   : > { %v1684_v46 = vadd.f32 %v5569_v24, %v1683_v37 }
 0x165   : > { %v5571_v36 = vpop.f32.mrf.mxu0 }
 0x166   : > { %v1708_v50 = vadd.f32 %v1684_v46, %v7900_v52  ;;  %v5572_v47 = vadd.f32 %v5571_v36, %v5570_v8 }
 0x167   : > { %v5573_v4 = vpop.f32.mrf.mxu0 }
 0x168   : > { %v1689_v22 = vadd.f32 %v5970_v58, %v5572_v47 }
 0x169   : > { %v5574_v28 = vpop.f32.mrf.mxu0 }
 0x16a   : > { %v1709_v26 = vadd.f32 %v1689_v22, %v7905_v25  ;;  %v5575_v56 = vadd.f32 %v5574_v28, %v5573_v4 }
 0x16b   : > { %v5604_v32 = vpop.f32.mrf.mxu0 }
 0x16c   : > { %v1692_v9 = vadd.f32 %v5971_v3, %v5575_v56 }
 0x16d   : > { %v5990_v13 = vpop.f32.mrf.mxu1  ;;  %v5605_v7 = vpop.f32.mrf.mxu0 }
 0x16e   : > { %v1710_v2 = vadd.f32 %v1692_v9, %v1355_v45  ;;  %v5606_v29 = vadd.f32 %v5605_v7, %v5604_v32 }
 0x16f   : > { %v2181_v14 = vpop.f32.mrf.mxu1  ;;  %v5607_v35 = vpop.f32.mrf.mxu0 }
 0x170   : > { %v2182_v63 = vadd.f32 %v5606_v29, %v2181_v14  ;;  %v8260_v29 = vmov 0 }
 0x171   : > { %v5991_v54 = vpop.f32.mrf.mxu1  ;;  %v5608_v12 = vpop.f32.mrf.mxu0  ;;  %v8261_v29 = vsel %vm7941_vm3, 4294967295, %v8260_v29 }
 0x172   : > { %v2220_v52 = vadd.f32 %v2182_v63, %v1703_v53  ;;  %v5609_v39 = vadd.f32 %v5608_v12, %v5607_v35  ;;  %8262 = vst [vmem:[#allocation3_spill] sm:$0xff] %v8261_v29  ;;  %v5364_v35 = vld [vmem:[%s6568_s30 + $0xc] sm:$0x1] }
 0x173   : > { %v2184_v55 = vpop.f32.mrf.mxu1  ;;  %v5610_v61 = vpop.f32.mrf.mxu0 }
 0x174   : > { %v2185_v16 = vadd.f32 %v5609_v39, %v2184_v55 }
 0x175   : > { %v5611_v60 = vpop.f32.mrf.mxu0  ;;  %v5994_v40 = vpop.f32.mrf.mxu1 }
 0x176   : > { %v2221_v25 = vadd.f32 %v2185_v16, %v1704_v18  ;;  %v5612_v49 = vadd.f32 %v5611_v60, %v5610_v61  ;;  %v4299_v16 = vsel %vm7950_vm4, 0, %v5364_v35 }
 0x177   : > { %v5613_v11 = vpop.f32.mrf.mxu0  ;;  %v2197_v15 = vpop.f32.mrf.mxu1  ;;  %5365 = vst [vmem:[%s6568_s30 + $0xc] sm:$0x1] %v4299_v16 }
 0x178   : > { %v2190_v30 = vadd.f32 %v5990_v13, %v5612_v49  ;;  %v5366_v49 = vld [vmem:[%s6568_s30 + $0x14] sm:$0x1] }
 0x179   : > { %v5614_v41 = vpop.f32.mrf.mxu0  ;;  %v5995_v57 = vpop.f32.mrf.mxu1 }
 0x17a   : > { %v2222_v31 = vadd.f32 %v2190_v30, %v1705_v62  ;;  %v5615_v45 = vadd.f32 %v5614_v41, %v5613_v11 }
 0x17b   : > { %v5616_v20 = vpop.f32.mrf.mxu0  ;;  %v2200_v19 = vpop.f32.mrf.mxu1 }
 0x17c   : > { %v2193_v59 = vadd.f32 %v5991_v54, %v5615_v45  ;;  %v5348_v54 = vld [vmem:[%s6568_s30 + $0x8] sm:$0x1] }
 0x17d   : > { %v5617_v43 = vpop.f32.mrf.mxu0  ;;  %v4273_v55 = vsel %vm7941_vm3, 0, %v5348_v54 }
 0x17e   : > { %v7927_v58 = vadd.f32 %v2193_v59, %v1706_v23  ;;  %v5618_v53 = vadd.f32 %v5617_v43, %v5616_v20  ;;  %5349 = vst [vmem:[%s6568_s30 + $0x8] sm:$0x1] %v4273_v55  ;;  %v5360_v55 = vld [vmem:[%s6568_s30 + $0x38] sm:$0x1] }
 0x17f   : > { %v5619_v6 = vpop.f32.mrf.mxu0 }
 0x180   : > { %v2198_v10 = vadd.f32 %v5618_v53, %v2197_v15  ;;  %v4302_v15 = vsel %vm7950_vm4, 0, %v5366_v49  ;;  %v5352_v53 = vld [vmem:[%s6568_s30 + $0x18] sm:$0x1] }
 0x181   : > { %v5620_v5 = vpop.f32.mrf.mxu0  ;;  %5367 = vst [vmem:[%s6568_s30 + $0x14] sm:$0x1] %v4302_v15  ;;  %v5378_v15 = vld [vmem:[%s6568_s30 + $0x44] sm:$0x1] }
 0x182   : > { %v7929_v38 = vadd.f32 %v2198_v10, %v1707_v17  ;;  %v5621_v18 = vadd.f32 %v5620_v5, %v5619_v6  ;;  %v5368_v5 = vld [vmem:[%s6568_s30 + $0x1c] sm:$0x1] }
 0x183   : > { %v5622_v1 = vpop.f32.mrf.mxu0 }
 0x184   : > { %v2201_v34 = vadd.f32 %v5621_v18, %v2200_v19  ;;  %v4305_v18 = vsel %vm7950_vm4, 0, %v5368_v5 }
 0x185   : > { %v5623_v42 = vpop.f32.mrf.mxu0  ;;  %5369 = vst [vmem:[%s6568_s30 + $0x1c] sm:$0x1] %v4305_v18 }
 0x186   : > { %v7931_v21 = vadd.f32 %v2201_v34, %v1708_v50  ;;  %v5624_v62 = vadd.f32 %v5623_v42, %v5622_v1  ;;  %v5354_v42 = vld [vmem:[%s6568_s30 + $0x20] sm:$0x1] }
 0x187   : > { %v5625_v44 = vpop.f32.mrf.mxu0 }
 0x188   : > { %v2206_v3 = vadd.f32 %v5994_v40, %v5624_v62 }
 0x189   : > { %v5626_v33 = vpop.f32.mrf.mxu0 }
 0x18a   : > { %v7933_v51 = vadd.f32 %v2206_v3, %v1709_v26  ;;  %v5627_v23 = vadd.f32 %v5626_v33, %v5625_v44  ;;  %v4282_v44 = vsel %vm7941_vm3, 0, %v5354_v42  ;;  %v5370_v3 = vld [vmem:[%s6568_s30 + $0x24] sm:$0x1] }
 0x18b   : > { %v5656_v27 = vpop.f32.mrf.mxu0  ;;  %5355 = vst [vmem:[%s6568_s30 + $0x20] sm:$0x1] %v4282_v44 }
 0x18c   : > { %v2209_v48 = vadd.f32 %v5995_v57, %v5627_v23  ;;  %v4308_v23 = vsel %vm7950_vm4, 0, %v5370_v3  ;;  %v6476_v3 = vmov 0  }
 0x18d   : > { %v6014_v0 = vpop.f32.mrf.mxu1  ;;  %v5657_v24 = vpop.f32.mrf.mxu0  ;;  %5371 = vst [vmem:[%s6568_s30 + $0x24] sm:$0x1] %v4308_v23  ;;  %4263 = vst [vmem:[%s6568_s30] sm:$0xf] %v6476_v3 }
 0x18e   : > { %v7935_v17 = vadd.f32 %v2209_v48, %v1710_v2  ;;  %v5658_v8 = vadd.f32 %v5657_v24, %v5656_v27  ;;  %v5356_v24 = vld [vmem:[%s6568_s30 + $0x28] sm:$0x1]  ;;  %4264 = vst [vmem:[%s6568_s30 + $0x4] sm:$0x1] %v6476_v3  ;;  %5346 = vst [vmem:[%s6568_s30 + $0x48] sm:$0xf] %v6476_v3 }
 0x18f   : > { %v2554_v37 = vpop.f32.mrf.mxu1  ;;  %v5659_v36 = vpop.f32.mrf.mxu0  ;;  %5347 = vst [vmem:[%s6568_s30 + $0x4c] sm:$0x1] %v6476_v3 }
 0x190   : > { %v2555_v47 = vadd.f32 %v5658_v8, %v2554_v37  ;;  %v5372_v8 = vld [vmem:[%s6568_s30 + $0x2c] sm:$0x1] }
 0x191   : > { %v6015_v46 = vpop.f32.mrf.mxu1  ;;  %v5660_v50 = vpop.f32.mrf.mxu0 }
 0x192   : > { %v7937_v22 = vadd.f32 %v2555_v47, %v2220_v52  ;;  %v5661_v28 = vadd.f32 %v5660_v50, %v5659_v36  ;;  %v4285_v36 = vsel %vm7941_vm3, 0, %v5356_v24  ;;  %v4311_v47 = vsel %vm7950_vm4, 0, %v5372_v8 }
 0x193   : > { %v2557_v4 = vpop.f32.mrf.mxu1  ;;  %v5662_v26 = vpop.f32.mrf.mxu0  ;;  %5357 = vst [vmem:[%s6568_s30 + $0x28] sm:$0x1] %v4285_v36  ;;  %5373 = vst [vmem:[%s6568_s30 + $0x2c] sm:$0x1] %v4311_v47 }
 0x194   : > { %v2558_v56 = vadd.f32 %v5661_v28, %v2557_v4 }
 0x195   : > { %v5663_v13 = vpop.f32.mrf.mxu0  ;;  %v6018_v32 = vpop.f32.mrf.mxu1 }
 0x196   : > { %v7939_v9 = vadd.f32 %v2558_v56, %v2221_v25  ;;  %v5664_v14 = vadd.f32 %v5663_v13, %v5662_v26  ;;  %v5350_v25 = vld [vmem:[%s6568_s30 + $0x10] sm:$0x1] }
 0x197   : > { %v5665_v7 = vpop.f32.mrf.mxu0  ;;  %v2570_v12 = vpop.f32.mrf.mxu1  ;;  %v4276_v41 = vsel %vm7941_vm3, 0, %v5350_v25  ;;  %v5358_v13 = vld [vmem:[%s6568_s30 + $0x30] sm:$0x1] }
 0x198   : > { %v2563_v2 = vadd.f32 %v6014_v0, %v5664_v14  ;;  %5351 = vst [vmem:[%s6568_s30 + $0x10] sm:$0x1] %v4276_v41  ;;  %v5362_v41 = vld [vmem:[%s6568_s30 + $0x40] sm:$0x1] }
 0x199   : > { %v5666_v63 = vpop.f32.mrf.mxu0  ;;  %v6019_v30 = vpop.f32.mrf.mxu1 }
 0x19a   : > { %v7954_v39 = vadd.f32 %v2563_v2, %v2222_v31  ;;  %v5667_v61 = vadd.f32 %v5666_v63, %v5665_v7  ;;  %v4288_v7 = vsel %vm7941_vm3, 0, %v5358_v13 }
 0x19b   : > { %v5668_v60 = vpop.f32.mrf.mxu0  ;;  %v2573_v57 = vpop.f32.mrf.mxu1  ;;  %5359 = vst [vmem:[%s6568_s30 + $0x30] sm:$0x1] %v4288_v7 }
 0x19c   : > { %v2566_v40 = vadd.f32 %v6015_v46, %v5667_v61  ;;  %v5376_v61 = vld [vmem:[%s6568_s30 + $0x3c] sm:$0x1] }
 0x19d   : > { %v5669_v11 = vpop.f32.mrf.mxu0 }
 0x19e   : > { %v7967_v31 = vadd.f32 %v2566_v40, %v7927_v58  ;;  %v5670_v45 = vadd.f32 %v5669_v11, %v5668_v60  ;;  %v4279_v58 = vsel %vm7941_vm3, 0, %v5352_v53  ;;  %v4291_v60 = vsel %vm7941_vm3, 0, %v5360_v55 }
 0x19f   : > { %v5671_v20 = vpop.f32.mrf.mxu0  ;;  %5353 = vst [vmem:[%s6568_s30 + $0x18] sm:$0x1] %v4279_v58  ;;  %v4317_v40 = vsel %vm7950_vm4, 0, %v5376_v61  ;;  %5361 = vst [vmem:[%s6568_s30 + $0x38] sm:$0x1] %v4291_v60 }
 0x1a0   : > { %v2571_v59 = vadd.f32 %v5670_v45, %v2570_v12  ;;  %5377 = vst [vmem:[%s6568_s30 + $0x3c] sm:$0x1] %v4317_v40 }
 0x1a1   : > { %v5672_v43 = vpop.f32.mrf.mxu0 }
 0x1a2   : > { %v7973_v6 = vadd.f32 %v2571_v59, %v7929_v38  ;;  %v5673_v10 = vadd.f32 %v5672_v43, %v5671_v20  ;;  %v4294_v20 = vsel %vm7941_vm3, 0, %v5362_v41  ;;  %v4320_v59 = vsel %vm7950_vm4, 0, %v5378_v15 }
 0x1a3   : > { %v5674_v19 = vpop.f32.mrf.mxu0  ;;  %5363 = vst [vmem:[%s6568_s30 + $0x40] sm:$0x1] %v4294_v20  ;;  %5379 = vst [vmem:[%s6568_s30 + $0x44] sm:$0x1] %v4320_v59 }
 0x1a4   : > { %v2574_v1 = vadd.f32 %v5673_v10, %v2573_v57 }
 0x1a5   : > { %v5675_v34 = vpop.f32.mrf.mxu0 }
 0x1a6   : > { %v7984_v38 = vadd.f32 %v2574_v1, %v7931_v21  ;;  %v5676_v62 = vadd.f32 %v5675_v34, %v5674_v19 }
 0x1a7   : > { %v5677_v33 = vpop.f32.mrf.mxu0 }
 0x1a8   : > { %v2579_v0 = vadd.f32 %v6018_v32, %v5676_v62  ;;  %v5374_v32 = vld [vmem:[%s6568_s30 + $0x34] sm:$0x1] }
 0x1a9   : > { %v5678_v27 = vpop.f32.mrf.mxu0  ;;  %v4314_v2 = vsel %vm7950_vm4, 0, %v5374_v32 }
 0x1aa   : > { %v7994_v48 = vadd.f32 %v2579_v0, %v7933_v51  ;;  %v5679_v21 = vadd.f32 %v5678_v27, %v5677_v33  ;;  %5375 = vst [vmem:[%s6568_s30 + $0x34] sm:$0x1] %v4314_v2 }
 0x1ab   : > { %v5708_v46 = vpop.f32.mrf.mxu0 }
 0x1ac   : > { %v2582_v50 = vadd.f32 %v6019_v30, %v5679_v21 }
 0x1ad   : > { %v6038_v37 = vpop.f32.mrf.mxu1  ;;  %v5709_v51 = vpop.f32.mrf.mxu0 }
 0x1ae   : > { %v8005_v28 = vadd.f32 %v2582_v50, %v7935_v17  ;;  %v5710_v26 = vadd.f32 %v5709_v51, %v5708_v46 }
 0x1af   : > { %v2909_v4 = vpop.f32.mrf.mxu1  ;;  %v5711_v14 = vpop.f32.mrf.mxu0 }
 0x1b0   : > { %v2910_v54 = vadd.f32 %v5710_v26, %v2909_v4 }
 0x1b1   : > { %v6039_v56 = vpop.f32.mrf.mxu1  ;;  %v5712_v35 = vpop.f32.mrf.mxu0 }
 0x1b2   : > { %v8016_v63 = vadd.f32 %v2910_v54, %v7937_v22  ;;  %v5713_v12 = vadd.f32 %v5712_v35, %v5711_v14 }
 0x1b3   : > { %v2912_v17 = vpop.f32.mrf.mxu1  ;;  %v5714_v16 = vpop.f32.mrf.mxu0 }
 0x1b4   : > { %v2913_v25 = vadd.f32 %v5713_v12, %v2912_v17 }
 0x1b5   : > { %v5715_v49 = vpop.f32.mrf.mxu0  ;;  %v6042_v11 = vpop.f32.mrf.mxu1 }
 0x1b6   : > { %v8027_v22 = vadd.f32 %v2913_v25, %v7939_v9  ;;  %v5716_v30 = vadd.f32 %v5715_v49, %v5714_v16 }
 0x1b7   : > { %v5717_v45 = vpop.f32.mrf.mxu0  ;;  %v2925_v53 = vpop.f32.mrf.mxu1 }
 0x1b8   : > { %v2918_v43 = vadd.f32 %v6038_v37, %v5716_v30 }
 0x1b9   : > { %v5718_v57 = vpop.f32.mrf.mxu0  ;;  %v6043_v18 = vpop.f32.mrf.mxu1 }
 0x1ba   : > { %v8038_v9 = vadd.f32 %v2918_v43, %v7954_v39  ;;  %v5719_v10 = vadd.f32 %v5718_v57, %v5717_v45 }
 0x1bb   : > { %v5720_v58 = vpop.f32.mrf.mxu0  ;;  %v2928_v44 = vpop.f32.mrf.mxu1 }
 0x1bc   : > { %v2921_v5 = vadd.f32 %v6039_v56, %v5719_v10 }
 0x1bd   : > { %v5721_v19 = vpop.f32.mrf.mxu0 }
 0x1be   : > { %v8041_v52 = vadd.f32 %v2921_v5, %v7967_v31  ;;  %v5722_v1 = vadd.f32 %v5721_v19, %v5720_v58 }
 0x1bf   : > { %v5723_v34 = vpop.f32.mrf.mxu0 }
 0x1c0   : > { %v2926_v42 = vadd.f32 %v5722_v1, %v2925_v53 }
 0x1c1   : > { %v5724_v62 = vpop.f32.mrf.mxu0 }
 0x1c2   : > { %v2952_v39 = vadd.f32 %v2926_v42, %v7973_v6  ;;  %v5725_v33 = vadd.f32 %v5724_v62, %v5723_v34 }
 0x1c3   : > { %v5726_v23 = vpop.f32.mrf.mxu0 }
 0x1c4   : > { %v2929_v0 = vadd.f32 %v5725_v33, %v2928_v44 }
 0x1c5   : > { %v5727_v27 = vpop.f32.mrf.mxu0 }
 0x1c6   : > { %v8049_v21 = vadd.f32 %v2929_v0, %v7984_v38  ;;  %v5728_v31 = vadd.f32 %v5727_v27, %v5726_v23 }
 0x1c7   : > { %v5729_v37 = vpop.f32.mrf.mxu0 }
 0x1c8   : > { %v2934_v24 = vadd.f32 %v6042_v11, %v5728_v31 }
 0x1c9   : > { %v5730_v8 = vpop.f32.mrf.mxu0 }
 0x1ca   : > { %v8052_v46 = vadd.f32 %v2934_v24, %v7994_v48  ;;  %v5731_v36 = vadd.f32 %v5730_v8, %v5729_v37 }
 0x1cb   : > { %v5760_v47 = vpop.f32.mrf.mxu0 }
 0x1cc   : > { %v2937_v4 = vadd.f32 %v6043_v18, %v5731_v36 }
 0x1cd   : > { %v8054_v50 = vpop.f32.mrf.mxu1  ;;  %v5761_v6 = vpop.f32.mrf.mxu0 }
 0x1ce   : > { %v8057_v51 = vadd.f32 %v2937_v4, %v8005_v28  ;;  %v5762_v0 = vadd.f32 %v5761_v6, %v5760_v47 }
 0x1cf   : > { %v5763_v26 = vpop.f32.mrf.mxu0  ;;  %v3426_v56 = vpop.f32.mrf.mxu1 }
 0x1d0   : > { %8265 = vst [vmem:[#allocation4_spill] sm:$0xff] %v8057_v51  ;;  %v3427_v8 = vadd.f32 %v5762_v0, %v3426_v56 }
 0x1d1   : > { %v5764_v38 = vpop.f32.mrf.mxu0  ;;  %v8059_v13 = vpop.f32.mrf.mxu1 }
 0x1d2   : > { %v5765_v36 = vadd.f32 %v5764_v38, %v5763_v26  ;;  %v8107_v26 = vld [vmem:[%s8254_s4] ss:$0 sm:$0xff] }
 0x1d3   : > { %v5766_v32 = vpop.f32.mrf.mxu0  ;;  %v3429_v7 = vpop.f32.mrf.mxu1 }
 0x1d4   : > { %v3430_v51 = vadd.f32 %v5765_v36, %v3429_v7 }
 0x1d5   : > { %v5767_v14 = vpop.f32.mrf.mxu0  ;;  %v8065_v54 = vpop.f32.mrf.mxu1 }
 0x1d7   : > { %v8061_v2 = vpop.f32.mrf.mxu0  ;;  %v3442_v12 = vpop.f32.mrf.mxu1 }
 0x1d9   : > { %v8063_v48 = vpop.f32.mrf.mxu0  ;;  %v8075_v11 = vpop.f32.mrf.mxu1 }
 0x1db   : > { %v5772_v35 = vpop.f32.mrf.mxu0  ;;  %v8079_v15 = vpop.f32.mrf.mxu1 }
 0x1dd   : > { %v5773_v17 = vpop.f32.mrf.mxu0 }
 0x1de   : > { %v5774_v55 = vadd.f32 %v5773_v17, %v5772_v35 }
 0x1df   : > { %v5775_v28 = vpop.f32.mrf.mxu0 }
 0x1e0   : > { %v3443_v61 = vadd.f32 %v5774_v55, %v3442_v12 }
 0x1e1   : > { %v5776_v16 = vpop.f32.mrf.mxu0 }
 0x1e2   : > { %v8067_v60 = vadd.f32 %v3443_v61, %v2952_v39 }
 0x1e3   : > { %v8069_v40 = vpop.f32.mrf.mxu0 }
 0x1e5   : > { %v8071_v25 = vpop.f32.mrf.mxu0 }
 0x1e7   : > { %v8073_v49 = vpop.f32.mrf.mxu0 }
 0x1e9   : > { %v8077_v30 = vpop.f32.mrf.mxu0 }
 0x1eb   : > { %v5812_v41 = vpop.f32.mrf.mxu0 }
 0x1ed   : > { %v5813_v45 = vpop.f32.mrf.mxu0  ;;  %v6086_v20 = vpop.f32.mrf.mxu1 }
 0x1ee   : > { %v5814_v31 = vadd.f32 %v5813_v45, %v5812_v41 }
 0x1ef   : > { %v5815_v59 = vpop.f32.mrf.mxu0  ;;  %v3799_v57 = vpop.f32.mrf.mxu1 }
 0x1f0   : > { %v3800_v17 = vadd.f32 %v5814_v31, %v3799_v57  ;;  %v8116_v57 = vld [vmem:[%s8255_s5] ss:$0 sm:$0xff] }
 0x1f1   : > { %v5816_v43 = vpop.f32.mrf.mxu0  ;;  %v8081_v58 = vpop.f32.mrf.mxu1 }
 0x1f2   : > { %v5817_v12 = vadd.f32 %v5816_v43, %v5815_v59  ;;  %v3466_v59 = vadd.f32 %v3430_v51, %v8027_v22  ;;  %v5777_v43 = vadd.f32 %v5776_v16, %v5775_v28  ;;  %v5780_v22 = vadd.f32 %v8071_v25, %v8069_v40 }
 0x1f3   : > { %v5818_v53 = vpop.f32.mrf.mxu0  ;;  %v3802_v18 = vpop.f32.mrf.mxu1 }
 0x1f4   : > { %v3803_v45 = vadd.f32 %v5817_v12, %v3802_v18 }
 0x1f5   : > { %v5819_v10 = vpop.f32.mrf.mxu0  ;;  %v8083_v34 = vpop.f32.mrf.mxu1 }
 0x1f6   : > { %8266 = vst [vmem:[#allocation5_spill] sm:$0xff] %v8083_v34  ;;  %v5768_v34 = vadd.f32 %v5767_v14, %v5766_v32  ;;  %v5820_v29 = vadd.f32 %v5819_v10, %v5818_v53  ;;  %v5771_v14 = vadd.f32 %v8063_v48, %v8061_v2  ;;  %v3839_v10 = vadd.f32 %v3803_v45, %v3466_v59 }
 0x1f7   : > { %v5821_v5 = vpop.f32.mrf.mxu0  ;;  %v8087_v44 = vpop.f32.mrf.mxu1 }
 0x1f8   : > { %v3808_v18 = vadd.f32 %v6086_v20, %v5820_v29  ;;  %v3446_v29 = vadd.f32 %v5777_v43, %v8079_v15 }
 0x1f9   : > { %v5822_v19 = vpop.f32.mrf.mxu0  ;;  %v8093_v33 = vpop.f32.mrf.mxu1 }
 0x1fa   : > { %8267 = vst [vmem:[#allocation6_spill] sm:$0xff] %v8093_v33  ;;  %v3465_v33 = vadd.f32 %v3427_v8, %v8016_v63  ;;  %v3435_v63 = vadd.f32 %v8054_v50, %v5768_v34  ;;  %v5823_v50 = vadd.f32 %v5822_v19, %v5821_v5  ;;  %v3451_v5 = vadd.f32 %v8065_v54, %v5780_v22 }
 0x1fb   : > { %v5824_v1 = vpop.f32.mrf.mxu0  ;;  %v8099_v37 = vpop.f32.mrf.mxu1 }
 0x1fc   : > { %v3838_v41 = vadd.f32 %v3800_v17, %v3465_v33  ;;  %v3467_v2 = vadd.f32 %v3435_v63, %v8038_v9  ;;  %v3811_v19 = vadd.f32 %v8081_v58, %v5823_v50  ;;  %v3470_v58 = vadd.f32 %v3446_v29, %v8049_v21  ;;  %v5394_v29 = vld [vmem:[%s6568_s30 + $0x14] sm:$0x1] }
 0x1fd   : > { %v5825_v42 = vpop.f32.mrf.mxu0 }
 0x1fe   : > { %v5826_v20 = vadd.f32 %v5825_v42, %v5824_v1  ;;  %v3840_v31 = vadd.f32 %v3808_v18, %v3467_v2  ;;  %v5783_v1 = vadd.f32 %v8077_v30, %v8073_v49 }
 0x1ff   : > { %v8085_v62 = vpop.f32.mrf.mxu0 }
 0x200   : > { %v3816_v42 = vadd.f32 %v5826_v20, %v8087_v44  ;;  %v3454_v21 = vadd.f32 %v8075_v11, %v5783_v1 }
 0x201   : > { %v8089_v3 = vpop.f32.mrf.mxu0 }
 0x202   : > { %v5829_v54 = vadd.f32 %v8089_v3, %v8085_v62  ;;  %v3842_v59 = vadd.f32 %v3816_v42, %v8067_v60 }
 0x203   : > { %v8091_v39 = vpop.f32.mrf.mxu0 }
 0x204   : > { %v3819_v63 = vadd.f32 %v5829_v54, %v8099_v37 }
 0x205   : > { %v8095_v23 = vpop.f32.mrf.mxu0 }
 0x206   : > { %8268 = vst [vmem:[#allocation7_spill] sm:$0xff] %v8095_v23 }
 0x207   : > { %v8097_v27 = vpop.f32.mrf.mxu0 }
 0x208   : > { %8269 = vst [vmem:[#allocation8_spill] sm:$0xff] %v8097_v27 }
 0x209   : > { %v8101_v24 = vpop.f32.mrf.mxu0 }
 0x20b   : > { %v5864_v35 = vpop.f32.mrf.mxu0 }
 0x20d   : > { %v6110_v4 = vpop.f32.mrf.mxu1  ;;  %v5865_v61 = vpop.f32.mrf.mxu0  ;;  %v8272_v43 = vld [vmem:[#allocation7_spill] sm:$0xff] }
 0x20e   : > { %v5866_v47 = vadd.f32 %v5865_v61, %v5864_v35 }
 0x20f   : > { %v4154_v55 = vpop.f32.mrf.mxu1  ;;  %v5867_v27 = vpop.f32.mrf.mxu0 }
 0x210   : > { %v4155_v23 = vadd.f32 %v5866_v47, %v4154_v55 }
 0x211   : > { %v6111_v6 = vpop.f32.mrf.mxu1  ;;  %v5868_v56 = vpop.f32.mrf.mxu0 }
 0x212   : > { %v4193_v7 = vadd.f32 %v4155_v23, %v3838_v41  ;;  %v5869_v32 = vadd.f32 %v5868_v56, %v5867_v27  ;;  %v3438_v23 = vadd.f32 %v8059_v13, %v5771_v14  ;;  %v3471_v41 = vadd.f32 %v3451_v5, %v8052_v46 }
 0x213   : > { %v4157_v38 = vpop.f32.mrf.mxu1  ;;  %v5870_v53 = vpop.f32.mrf.mxu0 }
 0x214   : > { %v4224_v33 = vmul.f32 %v8107_v26, %v4193_v7  ;;  %v4158_v0 = vadd.f32 %v5869_v32, %v4157_v38  ;;  %v3468_v15 = vadd.f32 %v3438_v23, %v8041_v52  ;;  %v5390_v7 = vld [vmem:[%s6568_s30 + $0xc] sm:$0x1]  ;;  %v5392_v23 = vld [vmem:[%s6568_s30 + $0x10] sm:$0xf] }
 0x215   : > { %v5871_v51 = vpop.f32.mrf.mxu0  ;;  %v8121_v34 = vpop.f32.mrf.mxu1 }
 0x216   : > { %v4239_v48 = vadd.f32 %v8116_v57, %v4224_v33  ;;  %v4194_v28 = vadd.f32 %v4158_v0, %v3839_v10  ;;  %v5872_v16 = vadd.f32 %v5871_v51, %v5870_v53  ;;  %v3841_v52 = vadd.f32 %v3811_v19, %v3468_v15 }
 0x217   : > { %v5873_v27 = vpop.f32.mrf.mxu0  ;;  %v4170_v36 = vpop.f32.mrf.mxu1  ;;  %v5832_v53 = vadd.f32 %v8272_v43, %v8091_v39 }
 0x218   : > { %v4247_v8 = vmax.f32 %v4239_v48, 0.0  ;;  %v4225_v40 = vmul.f32 %v8107_v26, %v4194_v28  ;;  %v4163_v25 = vadd.f32 %v6110_v4, %v5872_v16  ;;  %v3843_v16 = vadd.f32 %v3819_v63, %v3470_v58 }
 0x219   : > { %v5874_v9 = vpop.f32.mrf.mxu0  ;;  %v8140_v30 = vpop.f32.mrf.mxu1 }
 0x21a   : > { %v5424_v35 = vpack.c.bf16 %v4247_v8, %v4247_v8  ;;  %v4240_v17 = vadd.f32 %v8116_v57, %v4225_v40  ;;  %v4195_v13 = vadd.f32 %v4163_v25, %v3840_v31  ;;  %v5875_v12 = vadd.f32 %v5874_v9, %v5873_v27  ;;  %v8274_v40 = vld [vmem:[#allocation5_spill] sm:$0xff] }
 0x21b   : > { %v5876_v4 = vpop.f32.mrf.mxu0  ;;  %v4173_v50 = vpop.f32.mrf.mxu1  ;;  %v3824_v25 = vadd.f32 %v8274_v40, %v5832_v53  ;;  %v5404_v40 = vld [vmem:[%s6568_s30 + $0x28] sm:$0xf] }
 0x21c   : > { %v4347_v55 = vshrl.u32 %v5424_v35, 16  ;;  %v4248_v61 = vmax.f32 %v4240_v17, 0.0  ;;  %v4226_v47 = vmul.f32 %v8107_v26, %v4195_v13  ;;  %v4350_v45 = vshll.u32 %v5424_v35, 16 }
 0x21d   : > { %v4166_v56 = vadd.f32 %v6111_v6, %v5875_v12  ;;  %v5877_v49 = vpop.f32.mrf.mxu0  ;;  %v5388_v6 = vld [vmem:[%s6568_s30 + $0x8] sm:$0xf] }
 0x21e   : > { %v4349_v44 = vrot.slane %v4347_v55, 7  ;;  %v5425_v38 = vpack.c.bf16 %v4248_v61, %v4248_v61  ;;  %v4241_v62 = vadd.f32 %v8116_v57, %v4226_v47  ;;  %v5878_v3 = vadd.f32 %v5877_v49, %v5876_v4  ;;  %v5396_v49 = vld [vmem:[%s6568_s30 + $0x18] sm:$0xf] }
 0x21f   : > { %v4196_v32 = vadd.f32 %v4166_v56, %v3841_v52  ;;  %v5879_v14 = vpop.f32.mrf.mxu0  ;;  %v8276_v52 = vld [vmem:[#allocation4_spill] sm:$0xff]  ;;  %v3844_v56 = vadd.f32 %v3824_v25, %v3471_v41 }
 0x220   : > { %v4352_v11 = vor.u32 %v4350_v45, %v4349_v44  ;;  %v4353_v60 = vrot.slane %v4349_v44, 4  ;;  %v4355_v37 = vshrl.u32 %v5425_v38, 16  ;;  %v4358_v10 = vshll.u32 %v5425_v38, 16  ;;  %v5398_v44 = vld [vmem:[%s6568_s30 + $0x1c] sm:$0x1] }
 0x221   : > { %v4249_v18 = vmax.f32 %v4241_v62, 0.0  ;;  %v4227_v33 = vmul.f32 %v8107_v26, %v4196_v32  ;;  %v4171_v0 = vadd.f32 %v5878_v3, %v4170_v36  ;;  %v5880_v22 = vpop.f32.mrf.mxu0  ;;  %v8275_v36 = vld [vmem:[#allocation8_spill] sm:$0xff]  ;;  %v3472_v45 = vadd.f32 %v3454_v21, %v8276_v52  ;;  %v8277_v3 = vld [vmem:[#allocation6_spill] sm:$0xff] }
 0x222   : > { %v4429_v51 = vsel %vm8148_vm6, %v4352_v11, %v5388_v6  ;;  %v4432_v48 = vsel %vm7941_vm3, %v4353_v60, %v5390_v7  ;;  %v4357_v39 = vrot.slane %v4355_v37, 7  ;;  %v5881_v28 = vadd.f32 %v5880_v22, %v5879_v14  ;;  %v5400_v37 = vld [vmem:[%s6568_s30 + $0x20] sm:$0xf]  ;;  %v5406_v25 = vld [vmem:[%s6568_s30 + $0x2c] sm:$0x1] }
 0x223   : > { %5389 = vst [vmem:[%s6568_s30 + $0x8] sm:$0xf] %v4429_v51  ;;  %5391 = vst [vmem:[%s6568_s30 + $0xc] sm:$0x1] %v4432_v48  ;;  %v5426_v20 = vpack.c.bf16 %v4249_v18, %v4249_v18  ;;  %v4242_v27 = vadd.f32 %v8116_v57, %v4227_v33  ;;  %v4197_v31 = vadd.f32 %v4171_v0, %v3842_v59  ;;  %v5882_v8 = vpop.f32.mrf.mxu0  ;;  %v5412_v52 = vld [vmem:[%s6568_s30 + $0x38] sm:$0xf] }
 0x224   : > { %v4360_v5 = vor.u32 %v4358_v10, %v4357_v39  ;;  %v4361_v19 = vrot.slane %v4357_v39, 4  ;;  %v4174_v9 = vadd.f32 %v5881_v28, %v4173_v50  ;;  %v5835_v35 = vadd.f32 %v8101_v24, %v8275_v36  ;;  %v5402_v10 = vld [vmem:[%s6568_s30 + $0x24] sm:$0x1] }
 0x225   : > { %v4363_v17 = vshrl.u32 %v5426_v20, 16  ;;  %v4250_v13 = vmax.f32 %v4242_v27, 0.0  ;;  %v4228_v12 = vmul.f32 %v8107_v26, %v4197_v31  ;;  %v5883_v15 = vpop.f32.mrf.mxu0  ;;  %v4366_v55 = vshll.u32 %v5426_v20, 16 }
 0x226   : > { %v4435_v1 = vsel %vm8148_vm6, %v4360_v5, %v5392_v23  ;;  %v4438_v42 = vsel %vm7941_vm3, %v4361_v19, %v5394_v29  ;;  %v4198_v54 = vadd.f32 %v4174_v9, %v3843_v16  ;;  %v5884_v4 = vadd.f32 %v5883_v15, %v5882_v8 }
 0x227   : > { %5393 = vst [vmem:[%s6568_s30 + $0x10] sm:$0xf] %v4435_v1  ;;  %5395 = vst [vmem:[%s6568_s30 + $0x14] sm:$0x1] %v4438_v42  ;;  %v4365_v58 = vrot.slane %v4363_v17, 7  ;;  %v5427_v24 = vpack.c.bf16 %v4250_v13, %v4250_v13  ;;  %v4243_v61 = vadd.f32 %v8116_v57, %v4228_v12  ;;  %v5885_v47 = vpop.f32.mrf.mxu0  ;;  %v3827_v59 = vadd.f32 %v8277_v3, %v5835_v35 }
 0x228   : > { %v4229_v38 = vmul.f32 %v8107_v26, %v4198_v54  ;;  %v4179_v62 = vadd.f32 %v8121_v34, %v5884_v4  ;;  %v5408_v13 = vld [vmem:[%s6568_s30 + $0x30] sm:$0xf]  ;;  %v5410_v12 = vld [vmem:[%s6568_s30 + $0x34] sm:$0x1] }
 0x229   : > { %v4368_v63 = vor.u32 %v4366_v55, %v4365_v58  ;;  %v4369_v6 = vrot.slane %v4365_v58, 4  ;;  %v4371_v7 = vshrl.u32 %v5427_v24, 16  ;;  %v5886_v32 = vpop.f32.mrf.mxu0  ;;  %v4251_v14 = vmax.f32 %v4243_v61, 0.0 }
 0x22a   : > { %v4244_v21 = vadd.f32 %v8116_v57, %v4229_v38  ;;  %v4199_v41 = vadd.f32 %v4179_v62, %v3844_v56  ;;  %v5887_v43 = vadd.f32 %v5886_v32, %v5885_v47  ;;  %v4374_v60 = vshll.u32 %v5427_v24, 16 }
 0x22b   : > { %v4441_v53 = vsel %vm8148_vm6, %v4368_v63, %v5396_v49  ;;  %v4444_v11 = vsel %vm7941_vm3, %v4369_v6, %v5398_v44  ;;  %v4373_v34 = vrot.slane %v4371_v7, 7  ;;  %v5428_v18 = vpack.c.bf16 %v4251_v14, %v4251_v14  ;;  %v5416_v63 = vld [vmem:[%s6568_s30 + $0x40] sm:$0xf]  ;;  %v5418_v6 = vld [vmem:[%s6568_s30 + $0x44] sm:$0x1] }
 0x22c   : > { %5397 = vst [vmem:[%s6568_s30 + $0x18] sm:$0xf] %v4441_v53  ;;  %5399 = vst [vmem:[%s6568_s30 + $0x1c] sm:$0x1] %v4444_v11  ;;  %v4252_v33 = vmax.f32 %v4244_v21, 0.0  ;;  %v4230_v0 = vmul.f32 %v8107_v26, %v4199_v41  ;;  %v4182_v22 = vadd.f32 %v8140_v30, %v5887_v43  ;;  %v3845_v50 = vadd.f32 %v3827_v59, %v3472_v45 }
 0x22d   : > { %v4376_v51 = vor.u32 %v4374_v60, %v4373_v34  ;;  %v4377_v48 = vrot.slane %v4373_v34, 4  ;;  %v4379_v39 = vshrl.u32 %v5428_v18, 16  ;;  %v4382_v27 = vshll.u32 %v5428_v18, 16  ;;  %v5414_v45 = vld [vmem:[%s6568_s30 + $0x3c] sm:$0x1] }
 0x22e   : > { %v5429_v28 = vpack.c.bf16 %v4252_v33, %v4252_v33  ;;  %v4245_v16 = vadd.f32 %v8116_v57, %v4230_v0  ;;  %v4200_v20 = vadd.f32 %v4182_v22, %v3845_v50 }
 0x22f   : > { %v4447_v23 = vsel %vm8148_vm6, %v4376_v51, %v5400_v37  ;;  %v4450_v29 = vsel %vm7941_vm3, %v4377_v48, %v5402_v10  ;;  %v4381_v30 = vrot.slane %v4379_v39, 7 }
 0x230   : > { %5401 = vst [vmem:[%s6568_s30 + $0x20] sm:$0xf] %v4447_v23  ;;  %5403 = vst [vmem:[%s6568_s30 + $0x24] sm:$0x1] %v4450_v29  ;;  %v4387_v31 = vshrl.u32 %v5429_v28, 16  ;;  %v4253_v8 = vmax.f32 %v4245_v16, 0.0  ;;  %v4231_v19 = vmul.f32 %v8107_v26, %v4200_v20 }
 0x231   : > { %v4390_v5 = vshll.u32 %v5429_v28, 16  ;;  %v4384_v9 = vor.u32 %v4382_v27, %v4381_v30  ;;  %v4385_v36 = vrot.slane %v4381_v30, 4 }
 0x232   : > { %v4389_v35 = vrot.slane %v4387_v31, 7  ;;  %v5430_v17 = vpack.c.bf16 %v4253_v8, %v4253_v8  ;;  %v4246_v15 = vadd.f32 %v8116_v57, %v4231_v19 }
 0x233   : > { %v4453_v1 = vsel %vm8148_vm6, %v4384_v9, %v5404_v40  ;;  %v4456_v42 = vsel %vm7941_vm3, %v4385_v36, %v5406_v25 }
 0x234   : > { %v4392_v54 = vor.u32 %v4390_v5, %v4389_v35  ;;  %v4393_v26 = vrot.slane %v4389_v35, 4  ;;  %5405 = vst [vmem:[%s6568_s30 + $0x28] sm:$0xf] %v4453_v1  ;;  %5407 = vst [vmem:[%s6568_s30 + $0x2c] sm:$0x1] %v4456_v42  ;;  %v4395_v4 = vshrl.u32 %v5430_v17, 16 }
 0x235   : > { %v4254_v58 = vmax.f32 %v4246_v15, 0.0  ;;  %v4398_v61 = vshll.u32 %v5430_v17, 16 }
 0x236   : > { %v4459_v55 = vsel %vm8148_vm6, %v4392_v54, %v5408_v13  ;;  %v4462_v57 = vsel %vm7941_vm3, %v4393_v26, %v5410_v12  ;;  %v4397_v24 = vrot.slane %v4395_v4, 7 }
 0x237   : > { %5409 = vst [vmem:[%s6568_s30 + $0x30] sm:$0xf] %v4459_v55  ;;  %5411 = vst [vmem:[%s6568_s30 + $0x34] sm:$0x1] %v4462_v57  ;;  %v5431_v47 = vpack.c.bf16 %v4254_v58, %v4254_v58 }
 0x238   : > { %v4400_v56 = vor.u32 %v4398_v61, %v4397_v24  ;;  %v4401_v49 = vrot.slane %v4397_v24, 4 }
 0x239   : > { %v4403_v44 = vshrl.u32 %v5431_v47, 16  ;;  %v4406_v59 = vshll.u32 %v5431_v47, 16 }
 0x23a   : > { %v4465_v38 = vsel %vm8148_vm6, %v4400_v56, %v5412_v52  ;;  %v4468_v62 = vsel %vm7941_vm3, %v4401_v49, %v5414_v45 }
 0x23b   : > { %v4405_v3 = vrot.slane %v4403_v44, 7  ;;  %5413 = vst [vmem:[%s6568_s30 + $0x38] sm:$0xf] %v4465_v38  ;;  %5415 = vst [vmem:[%s6568_s30 + $0x3c] sm:$0x1] %v4468_v62 }
 0x23d   : > { %v4408_v7 = vor.u32 %v4406_v59, %v4405_v3  ;;  %v4409_v32 = vrot.slane %v4405_v3, 4 }
 0x23f   : > { %v4471_v14 = vsel %vm8148_vm6, %v4408_v7, %v5416_v63  ;;  %v4474_v21 = vsel %vm7941_vm3, %v4409_v32, %v5418_v6 }
 0x240   : > { %5417 = vst [vmem:[%s6568_s30 + $0x40] sm:$0xf] %v4471_v14  ;;  %5419 = vst [vmem:[%s6568_s30 + $0x44] sm:$0x1] %v4474_v21 }
 0x241 PF: > { %s16_s25 = sadd.s32 1, %s6473_s25   ;;  %s8278_s21 = smov %s6465_s23 }
 0x242   : > { %p13_p1 = scmp.ge.s32.totalorder %s16_s25, 22   ;;  %s8279_s22 = smov %s6469_s24 }
 0x243   : > { %s8280_s23 = smov %s8283_s26  ;;  %s8281_s24 = smov %s8287_s27 }
 0x244   :  { %15 = sbr.rel (!%p13_p1) target bundleno = 3 (0x3), region = 98 }

</bundles_post_ra>
